<compile_context>
chip_gen: v6e
topology: v6e:2x2x1
jax: 0.10.0
libtpu: 0.0.40
codegen_flags: <defaults>
</compile_context>

<pallas_src>
import functools

import jax
import jax.numpy as jnp
from jax.experimental import pallas as pl
from jax.experimental.pallas import tpu as pltpu


# ----------------------------- config (__C) ---------------------------------
class Cfg:
    HIDDEN_SIZE = 128
    FLAT_MLP_SIZE = 128
    FLAT_GLIMPSES = 1
    FLAT_OUT_SIZE = 128     # == HIDDEN_SIZE (required by output_proj wiring)
    IMG_FEAT_SIZE = 256
    DROPOUT_R = 0.1         # eval mode -> dropout is identity


BERT_DIM = 768              # fixed in the module (nn.LSTM(768, ...), Linear(768, ...))
VOCAB_SIZE = 512            # small stand-in for vocab_size=30000
TOKEN_VOCAB = 1000          # token-id space for the BERT embedding stub


# ----------------------------- bias packing ----------------------------------
def _bias_segments(cfg):
    """Lane-aligned (128-multiple offsets) layout of every small bias / LN param."""
    H, F, MID, G = cfg.HIDDEN_SIZE, cfg.FLAT_OUT_SIZE, cfg.FLAT_MLP_SIZE, cfg.FLAT_GLIMPSES

    def pad(n):
        return ((n + 127) // 128) * 128

    names = [("lstm_b", 4 * H), ("det_b", cfg.IMG_FEAT_SIZE), ("img_b", H),
             ("l_b1", MID), ("l_b2", G), ("l_bm", F),
             ("i_b1", MID), ("i_b2", G), ("i_bm", F),
             ("ln_g", F), ("ln_b", F),
             ("outfeat_b", F), ("outproj_b", VOCAB_SIZE)]
    seg, off = {}, 0
    for name, n in names:
        seg[name] = (off, n)
        off += pad(n)
    return seg, off


# ----------------------------- fused kernel ----------------------------------
def _net_kernel(lang_ref, reason_ref, boxes_ref,
                wih_ref, whh_ref, det_w_ref, img_w_ref,
                attw1_ref, attw2t_ref, attwm_ref,
                outfeat_w_ref, outproj_w_ref, bias_ref,
                result_ref, proj_ref, *, glimpses, B, T, seg):
    f32 = jnp.float32
    bf16 = jnp.bfloat16

    def bias(name):
        off, n = seg[name]
        return bias_ref[0:1, off:off + n]                       # (1, n) f32, 128-aligned

    # ------------- LSTM (batch_first, gate order i,f,g,o; h0=c0=0) ------------
    lang_all = lang_ref[...]                                     # (T*B, 768) time-major rows
    H4 = wih_ref.shape[1]
    H = H4 // 4
    # Input projection for ALL timesteps in one MXU pass (bf16 in, f32 acc).
    gates_all = (jnp.dot(lang_all.astype(bf16), wih_ref[...],
                         preferred_element_type=f32) + bias("lstm_b"))   # (T*B, 4H)
    whh = whh_ref[...]
    h = jnp.zeros((B, H), f32)
    c = jnp.zeros((B, H), f32)
    hs = []
    # TODO(synk): on v5e/v6e, pltpu.matmul_push_rhs could keep W_hh staged in the MXU
    # across the unrolled recurrence; plain dots kept for lowering robustness.
    for t in range(T):
        g = gates_all[t * B:(t + 1) * B, :] + jnp.dot(h.astype(bf16), whh,
                                                      preferred_element_type=f32)
        i_g = jax.nn.sigmoid(g[:, 0 * H:1 * H])
        f_g = jax.nn.sigmoid(g[:, 1 * H:2 * H])
        g_g = jnp.tanh(g[:, 2 * H:3 * H])
        o_g = jax.nn.sigmoid(g[:, 3 * H:4 * H])
        c = f_g * c + i_g * g_g
        h = o_g * jnp.tanh(c)
        hs.append(h)                                             # stays in vregs
    lang_xf = jnp.concatenate(hs, axis=0)                        # (T*B, H), same row order

    # make_mask(lang BERT features): (sum|x|,-1)==0, computed where the data lives.
    labs = jnp.sum(jnp.abs(lang_all), axis=-1, keepdims=True)    # (T*B, 1)

    # ------------- detector stub + img_feat_linear + make_mask(img) -----------
    # TODO(synk): SimpleDetector (pretrained ResNet + ROI pooling) has no clean Pallas
    # equivalent; stubbed as a deterministic linear projection of the boxes.
    Bb, Lo, C = boxes_ref.shape
    boxes2 = boxes_ref[...].reshape(Bb * Lo, C).astype(bf16)
    img_raw = jnp.dot(boxes2, det_w_ref[...],
                      preferred_element_type=f32) + bias("det_b")         # (B*Lo, IMG)
    img_xf = jnp.dot(img_raw.astype(bf16), img_w_ref[...],
                     preferred_element_type=f32) + bias("img_b")          # (B*Lo, H)
    img_x3 = img_xf.reshape(Bb, Lo, H)
    # NOTE: stub bias makes this effectively all-False; kept for make_mask semantics.
    iabs = jnp.sum(jnp.abs(img_raw), axis=-1, keepdims=True)              # (B*Lo, 1)

    # ------------- AttFlat MLP (shared): Linear -> ReLU -> per-glimpse VPU col --
    def mlp_att(xf, w1, b1, w2t, b2):
        h1 = jnp.maximum(jnp.dot(xf.astype(bf16), w1,
                                 preferred_element_type=f32) + b1, 0.0)   # (N, MID)
        # 1-column projection on the VPU (multiply + lane reduce), not the MXU.
        return [jnp.sum(h1 * w2t[gi:gi + 1, :], axis=-1, keepdims=True) + b2[:, gi:gi + 1]
                for gi in range(glimpses)]                                # list of (N,1)

    # --- AttFlat(lang): fully unrolled over T, leading-row slices only ---------
    lang_cols = mlp_att(lang_xf, attw1_ref[0], bias("l_b1"),
                        attw2t_ref[0], bias("l_b2"))
    lang_pools = []
    for col in lang_cols:
        att = jnp.where(labs == 0.0, -1e9, col)                           # masked_fill
        rows = [att[t * B:(t + 1) * B, :] for t in range(T)]              # (B,1) each
        mx = rows[0]
        for r in rows[1:]:
            mx = jnp.maximum(mx, r)
        es = [jnp.exp(r - mx) for r in rows]
        den = es[0]
        for e in es[1:]:
            den = den + e
        inv = pl.reciprocal(den, approx=True)                             # EUP recip
        pooled = es[0] * inv * hs[0]
        for t in range(1, T):
            pooled = pooled + es[t] * inv * hs[t]                         # (B, H)
        lang_pools.append(pooled)
    lang_at = lang_pools[0] if glimpses == 1 else jnp.concatenate(lang_pools, axis=1)
    lang_pool = jnp.dot(lang_at.astype(bf16), attwm_ref[0],
                        preferred_element_type=f32) + bias("l_bm")        # (B, F)

    # --- AttFlat(img): batch-major 3-D, softmax over the object axis -----------
    img_cols = mlp_att(img_xf, attw1_ref[1], bias("i_b1"),
                       attw2t_ref[1], bias("i_b2"))
    img_pools = []
    for col in img_cols:
        att = jnp.where(iabs == 0.0, -1e9, col).reshape(Bb, Lo, 1)
        att = att - jnp.max(att, axis=1, keepdims=True)
        e = jnp.exp(att)
        a = e * pl.reciprocal(jnp.sum(e, axis=1, keepdims=True), approx=True)
        img_pools.append(jnp.sum(a * img_x3, axis=1))                     # (B, H)
    img_at = img_pools[0] if glimpses == 1 else jnp.concatenate(img_pools, axis=1)
    img_pool = jnp.dot(img_at.astype(bf16), attwm_ref[1],
                       preferred_element_type=f32) + bias("i_bm")         # (B, F)

    # proj_feat = LayerNorm(lang + img), eps=1e-6 (MCAN-style LayerNorm).
    p = lang_pool + img_pool
    mu = jnp.mean(p, axis=-1, keepdims=True)
    var = jnp.mean((p - mu) ** 2, axis=-1, keepdims=True)
    proj_ref[...] = ((p - mu) * jax.lax.rsqrt(var + 1e-6) * bias("ln_g")
                     + bias("ln_b")).astype(proj_ref.dtype)

    # ------- output head: feat linear -> proj linear -> LogSoftmax(dim=1) ------
    # TODO(synk): backbone / backbone2 (MCA_ED) source is not provided; identity
    # stubs, so proj_feat only feeds the identity backbone2 (the dead
    # make_mask(proj_feat)/make_mask(output_feat) launches were removed).
    Br, Lr, Dr = reason_ref.shape
    V = outproj_w_ref.shape[1]
    r2 = reason_ref[...].reshape(Br * Lr, Dr).astype(bf16)
    hf = jnp.dot(r2, outfeat_w_ref[...],
                 preferred_element_type=f32) + bias("outfeat_b")          # (B*Lr, F)
    logits = (jnp.dot(hf.astype(bf16), outproj_w_ref[...],
                      preferred_element_type=f32)
              + bias("outproj_b")).reshape(Br, Lr, V)
    m = jnp.max(logits, axis=1, keepdims=True)                            # LogSoftmax(dim=1)
    z = logits - m
    lse = jnp.log(jnp.sum(jnp.exp(z), axis=1, keepdims=True))
    result_ref[...] = (z - lse).astype(result_ref.dtype)


def fused_net(params, cfg, lang2d, reason_raw, boxes, B, T):
    """Single pallas_call covering the whole post-embedding forward pass."""
    H, F = cfg.HIDDEN_SIZE, cfg.FLAT_OUT_SIZE
    MID, G = cfg.FLAT_MLP_SIZE, cfg.FLAT_GLIMPSES
    Lr = reason_raw.shape[1]
    Lo = boxes.shape[1]
    D = lang2d.shape[1]
    V = params["outproj_w"].shape[1]
    IMG = params["det_w"].shape[1]
    seg, _ = _bias_segments(cfg)

    args = (lang2d, reason_raw, boxes,
            params["lstm_wih"], params["lstm_whh"], params["det_w"], params["img_w"],
            params["att_w1"], params["att_w2t"], params["att_wm"],
            params["outfeat_w"], params["outproj_w"], params["bias_pack"])

    flops = 2 * (T * B * D * 4 * H + T * B * H * 4 * H               # LSTM
                 + B * Lo * 4 * IMG + B * Lo * IMG * H               # det stub + img proj
                 + 2 * (T * B * H * MID + T * B * MID * G + B * H * G * F)  # AttFlat x2
                 + B * Lr * D * F + B * Lr * F * V)                  # output head
    transcend = 5 * T * B * H + 2 * G * (T * B + B * Lo) + B * Lr * V
    bytes_accessed = (sum(int(a.size) * a.dtype.itemsize for a in args)
                      + (B * Lr * V + B * F) * 4)

    vmem = pl.BlockSpec(memory_space=pltpu.MemorySpace.VMEM)
    kern = functools.partial(_net_kernel, glimpses=G, B=B, T=T, seg=seg)
    return pl.pallas_call(
        kern,
        out_shape=(jax.ShapeDtypeStruct((B, Lr, V), jnp.float32),
                   jax.ShapeDtypeStruct((B, F), jnp.float32)),
        in_specs=[vmem] * len(args),
        out_specs=(vmem, vmem),
        cost_estimate=pl.CostEstimate(flops=flops, transcendentals=transcend,
                                      bytes_accessed=bytes_accessed),
    )(*args)


# ----------------------------- parameters ------------------------------------
def init_params(key, cfg):
    ks = iter(jax.random.split(key, 40))

    def w(shape, dtype=jnp.bfloat16, scale=0.02):
        # Matmul weights kept in bf16 (MXU native; f32 accumulate in-kernel).
        return (scale * jax.random.normal(next(ks), shape)).astype(dtype)

    H, F, MID, G = cfg.HIDDEN_SIZE, cfg.FLAT_OUT_SIZE, cfg.FLAT_MLP_SIZE, cfg.FLAT_GLIMPSES
    IMG = cfg.IMG_FEAT_SIZE
    p = {}
    p["bert_emb"] = w((TOKEN_VOCAB, BERT_DIM), jnp.float32)
    p["det_w"] = w((4, IMG))
    p["img_w"] = w((IMG, H))
    p["lstm_wih"] = w((BERT_DIM, 4 * H))
    p["lstm_whh"] = w((H, 4 * H))
    # AttFlat weights stacked [lang, img] -> fewer DMA descriptors per call.
    p["att_w1"] = w((2, H, MID))
    p["att_w2t"] = w((2, G, MID), jnp.float32)   # used on the VPU, keep f32
    p["att_wm"] = w((2, H * G, F))
    p["outfeat_w"] = w((BERT_DIM, F))
    p["outproj_w"] = w((H, VOCAB_SIZE))

    # ---- all small biases / LayerNorm params packed into one (1, K) f32 vector
    seg, total = _bias_segments(cfg)
    vals = {
        "lstm_b": w((4 * H,), jnp.float32),       # b_ih + b_hh combined
        "det_b": w((IMG,), jnp.float32),
        "img_b": w((H,), jnp.float32),
        "l_b1": w((MID,), jnp.float32), "l_b2": w((G,), jnp.float32),
        "l_bm": w((F,), jnp.float32),
        "i_b1": w((MID,), jnp.float32), "i_b2": w((G,), jnp.float32),
        "i_bm": w((F,), jnp.float32),
        "ln_g": jnp.ones((F,), jnp.float32), "ln_b": jnp.zeros((F,), jnp.float32),
        "outfeat_b": w((F,), jnp.float32),
        "outproj_b": w((VOCAB_SIZE,), jnp.float32),
    }
    pack = jnp.zeros((total,), jnp.float32)
    for name, (off, n) in seg.items():
        pack = pack.at[off:off + n].set(vals[name])
    p["bias_pack"] = pack.reshape(1, total)
    return p


# ----------------------------- Net.forward -----------------------------------
def net_forward(params, cfg, images, objects, segms, boxes, box_mask,
                qas, reasons, attention_qa_masks, attention_reason_masks):
    del images, objects, segms, box_mask, attention_qa_masks, attention_reason_masks
    # TODO(synk): dynamic `max_len = box_mask.sum(1).max()` crop needs dynamic shapes;
    # box_mask is all-ones here so the full object axis is used.
    B, _, Lq = qas.shape
    Lr = reasons.shape[2]
    tokens_tensor = qas.reshape(B, Lq)
    reasons_tensor = reasons.reshape(B, Lr)

    # TODO(synk): pretrained BertModel stubbed with a deterministic embedding lookup.
    # Language embeddings are gathered directly TIME-MAJOR & flattened (row = t*B + b)
    # so the fused kernel needs no transposes / middle-dim slicing.
    lang_raw_tm = jnp.take(params["bert_emb"],
                           tokens_tensor.T.reshape(Lq * B), axis=0)      # (Lq*B, 768)
    reason_raw = jnp.take(params["bert_emb"], reasons_tensor, axis=0)    # (B, Lr, 768)

    # Single fused pallas_call: LSTM + detector stub + img proj + masks + AttFlat x2
    # + LayerNorm + output head + LogSoftmax.  proj_feat is a second output of the
    # same call (so the fusion branch is executed, as in eager PyTorch), but with the
    # identity backbone2 stub it feeds nothing downstream.
    result, _proj_feat = fused_net(params, cfg, lang_raw_tm, reason_raw, boxes, B, Lq)
    return result, reasons_tensor


# ----------------------------- main -------------------------------------------
if __name__ == "__main__":
    cfg = Cfg()
    key = jax.random.PRNGKey(0)
    kp, ki = jax.random.split(key)
    params = init_params(kp, cfg)

    B, n_obj, Lq, Lr = 2, 8, 8, 8
    ks = jax.random.split(ki, 8)
    images = jax.random.normal(ks[0], (B, 3, 32, 32), jnp.float32)
    objects = jax.random.randint(ks[1], (B, n_obj), 0, 80)
    segms = jax.random.normal(ks[2], (B, n_obj, 14, 14), jnp.float32)
    boxes = jax.random.uniform(ks[3], (B, n_obj, 4), dtype=jnp.float32)
    box_mask = jnp.ones((B, n_obj), jnp.int32)
    qas = jax.random.randint(ks[4], (B, 1, Lq), 0, TOKEN_VOCAB)
    reasons = jax.random.randint(ks[5], (B, 1, Lr), 0, TOKEN_VOCAB)
    attention_qa_masks = jnp.ones((B, 1, Lq), jnp.int32)
    attention_reason_masks = jnp.ones((B, 1, Lr), jnp.int32)

    fwd = jax.jit(lambda p, *a: net_forward(p, cfg, *a))
    result, reasons_out = fwd(params, images, objects, segms, boxes, box_mask,
                              qas, reasons, attention_qa_masks,
                              attention_reason_masks)
    jax.block_until_ready((result, reasons_out))
    assert result.shape == (B, Lr, VOCAB_SIZE)
    assert reasons_out.shape == (B, Lr)
    print("KERNEL_OK")
</pallas_src>

<mosaic_0001>
module attributes {stable_mosaic.version = 11 : i64} {
  func.func @_net_kernel(%arg0: memref<16x768xf32, #tpu.memory_space<vmem>>, %arg1: memref<2x8x768xf32, #tpu.memory_space<vmem>>, %arg2: memref<2x8x4xf32, #tpu.memory_space<vmem>>, %arg3: memref<768x512xbf16, #tpu.memory_space<vmem>>, %arg4: memref<128x512xbf16, #tpu.memory_space<vmem>>, %arg5: memref<4x256xbf16, #tpu.memory_space<vmem>>, %arg6: memref<256x128xbf16, #tpu.memory_space<vmem>>, %arg7: memref<2x128x128xbf16, #tpu.memory_space<vmem>>, %arg8: memref<2x1x128xf32, #tpu.memory_space<vmem>>, %arg9: memref<2x128x128xbf16, #tpu.memory_space<vmem>>, %arg10: memref<768x128xbf16, #tpu.memory_space<vmem>>, %arg11: memref<128x512xbf16, #tpu.memory_space<vmem>>, %arg12: memref<1x2560xf32, #tpu.memory_space<vmem>>, %arg13: memref<2x8x512xf32, #tpu.memory_space<vmem>>, %arg14: memref<2x128xf32, #tpu.memory_space<vmem>>) attributes {dimension_semantics = [], scalar_prefetch = 0 : i64, scratch_operands = 0 : i64, tpu.core_type = #tpu.core_type<tc>} {
    %c0 = arith.constant 0 : index
    %c0_0 = arith.constant 0 : index
    %0 = vector.load %arg0[%c0, %c0_0] : memref<16x768xf32, #tpu.memory_space<vmem>>, vector<16x768xf32>
    %1 = arith.truncf %0 : vector<16x768xf32> to vector<16x768xbf16>
    %c0_1 = arith.constant 0 : index
    %c0_2 = arith.constant 0 : index
    %2 = vector.load %arg3[%c0_1, %c0_2] : memref<768x512xbf16, #tpu.memory_space<vmem>>, vector<768x512xbf16>
    %cst = arith.constant dense<0.000000e+00> : vector<16x512xf32>
    %3 = tpu.matmul %1, %2, %cst {dimension_numbers = #tpu.dot_dimension_numbers<[1], [0], [0], [1], [0, 0, 1, 1], [], []>} : vector<16x768xbf16>, vector<768x512xbf16>, vector<16x512xf32> -> vector<16x512xf32>
    %c0_3 = arith.constant 0 : index
    %c0_4 = arith.constant 0 : index
    %4 = vector.load %arg12[%c0_3, %c0_4] : memref<1x2560xf32, #tpu.memory_space<vmem>>, vector<1x512xf32>
    %5 = vector.broadcast %4 : vector<1x512xf32> to vector<16x512xf32>
    %6 = arith.addf %3, %5 : vector<16x512xf32>
    %c0_5 = arith.constant 0 : index
    %c0_6 = arith.constant 0 : index
    %7 = vector.load %arg4[%c0_5, %c0_6] : memref<128x512xbf16, #tpu.memory_space<vmem>>, vector<128x512xbf16>
    %cst_7 = arith.constant 0.000000e+00 : f32
    %8 = vector.broadcast %cst_7 : f32 to vector<2x128xf32>
    %cst_8 = arith.constant 0.000000e+00 : f32
    %9 = vector.broadcast %cst_8 : f32 to vector<2x128xf32>
    %10 = vector.extract_strided_slice %6 {offsets = [0, 0], sizes = [2, 512], strides = [1, 1]} : vector<16x512xf32> to vector<2x512xf32>
    %11 = arith.truncf %8 : vector<2x128xf32> to vector<2x128xbf16>
    %cst_9 = arith.constant dense<0.000000e+00> : vector<2x512xf32>
    %12 = tpu.matmul %11, %7, %cst_9 {dimension_numbers = #tpu.dot_dimension_numbers<[1], [0], [0], [1], [0, 0, 1, 1], [], []>} : vector<2x128xbf16>, vector<128x512xbf16>, vector<2x512xf32> -> vector<2x512xf32>
    %13 = arith.addf %10, %12 : vector<2x512xf32>
    %14 = vector.extract_strided_slice %13 {offsets = [0, 0], sizes = [2, 128], strides = [1, 1]} : vector<2x512xf32> to vector<2x128xf32>
    %15 = arith.negf %14 : vector<2x128xf32>
    %16 = math.exp %15 : vector<2x128xf32>
    %cst_10 = arith.constant 1.000000e+00 : f32
    %17 = vector.broadcast %cst_10 : f32 to vector<2x128xf32>
    %18 = arith.addf %17, %16 : vector<2x128xf32>
    %19 = arith.divf %17, %18 : vector<2x128xf32>
    %20 = vector.extract_strided_slice %13 {offsets = [0, 128], sizes = [2, 128], strides = [1, 1]} : vector<2x512xf32> to vector<2x128xf32>
    %21 = arith.negf %20 : vector<2x128xf32>
    %22 = math.exp %21 : vector<2x128xf32>
    %cst_11 = arith.constant 1.000000e+00 : f32
    %23 = vector.broadcast %cst_11 : f32 to vector<2x128xf32>
    %24 = arith.addf %23, %22 : vector<2x128xf32>
    %25 = arith.divf %23, %24 : vector<2x128xf32>
    %26 = vector.extract_strided_slice %13 {offsets = [0, 256], sizes = [2, 128], strides = [1, 1]} : vector<2x512xf32> to vector<2x128xf32>
    %27 = math.tanh %26 : vector<2x128xf32>
    %28 = vector.extract_strided_slice %13 {offsets = [0, 384], sizes = [2, 128], strides = [1, 1]} : vector<2x512xf32> to vector<2x128xf32>
    %29 = arith.negf %28 : vector<2x128xf32>
    %30 = math.exp %29 : vector<2x128xf32>
    %cst_12 = arith.constant 1.000000e+00 : f32
    %31 = vector.broadcast %cst_12 : f32 to vector<2x128xf32>
    %32 = arith.addf %31, %30 : vector<2x128xf32>
    %33 = arith.divf %31, %32 : vector<2x128xf32>
    %34 = arith.mulf %25, %9 : vector<2x128xf32>
    %35 = arith.mulf %19, %27 : vector<2x128xf32>
    %36 = arith.addf %34, %35 : vector<2x128xf32>
    %37 = math.tanh %36 : vector<2x128xf32>
    %38 = arith.mulf %33, %37 : vector<2x128xf32>
    %39 = vector.extract_strided_slice %6 {offsets = [2, 0], sizes = [2, 512], strides = [1, 1]} : vector<16x512xf32> to vector<2x512xf32>
    %40 = arith.truncf %38 : vector<2x128xf32> to vector<2x128xbf16>
    %cst_13 = arith.constant dense<0.000000e+00> : vector<2x512xf32>
    %41 = tpu.matmul %40, %7, %cst_13 {dimension_numbers = #tpu.dot_dimension_numbers<[1], [0], [0], [1], [0, 0, 1, 1], [], []>} : vector<2x128xbf16>, vector<128x512xbf16>, vector<2x512xf32> -> vector<2x512xf32>
    %42 = arith.addf %39, %41 : vector<2x512xf32>
    %43 = vector.extract_strided_slice %42 {offsets = [0, 0], sizes = [2, 128], strides = [1, 1]} : vector<2x512xf32> to vector<2x128xf32>
    %44 = arith.negf %43 : vector<2x128xf32>
    %45 = math.exp %44 : vector<2x128xf32>
    %cst_14 = arith.constant 1.000000e+00 : f32
    %46 = vector.broadcast %cst_14 : f32 to vector<2x128xf32>
    %47 = arith.addf %46, %45 : vector<2x128xf32>
    %48 = arith.divf %46, %47 : vector<2x128xf32>
    %49 = vector.extract_strided_slice %42 {offsets = [0, 128], sizes = [2, 128], strides = [1, 1]} : vector<2x512xf32> to vector<2x128xf32>
    %50 = arith.negf %49 : vector<2x128xf32>
    %51 = math.exp %50 : vector<2x128xf32>
    %cst_15 = arith.constant 1.000000e+00 : f32
    %52 = vector.broadcast %cst_15 : f32 to vector<2x128xf32>
    %53 = arith.addf %52, %51 : vector<2x128xf32>
    %54 = arith.divf %52, %53 : vector<2x128xf32>
    %55 = vector.extract_strided_slice %42 {offsets = [0, 256], sizes = [2, 128], strides = [1, 1]} : vector<2x512xf32> to vector<2x128xf32>
    %56 = math.tanh %55 : vector<2x128xf32>
    %57 = vector.extract_strided_slice %42 {offsets = [0, 384], sizes = [2, 128], strides = [1, 1]} : vector<2x512xf32> to vector<2x128xf32>
    %58 = arith.negf %57 : vector<2x128xf32>
    %59 = math.exp %58 : vector<2x128xf32>
    %cst_16 = arith.constant 1.000000e+00 : f32
    %60 = vector.broadcast %cst_16 : f32 to vector<2x128xf32>
    %61 = arith.addf %60, %59 : vector<2x128xf32>
    %62 = arith.divf %60, %61 : vector<2x128xf32>
    %63 = arith.mulf %54, %36 : vector<2x128xf32>
    %64 = arith.mulf %48, %56 : vector<2x128xf32>
    %65 = arith.addf %63, %64 : vector<2x128xf32>
    %66 = math.tanh %65 : vector<2x128xf32>
    %67 = arith.mulf %62, %66 : vector<2x128xf32>
    %68 = vector.extract_strided_slice %6 {offsets = [4, 0], sizes = [2, 512], strides = [1, 1]} : vector<16x512xf32> to vector<2x512xf32>
    %69 = arith.truncf %67 : vector<2x128xf32> to vector<2x128xbf16>
    %cst_17 = arith.constant dense<0.000000e+00> : vector<2x512xf32>
    %70 = tpu.matmul %69, %7, %cst_17 {dimension_numbers = #tpu.dot_dimension_numbers<[1], [0], [0], [1], [0, 0, 1, 1], [], []>} : vector<2x128xbf16>, vector<128x512xbf16>, vector<2x512xf32> -> vector<2x512xf32>
    %71 = arith.addf %68, %70 : vector<2x512xf32>
    %72 = vector.extract_strided_slice %71 {offsets = [0, 0], sizes = [2, 128], strides = [1, 1]} : vector<2x512xf32> to vector<2x128xf32>
    %73 = arith.negf %72 : vector<2x128xf32>
    %74 = math.exp %73 : vector<2x128xf32>
    %cst_18 = arith.constant 1.000000e+00 : f32
    %75 = vector.broadcast %cst_18 : f32 to vector<2x128xf32>
    %76 = arith.addf %75, %74 : vector<2x128xf32>
    %77 = arith.divf %75, %76 : vector<2x128xf32>
    %78 = vector.extract_strided_slice %71 {offsets = [0, 128], sizes = [2, 128], strides = [1, 1]} : vector<2x512xf32> to vector<2x128xf32>
    %79 = arith.negf %78 : vector<2x128xf32>
    %80 = math.exp %79 : vector<2x128xf32>
    %cst_19 = arith.constant 1.000000e+00 : f32
    %81 = vector.broadcast %cst_19 : f32 to vector<2x128xf32>
    %82 = arith.addf %81, %80 : vector<2x128xf32>
    %83 = arith.divf %81, %82 : vector<2x128xf32>
    %84 = vector.extract_strided_slice %71 {offsets = [0, 256], sizes = [2, 128], strides = [1, 1]} : vector<2x512xf32> to vector<2x128xf32>
    %85 = math.tanh %84 : vector<2x128xf32>
    %86 = vector.extract_strided_slice %71 {offsets = [0, 384], sizes = [2, 128], strides = [1, 1]} : vector<2x512xf32> to vector<2x128xf32>
    %87 = arith.negf %86 : vector<2x128xf32>
    %88 = math.exp %87 : vector<2x128xf32>
    %cst_20 = arith.constant 1.000000e+00 : f32
    %89 = vector.broadcast %cst_20 : f32 to vector<2x128xf32>
    %90 = arith.addf %89, %88 : vector<2x128xf32>
    %91 = arith.divf %89, %90 : vector<2x128xf32>
    %92 = arith.mulf %83, %65 : vector<2x128xf32>
    %93 = arith.mulf %77, %85 : vector<2x128xf32>
    %94 = arith.addf %92, %93 : vector<2x128xf32>
    %95 = math.tanh %94 : vector<2x128xf32>
    %96 = arith.mulf %91, %95 : vector<2x128xf32>
    %97 = vector.extract_strided_slice %6 {offsets = [6, 0], sizes = [2, 512], strides = [1, 1]} : vector<16x512xf32> to vector<2x512xf32>
    %98 = arith.truncf %96 : vector<2x128xf32> to vector<2x128xbf16>
    %cst_21 = arith.constant dense<0.000000e+00> : vector<2x512xf32>
    %99 = tpu.matmul %98, %7, %cst_21 {dimension_numbers = #tpu.dot_dimension_numbers<[1], [0], [0], [1], [0, 0, 1, 1], [], []>} : vector<2x128xbf16>, vector<128x512xbf16>, vector<2x512xf32> -> vector<2x512xf32>
    %100 = arith.addf %97, %99 : vector<2x512xf32>
    %101 = vector.extract_strided_slice %100 {offsets = [0, 0], sizes = [2, 128], strides = [1, 1]} : vector<2x512xf32> to vector<2x128xf32>
    %102 = arith.negf %101 : vector<2x128xf32>
    %103 = math.exp %102 : vector<2x128xf32>
    %cst_22 = arith.constant 1.000000e+00 : f32
    %104 = vector.broadcast %cst_22 : f32 to vector<2x128xf32>
    %105 = arith.addf %104, %103 : vector<2x128xf32>
    %106 = arith.divf %104, %105 : vector<2x128xf32>
    %107 = vector.extract_strided_slice %100 {offsets = [0, 128], sizes = [2, 128], strides = [1, 1]} : vector<2x512xf32> to vector<2x128xf32>
    %108 = arith.negf %107 : vector<2x128xf32>
    %109 = math.exp %108 : vector<2x128xf32>
    %cst_23 = arith.constant 1.000000e+00 : f32
    %110 = vector.broadcast %cst_23 : f32 to vector<2x128xf32>
    %111 = arith.addf %110, %109 : vector<2x128xf32>
    %112 = arith.divf %110, %111 : vector<2x128xf32>
    %113 = vector.extract_strided_slice %100 {offsets = [0, 256], sizes = [2, 128], strides = [1, 1]} : vector<2x512xf32> to vector<2x128xf32>
    %114 = math.tanh %113 : vector<2x128xf32>
    %115 = vector.extract_strided_slice %100 {offsets = [0, 384], sizes = [2, 128], strides = [1, 1]} : vector<2x512xf32> to vector<2x128xf32>
    %116 = arith.negf %115 : vector<2x128xf32>
    %117 = math.exp %116 : vector<2x128xf32>
    %cst_24 = arith.constant 1.000000e+00 : f32
    %118 = vector.broadcast %cst_24 : f32 to vector<2x128xf32>
    %119 = arith.addf %118, %117 : vector<2x128xf32>
    %120 = arith.divf %118, %119 : vector<2x128xf32>
    %121 = arith.mulf %112, %94 : vector<2x128xf32>
    %122 = arith.mulf %106, %114 : vector<2x128xf32>
    %123 = arith.addf %121, %122 : vector<2x128xf32>
    %124 = math.tanh %123 : vector<2x128xf32>
    %125 = arith.mulf %120, %124 : vector<2x128xf32>
    %126 = vector.extract_strided_slice %6 {offsets = [8, 0], sizes = [2, 512], strides = [1, 1]} : vector<16x512xf32> to vector<2x512xf32>
    %127 = arith.truncf %125 : vector<2x128xf32> to vector<2x128xbf16>
    %cst_25 = arith.constant dense<0.000000e+00> : vector<2x512xf32>
    %128 = tpu.matmul %127, %7, %cst_25 {dimension_numbers = #tpu.dot_dimension_numbers<[1], [0], [0], [1], [0, 0, 1, 1], [], []>} : vector<2x128xbf16>, vector<128x512xbf16>, vector<2x512xf32> -> vector<2x512xf32>
    %129 = arith.addf %126, %128 : vector<2x512xf32>
    %130 = vector.extract_strided_slice %129 {offsets = [0, 0], sizes = [2, 128], strides = [1, 1]} : vector<2x512xf32> to vector<2x128xf32>
    %131 = arith.negf %130 : vector<2x128xf32>
    %132 = math.exp %131 : vector<2x128xf32>
    %cst_26 = arith.constant 1.000000e+00 : f32
    %133 = vector.broadcast %cst_26 : f32 to vector<2x128xf32>
    %134 = arith.addf %133, %132 : vector<2x128xf32>
    %135 = arith.divf %133, %134 : vector<2x128xf32>
    %136 = vector.extract_strided_slice %129 {offsets = [0, 128], sizes = [2, 128], strides = [1, 1]} : vector<2x512xf32> to vector<2x128xf32>
    %137 = arith.negf %136 : vector<2x128xf32>
    %138 = math.exp %137 : vector<2x128xf32>
    %cst_27 = arith.constant 1.000000e+00 : f32
    %139 = vector.broadcast %cst_27 : f32 to vector<2x128xf32>
    %140 = arith.addf %139, %138 : vector<2x128xf32>
    %141 = arith.divf %139, %140 : vector<2x128xf32>
    %142 = vector.extract_strided_slice %129 {offsets = [0, 256], sizes = [2, 128], strides = [1, 1]} : vector<2x512xf32> to vector<2x128xf32>
    %143 = math.tanh %142 : vector<2x128xf32>
    %144 = vector.extract_strided_slice %129 {offsets = [0, 384], sizes = [2, 128], strides = [1, 1]} : vector<2x512xf32> to vector<2x128xf32>
    %145 = arith.negf %144 : vector<2x128xf32>
    %146 = math.exp %145 : vector<2x128xf32>
    %cst_28 = arith.constant 1.000000e+00 : f32
    %147 = vector.broadcast %cst_28 : f32 to vector<2x128xf32>
    %148 = arith.addf %147, %146 : vector<2x128xf32>
    %149 = arith.divf %147, %148 : vector<2x128xf32>
    %150 = arith.mulf %141, %123 : vector<2x128xf32>
    %151 = arith.mulf %135, %143 : vector<2x128xf32>
    %152 = arith.addf %150, %151 : vector<2x128xf32>
    %153 = math.tanh %152 : vector<2x128xf32>
    %154 = arith.mulf %149, %153 : vector<2x128xf32>
    %155 = vector.extract_strided_slice %6 {offsets = [10, 0], sizes = [2, 512], strides = [1, 1]} : vector<16x512xf32> to vector<2x512xf32>
    %156 = arith.truncf %154 : vector<2x128xf32> to vector<2x128xbf16>
    %cst_29 = arith.constant dense<0.000000e+00> : vector<2x512xf32>
    %157 = tpu.matmul %156, %7, %cst_29 {dimension_numbers = #tpu.dot_dimension_numbers<[1], [0], [0], [1], [0, 0, 1, 1], [], []>} : vector<2x128xbf16>, vector<128x512xbf16>, vector<2x512xf32> -> vector<2x512xf32>
    %158 = arith.addf %155, %157 : vector<2x512xf32>
    %159 = vector.extract_strided_slice %158 {offsets = [0, 0], sizes = [2, 128], strides = [1, 1]} : vector<2x512xf32> to vector<2x128xf32>
    %160 = arith.negf %159 : vector<2x128xf32>
    %161 = math.exp %160 : vector<2x128xf32>
    %cst_30 = arith.constant 1.000000e+00 : f32
    %162 = vector.broadcast %cst_30 : f32 to vector<2x128xf32>
    %163 = arith.addf %162, %161 : vector<2x128xf32>
    %164 = arith.divf %162, %163 : vector<2x128xf32>
    %165 = vector.extract_strided_slice %158 {offsets = [0, 128], sizes = [2, 128], strides = [1, 1]} : vector<2x512xf32> to vector<2x128xf32>
    %166 = arith.negf %165 : vector<2x128xf32>
    %167 = math.exp %166 : vector<2x128xf32>
    %cst_31 = arith.constant 1.000000e+00 : f32
    %168 = vector.broadcast %cst_31 : f32 to vector<2x128xf32>
    %169 = arith.addf %168, %167 : vector<2x128xf32>
    %170 = arith.divf %168, %169 : vector<2x128xf32>
    %171 = vector.extract_strided_slice %158 {offsets = [0, 256], sizes = [2, 128], strides = [1, 1]} : vector<2x512xf32> to vector<2x128xf32>
    %172 = math.tanh %171 : vector<2x128xf32>
    %173 = vector.extract_strided_slice %158 {offsets = [0, 384], sizes = [2, 128], strides = [1, 1]} : vector<2x512xf32> to vector<2x128xf32>
    %174 = arith.negf %173 : vector<2x128xf32>
    %175 = math.exp %174 : vector<2x128xf32>
    %cst_32 = arith.constant 1.000000e+00 : f32
    %176 = vector.broadcast %cst_32 : f32 to vector<2x128xf32>
    %177 = arith.addf %176, %175 : vector<2x128xf32>
    %178 = arith.divf %176, %177 : vector<2x128xf32>
    %179 = arith.mulf %170, %152 : vector<2x128xf32>
    %180 = arith.mulf %164, %172 : vector<2x128xf32>
    %181 = arith.addf %179, %180 : vector<2x128xf32>
    %182 = math.tanh %181 : vector<2x128xf32>
    %183 = arith.mulf %178, %182 : vector<2x128xf32>
    %184 = vector.extract_strided_slice %6 {offsets = [12, 0], sizes = [2, 512], strides = [1, 1]} : vector<16x512xf32> to vector<2x512xf32>
    %185 = arith.truncf %183 : vector<2x128xf32> to vector<2x128xbf16>
    %cst_33 = arith.constant dense<0.000000e+00> : vector<2x512xf32>
    %186 = tpu.matmul %185, %7, %cst_33 {dimension_numbers = #tpu.dot_dimension_numbers<[1], [0], [0], [1], [0, 0, 1, 1], [], []>} : vector<2x128xbf16>, vector<128x512xbf16>, vector<2x512xf32> -> vector<2x512xf32>
    %187 = arith.addf %184, %186 : vector<2x512xf32>
    %188 = vector.extract_strided_slice %187 {offsets = [0, 0], sizes = [2, 128], strides = [1, 1]} : vector<2x512xf32> to vector<2x128xf32>
    %189 = arith.negf %188 : vector<2x128xf32>
    %190 = math.exp %189 : vector<2x128xf32>
    %cst_34 = arith.constant 1.000000e+00 : f32
    %191 = vector.broadcast %cst_34 : f32 to vector<2x128xf32>
    %192 = arith.addf %191, %190 : vector<2x128xf32>
    %193 = arith.divf %191, %192 : vector<2x128xf32>
    %194 = vector.extract_strided_slice %187 {offsets = [0, 128], sizes = [2, 128], strides = [1, 1]} : vector<2x512xf32> to vector<2x128xf32>
    %195 = arith.negf %194 : vector<2x128xf32>
    %196 = math.exp %195 : vector<2x128xf32>
    %cst_35 = arith.constant 1.000000e+00 : f32
    %197 = vector.broadcast %cst_35 : f32 to vector<2x128xf32>
    %198 = arith.addf %197, %196 : vector<2x128xf32>
    %199 = arith.divf %197, %198 : vector<2x128xf32>
    %200 = vector.extract_strided_slice %187 {offsets = [0, 256], sizes = [2, 128], strides = [1, 1]} : vector<2x512xf32> to vector<2x128xf32>
    %201 = math.tanh %200 : vector<2x128xf32>
    %202 = vector.extract_strided_slice %187 {offsets = [0, 384], sizes = [2, 128], strides = [1, 1]} : vector<2x512xf32> to vector<2x128xf32>
    %203 = arith.negf %202 : vector<2x128xf32>
    %204 = math.exp %203 : vector<2x128xf32>
    %cst_36 = arith.constant 1.000000e+00 : f32
    %205 = vector.broadcast %cst_36 : f32 to vector<2x128xf32>
    %206 = arith.addf %205, %204 : vector<2x128xf32>
    %207 = arith.divf %205, %206 : vector<2x128xf32>
    %208 = arith.mulf %199, %181 : vector<2x128xf32>
    %209 = arith.mulf %193, %201 : vector<2x128xf32>
    %210 = arith.addf %208, %209 : vector<2x128xf32>
    %211 = math.tanh %210 : vector<2x128xf32>
    %212 = arith.mulf %207, %211 : vector<2x128xf32>
    %213 = vector.extract_strided_slice %6 {offsets = [14, 0], sizes = [2, 512], strides = [1, 1]} : vector<16x512xf32> to vector<2x512xf32>
    %214 = arith.truncf %212 : vector<2x128xf32> to vector<2x128xbf16>
    %cst_37 = arith.constant dense<0.000000e+00> : vector<2x512xf32>
    %215 = tpu.matmul %214, %7, %cst_37 {dimension_numbers = #tpu.dot_dimension_numbers<[1], [0], [0], [1], [0, 0, 1, 1], [], []>} : vector<2x128xbf16>, vector<128x512xbf16>, vector<2x512xf32> -> vector<2x512xf32>
    %216 = arith.addf %213, %215 : vector<2x512xf32>
    %217 = vector.extract_strided_slice %216 {offsets = [0, 0], sizes = [2, 128], strides = [1, 1]} : vector<2x512xf32> to vector<2x128xf32>
    %218 = arith.negf %217 : vector<2x128xf32>
    %219 = math.exp %218 : vector<2x128xf32>
    %cst_38 = arith.constant 1.000000e+00 : f32
    %220 = vector.broadcast %cst_38 : f32 to vector<2x128xf32>
    %221 = arith.addf %220, %219 : vector<2x128xf32>
    %222 = arith.divf %220, %221 : vector<2x128xf32>
    %223 = vector.extract_strided_slice %216 {offsets = [0, 128], sizes = [2, 128], strides = [1, 1]} : vector<2x512xf32> to vector<2x128xf32>
    %224 = arith.negf %223 : vector<2x128xf32>
    %225 = math.exp %224 : vector<2x128xf32>
    %cst_39 = arith.constant 1.000000e+00 : f32
    %226 = vector.broadcast %cst_39 : f32 to vector<2x128xf32>
    %227 = arith.addf %226, %225 : vector<2x128xf32>
    %228 = arith.divf %226, %227 : vector<2x128xf32>
    %229 = vector.extract_strided_slice %216 {offsets = [0, 256], sizes = [2, 128], strides = [1, 1]} : vector<2x512xf32> to vector<2x128xf32>
    %230 = math.tanh %229 : vector<2x128xf32>
    %231 = vector.extract_strided_slice %216 {offsets = [0, 384], sizes = [2, 128], strides = [1, 1]} : vector<2x512xf32> to vector<2x128xf32>
    %232 = arith.negf %231 : vector<2x128xf32>
    %233 = math.exp %232 : vector<2x128xf32>
    %cst_40 = arith.constant 1.000000e+00 : f32
    %234 = vector.broadcast %cst_40 : f32 to vector<2x128xf32>
    %235 = arith.addf %234, %233 : vector<2x128xf32>
    %236 = arith.divf %234, %235 : vector<2x128xf32>
    %237 = arith.mulf %228, %210 : vector<2x128xf32>
    %238 = arith.mulf %222, %230 : vector<2x128xf32>
    %239 = arith.addf %237, %238 : vector<2x128xf32>
    %240 = math.tanh %239 : vector<2x128xf32>
    %241 = arith.mulf %236, %240 : vector<2x128xf32>
    %242 = tpu.concatenate %38, %67, %96, %125, %154, %183, %212, %241 in 0 : vector<2x128xf32>, vector<2x128xf32>, vector<2x128xf32>, vector<2x128xf32>, vector<2x128xf32>, vector<2x128xf32>, vector<2x128xf32>, vector<2x128xf32> -> vector<16x128xf32>
    %243 = math.absf %0 : vector<16x768xf32>
    %cst_41 = arith.constant dense<0.000000e+00> : vector<16xf32>
    %244 = vector.multi_reduction <add>, %243, %cst_41 [1] : vector<16x768xf32> to vector<16xf32>
    %245 = vector.shape_cast %244 : vector<16xf32> to vector<16x1xf32>
    %c0_42 = arith.constant 0 : index
    %c0_43 = arith.constant 0 : index
    %c0_44 = arith.constant 0 : index
    %246 = vector.load %arg2[%c0_42, %c0_43, %c0_44] : memref<2x8x4xf32, #tpu.memory_space<vmem>>, vector<2x8x4xf32>
    %247 = vector.shape_cast %246 : vector<2x8x4xf32> to vector<16x4xf32>
    %248 = arith.truncf %247 : vector<16x4xf32> to vector<16x4xbf16>
    %c0_45 = arith.constant 0 : index
    %c0_46 = arith.constant 0 : index
    %249 = vector.load %arg5[%c0_45, %c0_46] : memref<4x256xbf16, #tpu.memory_space<vmem>>, vector<4x256xbf16>
    %cst_47 = arith.constant dense<0.000000e+00> : vector<16x256xf32>
    %250 = tpu.matmul %248, %249, %cst_47 {dimension_numbers = #tpu.dot_dimension_numbers<[1], [0], [0], [1], [0, 0, 1, 1], [], []>} : vector<16x4xbf16>, vector<4x256xbf16>, vector<16x256xf32> -> vector<16x256xf32>
    %c0_48 = arith.constant 0 : index
    %c512 = arith.constant 512 : index
    %251 = vector.load %arg12[%c0_48, %c512] : memref<1x2560xf32, #tpu.memory_space<vmem>>, vector<1x256xf32>
    %252 = vector.broadcast %251 : vector<1x256xf32> to vector<16x256xf32>
    %253 = arith.addf %250, %252 : vector<16x256xf32>
    %254 = arith.truncf %253 : vector<16x256xf32> to vector<16x256xbf16>
    %c0_49 = arith.constant 0 : index
    %c0_50 = arith.constant 0 : index
    %255 = vector.load %arg6[%c0_49, %c0_50] : memref<256x128xbf16, #tpu.memory_space<vmem>>, vector<256x128xbf16>
    %cst_51 = arith.constant dense<0.000000e+00> : vector<16x128xf32>
    %256 = tpu.matmul %254, %255, %cst_51 {dimension_numbers = #tpu.dot_dimension_numbers<[1], [0], [0], [1], [0, 0, 1, 1], [], []>} : vector<16x256xbf16>, vector<256x128xbf16>, vector<16x128xf32> -> vector<16x128xf32>
    %c0_52 = arith.constant 0 : index
    %c768 = arith.constant 768 : index
    %257 = vector.load %arg12[%c0_52, %c768] : memref<1x2560xf32, #tpu.memory_space<vmem>>, vector<1x128xf32>
    %258 = vector.broadcast %257 : vector<1x128xf32> to vector<16x128xf32>
    %259 = arith.addf %256, %258 : vector<16x128xf32>
    %260 = vector.shape_cast %259 : vector<16x128xf32> to vector<2x8x128xf32>
    %261 = math.absf %253 : vector<16x256xf32>
    %cst_53 = arith.constant dense<0.000000e+00> : vector<16xf32>
    %262 = vector.multi_reduction <add>, %261, %cst_53 [1] : vector<16x256xf32> to vector<16xf32>
    %263 = vector.shape_cast %262 : vector<16xf32> to vector<16x1xf32>
    %c0_54 = arith.constant 0 : index
    %c0_55 = arith.constant 0 : index
    %c0_56 = arith.constant 0 : index
    %264 = vector.load %arg7[%c0_54, %c0_55, %c0_56] : memref<2x128x128xbf16, #tpu.memory_space<vmem>>, vector<1x128x128xbf16>
    %265 = vector.shape_cast %264 : vector<1x128x128xbf16> to vector<128x128xbf16>
    %c0_57 = arith.constant 0 : index
    %c896 = arith.constant 896 : index
    %266 = vector.load %arg12[%c0_57, %c896] : memref<1x2560xf32, #tpu.memory_space<vmem>>, vector<1x128xf32>
    %c0_58 = arith.constant 0 : index
    %c0_59 = arith.constant 0 : index
    %c0_60 = arith.constant 0 : index
    %267 = vector.load %arg8[%c0_58, %c0_59, %c0_60] : memref<2x1x128xf32, #tpu.memory_space<vmem>>, vector<1x1x128xf32>
    %268 = vector.shape_cast %267 : vector<1x1x128xf32> to vector<1x128xf32>
    %c0_61 = arith.constant 0 : index
    %c1024 = arith.constant 1024 : index
    %269 = vector.load %arg12[%c0_61, %c1024] : memref<1x2560xf32, #tpu.memory_space<vmem>>, vector<1x1xf32>
    %270 = arith.truncf %242 : vector<16x128xf32> to vector<16x128xbf16>
    %cst_62 = arith.constant dense<0.000000e+00> : vector<16x128xf32>
    %271 = tpu.matmul %270, %265, %cst_62 {dimension_numbers = #tpu.dot_dimension_numbers<[1], [0], [0], [1], [0, 0, 1, 1], [], []>} : vector<16x128xbf16>, vector<128x128xbf16>, vector<16x128xf32> -> vector<16x128xf32>
    %272 = vector.broadcast %266 : vector<1x128xf32> to vector<16x128xf32>
    %273 = arith.addf %271, %272 : vector<16x128xf32>
    %cst_63 = arith.constant 0.000000e+00 : f32
    %274 = vector.broadcast %cst_63 : f32 to vector<16x128xf32>
    %275 = arith.maximumf %273, %274 : vector<16x128xf32>
    %276 = vector.broadcast %268 : vector<1x128xf32> to vector<16x128xf32>
    %277 = arith.mulf %275, %276 : vector<16x128xf32>
    %cst_64 = arith.constant dense<0.000000e+00> : vector<16xf32>
    %278 = vector.multi_reduction <add>, %277, %cst_64 [1] : vector<16x128xf32> to vector<16xf32>
    %279 = vector.shape_cast %278 : vector<16xf32> to vector<16x1xf32>
    %280 = vector.broadcast %269 : vector<1x1xf32> to vector<16x1xf32>
    %281 = arith.addf %279, %280 : vector<16x1xf32>
    %cst_65 = arith.constant 0.000000e+00 : f32
    %282 = vector.broadcast %cst_65 : f32 to vector<16x1xf32>
    %283 = arith.cmpf oeq, %245, %282 : vector<16x1xf32>
    %cst_66 = arith.constant -1.000000e+09 : f32
    %284 = vector.broadcast %cst_66 : f32 to vector<16x1xf32>
    %285 = arith.select %283, %284, %281 : vector<16x1xi1>, vector<16x1xf32>
    %286 = vector.extract_strided_slice %285 {offsets = [0, 0], sizes = [2, 1], strides = [1, 1]} : vector<16x1xf32> to vector<2x1xf32>
    %287 = vector.extract_strided_slice %285 {offsets = [2, 0], sizes = [2, 1], strides = [1, 1]} : vector<16x1xf32> to vector<2x1xf32>
    %288 = vector.extract_strided_slice %285 {offsets = [4, 0], sizes = [2, 1], strides = [1, 1]} : vector<16x1xf32> to vector<2x1xf32>
    %289 = vector.extract_strided_slice %285 {offsets = [6, 0], sizes = [2, 1], strides = [1, 1]} : vector<16x1xf32> to vector<2x1xf32>
    %290 = vector.extract_strided_slice %285 {offsets = [8, 0], sizes = [2, 1], strides = [1, 1]} : vector<16x1xf32> to vector<2x1xf32>
    %291 = vector.extract_strided_slice %285 {offsets = [10, 0], sizes = [2, 1], strides = [1, 1]} : vector<16x1xf32> to vector<2x1xf32>
    %292 = vector.extract_strided_slice %285 {offsets = [12, 0], sizes = [2, 1], strides = [1, 1]} : vector<16x1xf32> to vector<2x1xf32>
    %293 = vector.extract_strided_slice %285 {offsets = [14, 0], sizes = [2, 1], strides = [1, 1]} : vector<16x1xf32> to vector<2x1xf32>
    %294 = arith.maximumf %286, %287 : vector<2x1xf32>
    %295 = arith.maximumf %294, %288 : vector<2x1xf32>
    %296 = arith.maximumf %295, %289 : vector<2x1xf32>
    %297 = arith.maximumf %296, %290 : vector<2x1xf32>
    %298 = arith.maximumf %297, %291 : vector<2x1xf32>
    %299 = arith.maximumf %298, %292 : vector<2x1xf32>
    %300 = arith.maximumf %299, %293 : vector<2x1xf32>
    %301 = arith.subf %286, %300 : vector<2x1xf32>
    %302 = math.exp %301 : vector<2x1xf32>
    %303 = arith.subf %287, %300 : vector<2x1xf32>
    %304 = math.exp %303 : vector<2x1xf32>
    %305 = arith.subf %288, %300 : vector<2x1xf32>
    %306 = math.exp %305 : vector<2x1xf32>
    %307 = arith.subf %289, %300 : vector<2x1xf32>
    %308 = math.exp %307 : vector<2x1xf32>
    %309 = arith.subf %290, %300 : vector<2x1xf32>
    %310 = math.exp %309 : vector<2x1xf32>
    %311 = arith.subf %291, %300 : vector<2x1xf32>
    %312 = math.exp %311 : vector<2x1xf32>
    %313 = arith.subf %292, %300 : vector<2x1xf32>
    %314 = math.exp %313 : vector<2x1xf32>
    %315 = arith.subf %293, %300 : vector<2x1xf32>
    %316 = math.exp %315 : vector<2x1xf32>
    %317 = arith.addf %302, %304 : vector<2x1xf32>
    %318 = arith.addf %317, %306 : vector<2x1xf32>
    %319 = arith.addf %318, %308 : vector<2x1xf32>
    %320 = arith.addf %319, %310 : vector<2x1xf32>
    %321 = arith.addf %320, %312 : vector<2x1xf32>
    %322 = arith.addf %321, %314 : vector<2x1xf32>
    %323 = arith.addf %322, %316 : vector<2x1xf32>
    %324 = tpu.reciprocal %323 {approx = true} : vector<2x1xf32> -> vector<2x1xf32>
    %325 = arith.mulf %302, %324 : vector<2x1xf32>
    %326 = vector.broadcast %325 : vector<2x1xf32> to vector<2x128xf32>
    %327 = arith.mulf %326, %38 : vector<2x128xf32>
    %328 = arith.mulf %304, %324 : vector<2x1xf32>
    %329 = vector.broadcast %328 : vector<2x1xf32> to vector<2x128xf32>
    %330 = arith.mulf %329, %67 : vector<2x128xf32>
    %331 = arith.addf %327, %330 : vector<2x128xf32>
    %332 = arith.mulf %306, %324 : vector<2x1xf32>
    %333 = vector.broadcast %332 : vector<2x1xf32> to vector<2x128xf32>
    %334 = arith.mulf %333, %96 : vector<2x128xf32>
    %335 = arith.addf %331, %334 : vector<2x128xf32>
    %336 = arith.mulf %308, %324 : vector<2x1xf32>
    %337 = vector.broadcast %336 : vector<2x1xf32> to vector<2x128xf32>
    %338 = arith.mulf %337, %125 : vector<2x128xf32>
    %339 = arith.addf %335, %338 : vector<2x128xf32>
    %340 = arith.mulf %310, %324 : vector<2x1xf32>
    %341 = vector.broadcast %340 : vector<2x1xf32> to vector<2x128xf32>
    %342 = arith.mulf %341, %154 : vector<2x128xf32>
    %343 = arith.addf %339, %342 : vector<2x128xf32>
    %344 = arith.mulf %312, %324 : vector<2x1xf32>
    %345 = vector.broadcast %344 : vector<2x1xf32> to vector<2x128xf32>
    %346 = arith.mulf %345, %183 : vector<2x128xf32>
    %347 = arith.addf %343, %346 : vector<2x128xf32>
    %348 = arith.mulf %314, %324 : vector<2x1xf32>
    %349 = vector.broadcast %348 : vector<2x1xf32> to vector<2x128xf32>
    %350 = arith.mulf %349, %212 : vector<2x128xf32>
    %351 = arith.addf %347, %350 : vector<2x128xf32>
    %352 = arith.mulf %316, %324 : vector<2x1xf32>
    %353 = vector.broadcast %352 : vector<2x1xf32> to vector<2x128xf32>
    %354 = arith.mulf %353, %241 : vector<2x128xf32>
    %355 = arith.addf %351, %354 : vector<2x128xf32>
    %356 = arith.truncf %355 : vector<2x128xf32> to vector<2x128xbf16>
    %c0_67 = arith.constant 0 : index
    %c0_68 = arith.constant 0 : index
    %c0_69 = arith.constant 0 : index
    %357 = vector.load %arg9[%c0_67, %c0_68, %c0_69] : memref<2x128x128xbf16, #tpu.memory_space<vmem>>, vector<1x128x128xbf16>
    %358 = vector.shape_cast %357 : vector<1x128x128xbf16> to vector<128x128xbf16>
    %cst_70 = arith.constant dense<0.000000e+00> : vector<2x128xf32>
    %359 = tpu.matmul %356, %358, %cst_70 {dimension_numbers = #tpu.dot_dimension_numbers<[1], [0], [0], [1], [0, 0, 1, 1], [], []>} : vector<2x128xbf16>, vector<128x128xbf16>, vector<2x128xf32> -> vector<2x128xf32>
    %c0_71 = arith.constant 0 : index
    %c1152 = arith.constant 1152 : index
    %360 = vector.load %arg12[%c0_71, %c1152] : memref<1x2560xf32, #tpu.memory_space<vmem>>, vector<1x128xf32>
    %361 = vector.broadcast %360 : vector<1x128xf32> to vector<2x128xf32>
    %362 = arith.addf %359, %361 : vector<2x128xf32>
    %c1 = arith.constant 1 : index
    %c0_72 = arith.constant 0 : index
    %c0_73 = arith.constant 0 : index
    %363 = vector.load %arg7[%c1, %c0_72, %c0_73] : memref<2x128x128xbf16, #tpu.memory_space<vmem>>, vector<1x128x128xbf16>
    %364 = vector.shape_cast %363 : vector<1x128x128xbf16> to vector<128x128xbf16>
    %c0_74 = arith.constant 0 : index
    %c1280 = arith.constant 1280 : index
    %365 = vector.load %arg12[%c0_74, %c1280] : memref<1x2560xf32, #tpu.memory_space<vmem>>, vector<1x128xf32>
    %c1_75 = arith.constant 1 : index
    %c0_76 = arith.constant 0 : index
    %c0_77 = arith.constant 0 : index
    %366 = vector.load %arg8[%c1_75, %c0_76, %c0_77] : memref<2x1x128xf32, #tpu.memory_space<vmem>>, vector<1x1x128xf32>
    %367 = vector.shape_cast %366 : vector<1x1x128xf32> to vector<1x128xf32>
    %c0_78 = arith.constant 0 : index
    %c1408 = arith.constant 1408 : index
    %368 = vector.load %arg12[%c0_78, %c1408] : memref<1x2560xf32, #tpu.memory_space<vmem>>, vector<1x1xf32>
    %369 = arith.truncf %259 : vector<16x128xf32> to vector<16x128xbf16>
    %cst_79 = arith.constant dense<0.000000e+00> : vector<16x128xf32>
    %370 = tpu.matmul %369, %364, %cst_79 {dimension_numbers = #tpu.dot_dimension_numbers<[1], [0], [0], [1], [0, 0, 1, 1], [], []>} : vector<16x128xbf16>, vector<128x128xbf16>, vector<16x128xf32> -> vector<16x128xf32>
    %371 = vector.broadcast %365 : vector<1x128xf32> to vector<16x128xf32>
    %372 = arith.addf %370, %371 : vector<16x128xf32>
    %cst_80 = arith.constant 0.000000e+00 : f32
    %373 = vector.broadcast %cst_80 : f32 to vector<16x128xf32>
    %374 = arith.maximumf %372, %373 : vector<16x128xf32>
    %375 = vector.broadcast %367 : vector<1x128xf32> to vector<16x128xf32>
    %376 = arith.mulf %374, %375 : vector<16x128xf32>
    %cst_81 = arith.constant dense<0.000000e+00> : vector<16xf32>
    %377 = vector.multi_reduction <add>, %376, %cst_81 [1] : vector<16x128xf32> to vector<16xf32>
    %378 = vector.shape_cast %377 : vector<16xf32> to vector<16x1xf32>
    %379 = vector.broadcast %368 : vector<1x1xf32> to vector<16x1xf32>
    %380 = arith.addf %378, %379 : vector<16x1xf32>
    %cst_82 = arith.constant 0.000000e+00 : f32
    %381 = vector.broadcast %cst_82 : f32 to vector<16x1xf32>
    %382 = arith.cmpf oeq, %263, %381 : vector<16x1xf32>
    %cst_83 = arith.constant -1.000000e+09 : f32
    %383 = vector.broadcast %cst_83 : f32 to vector<16x1xf32>
    %384 = arith.select %382, %383, %380 : vector<16x1xi1>, vector<16x1xf32>
    %385 = vector.shape_cast %384 : vector<16x1xf32> to vector<2x8x1xf32>
    %cst_84 = arith.constant dense<0xFF800000> : vector<2x1xf32>
    %386 = vector.multi_reduction <maximumf>, %385, %cst_84 [1] : vector<2x8x1xf32> to vector<2x1xf32>
    %387 = vector.shape_cast %386 : vector<2x1xf32> to vector<2x1x1xf32>
    %388 = vector.broadcast %387 : vector<2x1x1xf32> to vector<2x8x1xf32>
    %389 = arith.subf %385, %388 : vector<2x8x1xf32>
    %390 = math.exp %389 : vector<2x8x1xf32>
    %cst_85 = arith.constant dense<0.000000e+00> : vector<2x1xf32>
    %391 = vector.multi_reduction <add>, %390, %cst_85 [1] : vector<2x8x1xf32> to vector<2x1xf32>
    %392 = vector.shape_cast %391 : vector<2x1xf32> to vector<2x1x1xf32>
    %393 = tpu.reciprocal %392 {approx = true} : vector<2x1x1xf32> -> vector<2x1x1xf32>
    %394 = vector.broadcast %393 : vector<2x1x1xf32> to vector<2x8x1xf32>
    %395 = arith.mulf %390, %394 : vector<2x8x1xf32>
    %396 = vector.broadcast %395 : vector<2x8x1xf32> to vector<2x8x128xf32>
    %397 = arith.mulf %396, %260 : vector<2x8x128xf32>
    %cst_86 = arith.constant dense<0.000000e+00> : vector<2x128xf32>
    %398 = vector.multi_reduction <add>, %397, %cst_86 [1] : vector<2x8x128xf32> to vector<2x128xf32>
    %399 = arith.truncf %398 : vector<2x128xf32> to vector<2x128xbf16>
    %c1_87 = arith.constant 1 : index
    %c0_88 = arith.constant 0 : index
    %c0_89 = arith.constant 0 : index
    %400 = vector.load %arg9[%c1_87, %c0_88, %c0_89] : memref<2x128x128xbf16, #tpu.memory_space<vmem>>, vector<1x128x128xbf16>
    %401 = vector.shape_cast %400 : vector<1x128x128xbf16> to vector<128x128xbf16>
    %cst_90 = arith.constant dense<0.000000e+00> : vector<2x128xf32>
    %402 = tpu.matmul %399, %401, %cst_90 {dimension_numbers = #tpu.dot_dimension_numbers<[1], [0], [0], [1], [0, 0, 1, 1], [], []>} : vector<2x128xbf16>, vector<128x128xbf16>, vector<2x128xf32> -> vector<2x128xf32>
    %c0_91 = arith.constant 0 : index
    %c1536 = arith.constant 1536 : index
    %403 = vector.load %arg12[%c0_91, %c1536] : memref<1x2560xf32, #tpu.memory_space<vmem>>, vector<1x128xf32>
    %404 = vector.broadcast %403 : vector<1x128xf32> to vector<2x128xf32>
    %405 = arith.addf %402, %404 : vector<2x128xf32>
    %406 = arith.addf %362, %405 : vector<2x128xf32>
    %cst_92 = arith.constant dense<0.000000e+00> : vector<2xf32>
    %407 = vector.multi_reduction <add>, %406, %cst_92 [1] : vector<2x128xf32> to vector<2xf32>
    %408 = vector.shape_cast %407 : vector<2xf32> to vector<2x1xf32>
    %cst_93 = arith.constant 1.280000e+02 : f32
    %409 = vector.broadcast %cst_93 : f32 to vector<2x1xf32>
    %410 = arith.divf %408, %409 : vector<2x1xf32>
    %411 = vector.broadcast %410 : vector<2x1xf32> to vector<2x128xf32>
    %412 = arith.subf %406, %411 : vector<2x128xf32>
    %413 = arith.mulf %412, %412 : vector<2x128xf32>
    %cst_94 = arith.constant dense<0.000000e+00> : vector<2xf32>
    %414 = vector.multi_reduction <add>, %413, %cst_94 [1] : vector<2x128xf32> to vector<2xf32>
    %415 = vector.shape_cast %414 : vector<2xf32> to vector<2x1xf32>
    %cst_95 = arith.constant 1.280000e+02 : f32
    %416 = vector.broadcast %cst_95 : f32 to vector<2x1xf32>
    %417 = arith.divf %415, %416 : vector<2x1xf32>
    %418 = vector.broadcast %410 : vector<2x1xf32> to vector<2x128xf32>
    %419 = arith.subf %406, %418 : vector<2x128xf32>
    %cst_96 = arith.constant 9.99999997E-7 : f32
    %420 = vector.broadcast %cst_96 : f32 to vector<2x1xf32>
    %421 = arith.addf %417, %420 : vector<2x1xf32>
    %422 = math.rsqrt %421 : vector<2x1xf32>
    %423 = vector.broadcast %422 : vector<2x1xf32> to vector<2x128xf32>
    %424 = arith.mulf %419, %423 : vector<2x128xf32>
    %c0_97 = arith.constant 0 : index
    %c1664 = arith.constant 1664 : index
    %425 = vector.load %arg12[%c0_97, %c1664] : memref<1x2560xf32, #tpu.memory_space<vmem>>, vector<1x128xf32>
    %426 = vector.broadcast %425 : vector<1x128xf32> to vector<2x128xf32>
    %427 = arith.mulf %424, %426 : vector<2x128xf32>
    %c0_98 = arith.constant 0 : index
    %c1792 = arith.constant 1792 : index
    %428 = vector.load %arg12[%c0_98, %c1792] : memref<1x2560xf32, #tpu.memory_space<vmem>>, vector<1x128xf32>
    %429 = vector.broadcast %428 : vector<1x128xf32> to vector<2x128xf32>
    %430 = arith.addf %427, %429 : vector<2x128xf32>
    %c0_99 = arith.constant 0 : index
    %c0_100 = arith.constant 0 : index
    %431 = vector.load %arg14[%c0_99, %c0_100] : memref<2x128xf32, #tpu.memory_space<vmem>>, vector<2x128xf32>
    tpu.vector_store %arg14[%c0_99, %c0_100], %430 {strides = array<i32>} : memref<2x128xf32, #tpu.memory_space<vmem>>, vector<2x128xf32>,
    %c0_101 = arith.constant 0 : index
    %c0_102 = arith.constant 0 : index
    %c0_103 = arith.constant 0 : index
    %432 = vector.load %arg1[%c0_101, %c0_102, %c0_103] : memref<2x8x768xf32, #tpu.memory_space<vmem>>, vector<2x8x768xf32>
    %433 = vector.shape_cast %432 : vector<2x8x768xf32> to vector<16x768xf32>
    %434 = arith.truncf %433 : vector<16x768xf32> to vector<16x768xbf16>
    %c0_104 = arith.constant 0 : index
    %c0_105 = arith.constant 0 : index
    %435 = vector.load %arg10[%c0_104, %c0_105] : memref<768x128xbf16, #tpu.memory_space<vmem>>, vector<768x128xbf16>
    %cst_106 = arith.constant dense<0.000000e+00> : vector<16x128xf32>
    %436 = tpu.matmul %434, %435, %cst_106 {dimension_numbers = #tpu.dot_dimension_numbers<[1], [0], [0], [1], [0, 0, 1, 1], [], []>} : vector<16x768xbf16>, vector<768x128xbf16>, vector<16x128xf32> -> vector<16x128xf32>
    %c0_107 = arith.constant 0 : index
    %c1920 = arith.constant 1920 : index
    %437 = vector.load %arg12[%c0_107, %c1920] : memref<1x2560xf32, #tpu.memory_space<vmem>>, vector<1x128xf32>
    %438 = vector.broadcast %437 : vector<1x128xf32> to vector<16x128xf32>
    %439 = arith.addf %436, %438 : vector<16x128xf32>
    %440 = arith.truncf %439 : vector<16x128xf32> to vector<16x128xbf16>
    %c0_108 = arith.constant 0 : index
    %c0_109 = arith.constant 0 : index
    %441 = vector.load %arg11[%c0_108, %c0_109] : memref<128x512xbf16, #tpu.memory_space<vmem>>, vector<128x512xbf16>
    %cst_110 = arith.constant dense<0.000000e+00> : vector<16x512xf32>
    %442 = tpu.matmul %440, %441, %cst_110 {dimension_numbers = #tpu.dot_dimension_numbers<[1], [0], [0], [1], [0, 0, 1, 1], [], []>} : vector<16x128xbf16>, vector<128x512xbf16>, vector<16x512xf32> -> vector<16x512xf32>
    %c0_111 = arith.constant 0 : index
    %c2048 = arith.constant 2048 : index
    %443 = vector.load %arg12[%c0_111, %c2048] : memref<1x2560xf32, #tpu.memory_space<vmem>>, vector<1x512xf32>
    %444 = vector.broadcast %443 : vector<1x512xf32> to vector<16x512xf32>
    %445 = arith.addf %442, %444 : vector<16x512xf32>
    %446 = vector.shape_cast %445 : vector<16x512xf32> to vector<2x8x512xf32>
    %cst_112 = arith.constant dense<0xFF800000> : vector<2x512xf32>
    %447 = vector.multi_reduction <maximumf>, %446, %cst_112 [1] : vector<2x8x512xf32> to vector<2x512xf32>
    %448 = vector.shape_cast %447 : vector<2x512xf32> to vector<2x1x512xf32>
    %449 = vector.broadcast %448 : vector<2x1x512xf32> to vector<2x8x512xf32>
    %450 = arith.subf %446, %449 : vector<2x8x512xf32>
    %451 = math.exp %450 : vector<2x8x512xf32>
    %cst_113 = arith.constant dense<0.000000e+00> : vector<2x512xf32>
    %452 = vector.multi_reduction <add>, %451, %cst_113 [1] : vector<2x8x512xf32> to vector<2x512xf32>
    %453 = vector.shape_cast %452 : vector<2x512xf32> to vector<2x1x512xf32>
    %454 = math.log %453 : vector<2x1x512xf32>
    %455 = vector.broadcast %454 : vector<2x1x512xf32> to vector<2x8x512xf32>
    %456 = arith.subf %450, %455 : vector<2x8x512xf32>
    %c0_114 = arith.constant 0 : index
    %c0_115 = arith.constant 0 : index
    %c0_116 = arith.constant 0 : index
    %457 = vector.load %arg13[%c0_114, %c0_115, %c0_116] : memref<2x8x512xf32, #tpu.memory_space<vmem>>, vector<2x8x512xf32>
    tpu.vector_store %arg13[%c0_114, %c0_115, %c0_116], %456 {strides = array<i32>} : memref<2x8x512xf32, #tpu.memory_space<vmem>>, vector<2x8x512xf32>,
    return
  }
}

</mosaic_0001>

<bundles_post_ra>
// kernel: _lambda_.1
= control target key start
LH: loop header
LB: loop body
LE: loop exit
PB: predicated region body
PF: predicated region fallthrough
CT: control target
= control target key end

     0   :  { %20 = vsyncpa [#allocation3], 0  ;;  %s7447_s0 = inlined_call_operand.vmem [shape: f32[16,768], index: 0, kind: input, shape index: {}]   ;;  %s7448_s1 = inlined_call_operand.vmem [shape: f32[2,8,768], index: 1, kind: input, shape index: {}]   ;;  %s7449_s2 = inlined_call_operand.vmem [shape: f32[2,8,4], index: 2, kind: input, shape index: {}]   ;;  %s7450_s3 = inlined_call_operand.hbm [shape: bf16[768,512], index: 3, kind: input, shape index: {}]   ;;  %s7451_s4 = inlined_call_operand.hbm [shape: bf16[128,512], index: 4, kind: input, shape index: {}]   ;;  %s7452_s5 = inlined_call_operand.hbm [shape: bf16[4,256], index: 5, kind: input, shape index: {}]   ;;  %s7453_s6 = inlined_call_operand.hbm [shape: bf16[256,128], index: 6, kind: input, shape index: {}]   ;;  %s7454_s7 = inlined_call_operand.hbm [shape: bf16[2,128,128], index: 7, kind: input, shape index: {}]   ;;  %s7455_s8 = inlined_call_operand.hbm [shape: f32[2,1,128], index: 8, kind: input, shape index: {}]   ;;  %s7456_s9 = inlined_call_operand.hbm [shape: bf16[2,128,128], index: 9, kind: input, shape index: {}]   ;;  %s7457_s10 = inlined_call_operand.hbm [shape: bf16[768,128], index: 10, kind: input, shape index: {}]   ;;  %s7458_s11 = inlined_call_operand.hbm [shape: bf16[128,512], index: 11, kind: input, shape index: {}]   ;;  %s7459_s12 = inlined_call_operand.hbm [shape: f32[1,2560], index: 12, kind: input, shape index: {}]   ;;  %s7460_s13 = inlined_call_operand.hbm [shape: f32[2,8,512], index: 13, kind: output, shape index: {0}]   ;;  %s7461_s14 = inlined_call_operand.hbm [shape: f32[2,128], index: 14, kind: output, shape index: {1}]  }
   0x1   :  { %21 = vsyncpa [#allocation6], 0 }
   0x2   :  { %22 = vsyncpa [#allocation9], 0 }
   0x3   :  { %23 = vsyncpa [#allocation12], 0 }
   0x4   :  { %24 = vsyncpa [#allocation15], 0 }
   0x5   :  { %25 = vsyncpa [#allocation18], 0 }
   0x6   :  { %26 = vsyncpa [#allocation4], 0 }
   0x7   :  { %27 = vsyncpa [#allocation21], 0  ;;  %s6502_s29 = smov [#allocation5]   ;;  %s6503_s15 = smov [#allocation8]  }
   0x8   :  { %s51_s30 = sshll.u32 %s6502_s29, 4  ;;  %s73_s16 = sshll.u32 %s6503_s15, 4  ;;  %s52_s30 = int_to_ptr.vmem [resolvable:$true] %s51_s30  ;;  %s74_s16 = int_to_ptr.vmem [resolvable:$true] %s73_s16 }
   0x9   :  { %s6254_s17 = scalar_lea.vmem %s52_s30, 4096  ;;  %p6259_p1 = scmp.lt.s32.totalorder %s52_s30, %s52_s30 }
   0xa   :  { %p6255_p0 = scmp.ne.s32.totalorder %s52_s30, %s6254_s17  ;;  %p6260_p2 = scmp.lt.s32.totalorder %s6254_s17, %s6254_s17 }
   0xc   :  { %p6261_p3 = por %p6260_p2, %p6259_p1 }
   0xe   :  { %p6262_p4 = pnand %p6261_p3, %p6255_p0 }
  0x10   :  { %6265 = shalt.err (!%p6262_p4)
}
  0x11   :  { %s6504_s18 = smov 256   ;;  %s6505_s19 = smov 16  }
  0x12   :  { %57 = dma.hbm_to_vmem [thread:$0]  %s7451_s4, 4096, %s52_s30, [#allocation6], %s6504_s18, %s6504_s18, %s6505_s19  }
  0x13   :  { %s6274_s22 = scalar_lea.vmem %s74_s16, 2048  ;;  %p6279_p6 = scmp.lt.s32.totalorder %s74_s16, %s74_s16 }
  0x14   :  { %p6275_p5 = scmp.ne.s32.totalorder %s74_s16, %s6274_s22  ;;  %p6280_p7 = scmp.lt.s32.totalorder %s6274_s22, %s6274_s22 }
  0x16   :  { %p6281_p8 = por %p6280_p7, %p6279_p6 }
  0x18   :  { %p6282_p9 = pnand %p6281_p8, %p6275_p5 }
  0x1a   :  { %6285 = shalt.err (!%p6282_p9)
}
  0x1b   :  { %s6506_s23 = smov 64   ;;  %s6507_s24 = smov 4  }
  0x1c   :  { %79 = dma.hbm_to_vmem [thread:$0]  %s7453_s6, 2048, %s74_s16, [#allocation9], %s6506_s23, %s6506_s23, %s6507_s24  }
  0x1d   :  { %s6508_s27 = smov [#allocation11]   ;;  %s6509_s4 = smov [#allocation14]  }
  0x1e   :  { %s97_s28 = sshll.u32 %s6508_s27, 4  ;;  %s121_s29 = sshll.u32 %s6509_s4, 4  ;;  %s98_s28 = int_to_ptr.vmem [resolvable:$true] %s97_s28  ;;  %s122_s29 = int_to_ptr.vmem [resolvable:$true] %s121_s29 }
  0x1f   :  { %s6294_s30 = scalar_lea.vmem %s98_s28, 32  ;;  %p6299_p11 = scmp.lt.s32.totalorder %s98_s28, %s98_s28 }
  0x20   :  { %p6295_p10 = scmp.ne.s32.totalorder %s98_s28, %s6294_s30  ;;  %p6300_p12 = scmp.lt.s32.totalorder %s6294_s30, %s6294_s30 }
  0x22   :  { %p6301_p13 = por %p6300_p12, %p6299_p11 }
  0x24   :  { %p6302_p0 = pnand %p6301_p13, %p6295_p10 }
  0x26   :  { %6305 = shalt.err (!%p6302_p0)
}
  0x27   :  { %s6510_s15 = smov 1   ;;  %s6314_s6 = scalar_lea.vmem %s122_s29, 6144 }
  0x28   :  { %103 = dma.hbm_to_vmem [thread:$0]  %s7455_s8, 32, %s98_s28, [#allocation12], %s6505_s19, %s6505_s19, %s6510_s15  }
  0x29   :  { %p6315_p1 = scmp.ne.s32.totalorder %s122_s29, %s6314_s6  ;;  %p6319_p2 = scmp.lt.s32.totalorder %s122_s29, %s122_s29 }
  0x2a   :  { %p6320_p3 = scmp.lt.s32.totalorder %s6314_s6, %s6314_s6 }
  0x2c   :  { %p6321_p4 = por %p6320_p3, %p6319_p2 }
  0x2e   :  { %p6322_p5 = pnand %p6321_p4, %p6315_p1 }
  0x30   :  { %6325 = shalt.err (!%p6322_p5)
}
  0x31   :  { %127 = dma.hbm_to_vmem [thread:$0]  %s7457_s10, 6144, %s122_s29, [#allocation15], %s6506_s23, %s6506_s23, %s6507_s24  }
  0x32   :  { %s6511_s22 = smov [#allocation2]   ;;  %s6512_s26 = smov [#allocation7]  }
  0x33   :  { %s39_s25 = sshll.u32 %s6511_s22, 4  ;;  %s64_s8 = sshll.u32 %s6512_s26, 4  ;;  %s40_s25 = int_to_ptr.vmem [resolvable:$true] %s39_s25  ;;  %s65_s8 = int_to_ptr.vmem [resolvable:$true] %s64_s8 }
  0x34   :  { %s6334_s27 = scalar_lea.vmem %s40_s25, 24576  ;;  %p6339_p7 = scmp.lt.s32.totalorder %s40_s25, %s40_s25 }
  0x35   :  { %p6335_p6 = scmp.ne.s32.totalorder %s40_s25, %s6334_s27  ;;  %p6340_p8 = scmp.lt.s32.totalorder %s6334_s27, %s6334_s27 }
  0x37   :  { %p6341_p9 = por %p6340_p8, %p6339_p7 }
  0x39   :  { %p6342_p10 = pnand %p6341_p9, %p6335_p6 }
  0x3b   :  { %6345 = shalt.err (!%p6342_p10)
}
  0x3c   :  { %45 = dma.hbm_to_vmem [thread:$0]  %s7450_s3, 24576, %s40_s25, [#allocation3], %s6504_s18, %s6504_s18, %s6505_s19  }
  0x3d   :  { %s6354_s10 = scalar_lea.vmem %s65_s8, 64  ;;  %p6359_p12 = scmp.lt.s32.totalorder %s65_s8, %s65_s8 }
  0x3e   :  { %p6355_p11 = scmp.ne.s32.totalorder %s65_s8, %s6354_s10  ;;  %p6360_p13 = scmp.lt.s32.totalorder %s6354_s10, %s6354_s10 }
  0x40   :  { %p6361_p0 = por %p6360_p13, %p6359_p12 }
  0x42   :  { %p6362_p1 = pnand %p6361_p0, %p6355_p11 }
  0x44   :  { %6365 = shalt.err (!%p6362_p1)
}
  0x45   :  { %67 = dma.hbm_to_vmem [thread:$0]  %s7452_s5, 64, %s65_s8, [#allocation6]  }
  0x46   :  { %s6513_s15 = smov [#allocation10]   ;;  %s6514_s20 = smov [#allocation13]  }
  0x47   :  { %s85_s17 = sshll.u32 %s6513_s15, 4  ;;  %s109_s6 = sshll.u32 %s6514_s20, 4  ;;  %s86_s17 = int_to_ptr.vmem [resolvable:$true] %s85_s17  ;;  %s110_s6 = int_to_ptr.vmem [resolvable:$true] %s109_s6 }
  0x48   :  { %s6374_s16 = scalar_lea.vmem %s86_s17, 2048  ;;  %p6379_p3 = scmp.lt.s32.totalorder %s86_s17, %s86_s17 }
  0x49   :  { %p6375_p2 = scmp.ne.s32.totalorder %s86_s17, %s6374_s16  ;;  %p6380_p4 = scmp.lt.s32.totalorder %s6374_s16, %s6374_s16 }
  0x4b   :  { %p6381_p5 = por %p6380_p4, %p6379_p3 }
  0x4d   :  { %p6382_p6 = pnand %p6381_p5, %p6375_p2 }
  0x4f   :  { %6385 = shalt.err (!%p6382_p6)
}
  0x50   :  { %91 = dma.hbm_to_vmem [thread:$0]  %s7454_s7, 2048, %s86_s17, [#allocation9], %s6506_s23, %s6506_s23, %s6507_s24  }
  0x51   :  { %s6394_s5 = scalar_lea.vmem %s110_s6, 2048  ;;  %p6399_p8 = scmp.lt.s32.totalorder %s110_s6, %s110_s6 }
  0x52   :  { %p6395_p7 = scmp.ne.s32.totalorder %s110_s6, %s6394_s5  ;;  %p6400_p9 = scmp.lt.s32.totalorder %s6394_s5, %s6394_s5 }
  0x54   :  { %p6401_p10 = por %p6400_p9, %p6399_p8 }
  0x56   :  { %p6402_p11 = pnand %p6401_p10, %p6395_p7 }
  0x58   :  { %6405 = shalt.err (!%p6402_p11)
}
  0x59   :  { %115 = dma.hbm_to_vmem [thread:$0]  %s7456_s9, 2048, %s110_s6, [#allocation12], %s6506_s23, %s6506_s23, %s6507_s24  }
  0x5a   :  { %s6515_s26 = smov [#allocation16]   ;;  %s6516_s27 = smov [#allocation17]  }
  0x5b   :  { %s133_s8 = sshll.u32 %s6515_s26, 4  ;;  %s146_s7 = sshll.u32 %s6516_s27, 4  ;;  %s134_s8 = int_to_ptr.vmem [resolvable:$true] %s133_s8  ;;  %s147_s7 = int_to_ptr.vmem [resolvable:$true] %s146_s7 }
  0x5c   :  { %s6414_s28 = scalar_lea.vmem %s134_s8, 4096  ;;  %p6419_p13 = scmp.lt.s32.totalorder %s134_s8, %s134_s8 }
  0x5d   :  { %p6415_p12 = scmp.ne.s32.totalorder %s134_s8, %s6414_s28  ;;  %p6420_p0 = scmp.lt.s32.totalorder %s6414_s28, %s6414_s28 }
  0x5f   :  { %p6421_p1 = por %p6420_p0, %p6419_p13 }
  0x61   :  { %p6422_p2 = pnand %p6421_p1, %p6415_p12 }
  0x63   :  { %6425 = shalt.err (!%p6422_p2)
}
  0x64   :  { %139 = dma.hbm_to_vmem [thread:$0]  %s7458_s11, 4096, %s134_s8, [#allocation15], %s6504_s18, %s6504_s18, %s6505_s19  }
  0x65   :  { %s6434_s9 = scalar_lea.vmem %s147_s7, 320  ;;  %p6439_p4 = scmp.lt.s32.totalorder %s147_s7, %s147_s7 }
  0x66   :  { %p6435_p3 = scmp.ne.s32.totalorder %s147_s7, %s6434_s9  ;;  %p6440_p5 = scmp.lt.s32.totalorder %s6434_s9, %s6434_s9 }
  0x68   :  { %p6441_p6 = por %p6440_p5, %p6439_p4 }
  0x6a   :  { %p6442_p7 = pnand %p6441_p6, %p6435_p3 }
  0x6c   :  { %6445 = shalt.err (!%p6442_p7)
}
  0x6d   :  { %149 = dma.hbm_to_vmem [thread:$0]  %s7459_s12, 320, %s147_s7, [#allocation18]  }
  0x6e   :  { %6486 = dma.done.wait [#allocation3], 24576  }
  0x6f   :  { %6487 = vsyncadd [#allocation3], 4294942720 }
  0x70   :  { %6488 = dma.done.wait [#allocation6], 4160  }
  0x71   :  { %6489 = vsyncadd [#allocation6], 4294963136 }
  0x72   :  { %6490 = dma.done.wait [#allocation9], 4096  }
  0x73   :  { %6491 = vsyncadd [#allocation9], 4294963200 }
  0x74   :  { %6492 = dma.done.wait [#allocation12], 2080  }
  0x75   :  { %6493 = vsyncadd [#allocation12], 4294965216 }
  0x76   :  { %6494 = dma.done.wait [#allocation15], 10240  }
  0x77   :  { %6495 = vsyncadd [#allocation15], 4294957056 }
  0x78   :  { %6496 = dma.done.wait [#allocation18], 320  }
  0x79   :  { %6497 = vsyncadd [#allocation18], 4294966976  ;;  %v5538_v0 = vld [vmem:[#allocation2 + $0xe4] ss:$16 sps:$4 sm:$0xff]   ;;  %v5542_v2 = vld [vmem:[#allocation2 + $0xe0] ss:$16 sps:$4 sm:$0xff]  }
  0x7a   :  { %v5540_v1 = vld [vmem:[#allocation2 + $0x2e4] ss:$16 sps:$4 sm:$0xff]   ;;  %1373 = vmatprep.subr.bf16.mxu0 %v5538_v0  ;;  %v5543_v3 = vld [vmem:[#allocation2 + $0x2e0] ss:$16 sps:$4 sm:$0xff]   ;;  %v182_v48 = vld [vmem:[%s7447_s0 + $0x8] sm:$0xff]  ;;  %vm2818_vm0 = vcmask 1041408  }
  0x7b   :  { %1416 = vmatprep.subr.bf16.mxu1 %v5540_v1  ;;  %v5544_v4 = vld [vmem:[#allocation2 + $0xc4] ss:$16 sps:$4 sm:$0xff]   ;;  %1374 = vmatpush1.bf16.msra.mxu0 %v5542_v2  ;;  %v5548_v6 = vld [vmem:[#allocation2 + $0xc0] ss:$16 sps:$4 sm:$0xff]   ;;  %v188_v49 = vld [vmem:[%s7447_s0 + $0x38] sm:$0xff]  ;;  %vm2878_vm1 = vcmask 31744  }
  0x7c   :  { %1417 = vmatpush1.bf16.msra.mxu1 %v5543_v3  ;;  %v5546_v5 = vld [vmem:[#allocation2 + $0x2c4] ss:$16 sps:$4 sm:$0xff]   ;;  %1375 = vmatprep.subr.bf16.mxu0 %v5544_v4  ;;  %v5549_v7 = vld [vmem:[#allocation2 + $0x2c0] ss:$16 sps:$4 sm:$0xff]   ;;  %v2828_v50 = vand.u32 2147483647, %v182_v48  ;;  %v6664_v53 = vpack.c.bf16 %v188_v49, %v182_v48 }
  0x7d   :  { %1418 = vmatprep.subr.bf16.mxu1 %v5546_v5  ;;  %v5550_v8 = vld [vmem:[#allocation2 + $0xa4] ss:$16 sps:$4 sm:$0xff]   ;;  %v5554_v10 = vld [vmem:[#allocation2 + $0xa0] ss:$16 sps:$4 sm:$0xff]   ;;  %v2834_v54 = vand.u32 2147483647, %v188_v49 }
  0x7e   :  { %v5552_v9 = vld [vmem:[#allocation2 + $0x2a4] ss:$16 sps:$4 sm:$0xff]   ;;  %v5555_v11 = vld [vmem:[#allocation2 + $0x2a0] ss:$16 sps:$4 sm:$0xff]   ;;  %v184_v56 = vld [vmem:[%s7447_s0 + $0x18] sm:$0xff]  ;;  %1405 = vmatprep.mubr.bf16.mxu0 %v6664_v53  ;;  %vm6519_vm2 = vmmov 0  }
  0x7f   :  { %1376 = vmatpush1.bf16.msra.mxu0 %v5548_v6  ;;  %v5556_v12 = vld [vmem:[#allocation2 + $0x84] ss:$16 sps:$4 sm:$0xff]   ;;  %v5560_v14 = vld [vmem:[#allocation2 + $0x80] ss:$16 sps:$4 sm:$0xff]   ;;  %v190_v57 = vld [vmem:[%s7447_s0 + $0x48] sm:$0xff]  ;;  %vm2820_vm3 = vcmask 1043456  }
  0x80   :  { %1419 = vmatpush1.bf16.msra.mxu1 %v5549_v7  ;;  %1377 = vmatprep.subr.bf16.mxu0 %v5550_v8  ;;  %v5558_v13 = vld [vmem:[#allocation2 + $0x284] ss:$16 sps:$4 sm:$0xff]   ;;  %v5561_v15 = vld [vmem:[#allocation2 + $0x280] ss:$16 sps:$4 sm:$0xff]   ;;  %v6672_v61 = vpack.c.bf16 %v190_v57, %v184_v56  ;;  %v186_v48 = vld [vmem:[%s7447_s0 + $0x28] sm:$0xff]  ;;  %vm2822_vm4 = vcmask 1045504  }
  0x81   :  { %1420 = vmatprep.subr.bf16.mxu1 %v5552_v9  ;;  %v5562_v16 = vld [vmem:[#allocation2 + $0x64] ss:$16 sps:$4 sm:$0xff]   ;;  %v5566_v18 = vld [vmem:[#allocation2 + $0x60] ss:$16 sps:$4 sm:$0xff]   ;;  %v192_v49 = vld [vmem:[%s7447_s0 + $0x58] sm:$0xff]  ;;  %vm3681_vm7 = vcmask 7168  }
  0x82   :  { %v5564_v17 = vld [vmem:[#allocation2 + $0x264] ss:$16 sps:$4 sm:$0xff]   ;;  %v5567_v19 = vld [vmem:[#allocation2 + $0x260] ss:$16 sps:$4 sm:$0xff]   ;;  %1448 = vmatprep.mubr.bf16.mxu1 %v6672_v61  ;;  %v5685_v56 = vld [vmem:[#allocation2 + $0x1e8] ss:$16 sps:$4 sm:$0xff]  }
  0x83   :  { %1378 = vmatpush1.bf16.msra.mxu0 %v5554_v10  ;;  %v5568_v20 = vld [vmem:[#allocation2 + $0x44] ss:$16 sps:$4 sm:$0xff]   ;;  %v5572_v22 = vld [vmem:[#allocation2 + $0x40] ss:$16 sps:$4 sm:$0xff]   ;;  %vm3774_vm10 = vcmask 1041409   ;;  %s6521_s22 = smov [#allocation20]  }
  0x84   :  { %1421 = vmatpush1.bf16.msra.mxu1 %v5555_v11  ;;  %1379 = vmatprep.subr.bf16.mxu0 %v5556_v12  ;;  %v5570_v21 = vld [vmem:[#allocation2 + $0x244] ss:$16 sps:$4 sm:$0xff]   ;;  %v5573_v23 = vld [vmem:[#allocation2 + $0x240] ss:$16 sps:$4 sm:$0xff]   ;;  %s4901_s25 = sshll.u32 %s6521_s22, 4  ;;  %s4902_s25 = int_to_ptr.vmem [resolvable:$true] %s4901_s25 }
  0x85   :  { %1422 = vmatprep.subr.bf16.mxu1 %v5558_v13  ;;  %v5574_v24 = vld [vmem:[#allocation2 + $0x24] ss:$16 sps:$4 sm:$0xff]   ;;  %v5578_v26 = vld [vmem:[#allocation2 + $0x20] ss:$16 sps:$4 sm:$0xff]  }
  0x86   :  { %v5576_v25 = vld [vmem:[#allocation2 + $0x224] ss:$16 sps:$4 sm:$0xff]   ;;  %v5579_v27 = vld [vmem:[#allocation2 + $0x220] ss:$16 sps:$4 sm:$0xff]  }
  0x87   :  { %1380 = vmatpush1.bf16.msra.mxu0 %v5560_v14  ;;  %v5580_v28 = vld [vmem:[#allocation2 + $0x4] ss:$16 sps:$4 sm:$0xff]   ;;  %v5584_v30 = vld [vmem:[#allocation2] ss:$16 sps:$4 sm:$0xff]  }
  0x88   :  { %1423 = vmatpush1.bf16.msra.mxu1 %v5561_v15  ;;  %1381 = vmatprep.subr.bf16.mxu0 %v5562_v16  ;;  %v5582_v29 = vld [vmem:[#allocation2 + $0x204] ss:$16 sps:$4 sm:$0xff]   ;;  %v5585_v31 = vld [vmem:[#allocation2 + $0x200] ss:$16 sps:$4 sm:$0xff]  }
  0x89   :  { %1424 = vmatprep.subr.bf16.mxu1 %v5564_v17  ;;  %v5586_v32 = vld [vmem:[#allocation2 + $0x1e4] ss:$16 sps:$4 sm:$0xff]   ;;  %v5590_v34 = vld [vmem:[#allocation2 + $0x1e0] ss:$16 sps:$4 sm:$0xff]   ;;  %v5639_v17 = vld [vmem:[#allocation2 + $0xec] ss:$16 sps:$4 sm:$0xff]  }
  0x8a   :  { %v5588_v33 = vld [vmem:[#allocation2 + $0x3e4] ss:$16 sps:$4 sm:$0xff]   ;;  %v5591_v35 = vld [vmem:[#allocation2 + $0x3e0] ss:$16 sps:$4 sm:$0xff]  }
  0x8b   :  { %1382 = vmatpush1.bf16.msra.mxu0 %v5566_v18  ;;  %v5592_v36 = vld [vmem:[#allocation2 + $0x1c4] ss:$16 sps:$4 sm:$0xff]   ;;  %v5596_v38 = vld [vmem:[#allocation2 + $0x1c0] ss:$16 sps:$4 sm:$0xff]  }
  0x8c   :  { %1425 = vmatpush1.bf16.msra.mxu1 %v5567_v19  ;;  %1383 = vmatprep.subr.bf16.mxu0 %v5568_v20  ;;  %v5594_v37 = vld [vmem:[#allocation2 + $0x3c4] ss:$16 sps:$4 sm:$0xff]   ;;  %v5597_v39 = vld [vmem:[#allocation2 + $0x3c0] ss:$16 sps:$4 sm:$0xff]  }
  0x8d   :  { %1426 = vmatprep.subr.bf16.mxu1 %v5570_v21  ;;  %v5598_v40 = vld [vmem:[#allocation2 + $0x1a4] ss:$16 sps:$4 sm:$0xff]   ;;  %v5602_v42 = vld [vmem:[#allocation2 + $0x1a0] ss:$16 sps:$4 sm:$0xff]   ;;  %v5637_v21 = vld [vmem:[#allocation2 + $0xe8] ss:$16 sps:$4 sm:$0xff]  }
  0x8e   :  { %v5600_v41 = vld [vmem:[#allocation2 + $0x3a4] ss:$16 sps:$4 sm:$0xff]   ;;  %v5603_v43 = vld [vmem:[#allocation2 + $0x3a0] ss:$16 sps:$4 sm:$0xff]  }
  0x8f   :  { %1384 = vmatpush1.bf16.msra.mxu0 %v5572_v22  ;;  %v5604_v44 = vld [vmem:[#allocation2 + $0x184] ss:$16 sps:$4 sm:$0xff]   ;;  %v5608_v46 = vld [vmem:[#allocation2 + $0x180] ss:$16 sps:$4 sm:$0xff]  }
  0x90   :  { %1427 = vmatpush1.bf16.msra.mxu1 %v5573_v23  ;;  %1385 = vmatprep.subr.bf16.mxu0 %v5574_v24  ;;  %v5606_v45 = vld [vmem:[#allocation2 + $0x384] ss:$16 sps:$4 sm:$0xff]   ;;  %v5609_v47 = vld [vmem:[#allocation2 + $0x380] ss:$16 sps:$4 sm:$0xff]   ;;  %v5645_v23 = vld [vmem:[#allocation2 + $0xcc] ss:$16 sps:$4 sm:$0xff]  }
  0x91   :  { %1428 = vmatprep.subr.bf16.mxu1 %v5576_v25  ;;  %v181_v51 = vld [vmem:[%s7447_s0] sm:$0xff]  ;;  %v187_v52 = vld [vmem:[%s7447_s0 + $0x30] sm:$0xff]  ;;  %v5643_v25 = vld [vmem:[#allocation2 + $0xc8] ss:$16 sps:$4 sm:$0xff]  }
  0x92   :  { %v2827_v55 = vand.u32 2147483647, %v181_v51  ;;  %v5610_v58 = vld [vmem:[#allocation2 + $0x164] ss:$16 sps:$4 sm:$0xff]   ;;  %v2833_v60 = vand.u32 2147483647, %v187_v52  ;;  %v6686_v18 = vpack.c.bf16 %v187_v52, %v181_v51  ;;  %v6699_v51 = vpack.c.bf16 %v192_v49, %v186_v48 }
  0x93   :  { %1386 = vmatpush1.bf16.msra.mxu0 %v5578_v26  ;;  %v5612_v59 = vld [vmem:[#allocation2 + $0x364] ss:$16 sps:$4 sm:$0xff]   ;;  %v5614_v0 = vld [vmem:[#allocation2 + $0x160] ss:$16 sps:$4 sm:$0xff]   ;;  %v5679_v52 = vld [vmem:[#allocation2 + $0x8] ss:$16 sps:$4 sm:$0xff]  }
  0x94   :  { %1429 = vmatpush1.bf16.msra.mxu1 %v5579_v27  ;;  %1387 = vmatprep.subr.bf16.mxu0 %v5580_v28  ;;  %v6675_v62 = vadd.f32 %v2828_v50, %v2827_v55  ;;  %v6677_v63 = vadd.f32 %v2834_v54, %v2833_v60  ;;  %v5615_v1 = vld [vmem:[#allocation2 + $0x360] ss:$16 sps:$4 sm:$0xff]   ;;  %v5616_v2 = vld [vmem:[#allocation2 + $0x144] ss:$16 sps:$4 sm:$0xff]   ;;  %v5651_v27 = vld [vmem:[#allocation2 + $0xac] ss:$16 sps:$4 sm:$0xff]  }
  0x95   :  { %1430 = vmatprep.subr.bf16.mxu1 %v5582_v29  ;;  %v5618_v3 = vld [vmem:[#allocation2 + $0x344] ss:$16 sps:$4 sm:$0xff]   ;;  %v5620_v4 = vld [vmem:[#allocation2 + $0x140] ss:$16 sps:$4 sm:$0xff]   ;;  %v5649_v29 = vld [vmem:[#allocation2 + $0xa8] ss:$16 sps:$4 sm:$0xff]  }
  0x96   :  { %7482 = vst [vmem:[#allocation30_spill] sm:$0xff] %v6675_v62  ;;  %7483 = vst [vmem:[#allocation31_spill] sm:$0xff] %v6677_v63  ;;  %v5621_v5 = vld [vmem:[#allocation2 + $0x340] ss:$16 sps:$4 sm:$0xff]   ;;  %v5622_v6 = vld [vmem:[#allocation2 + $0x124] ss:$16 sps:$4 sm:$0xff]  }
  0x97   :  { %1388 = vmatpush1.bf16.msra.mxu0 %v5584_v30  ;;  %v5624_v7 = vld [vmem:[#allocation2 + $0x324] ss:$16 sps:$4 sm:$0xff]   ;;  %v5626_v8 = vld [vmem:[#allocation2 + $0x120] ss:$16 sps:$4 sm:$0xff]   ;;  %v5687_v54 = vld [vmem:[#allocation2 + $0x1ec] ss:$16 sps:$4 sm:$0xff]  }
  0x98   :  { %1431 = vmatpush1.bf16.msra.mxu1 %v5585_v31  ;;  %1389 = vmatprep.subr.bf16.mxu0 %v5586_v32  ;;  %v5627_v9 = vld [vmem:[#allocation2 + $0x320] ss:$16 sps:$4 sm:$0xff]   ;;  %v5628_v10 = vld [vmem:[#allocation2 + $0x104] ss:$16 sps:$4 sm:$0xff]   ;;  %v5657_v31 = vld [vmem:[#allocation2 + $0x8c] ss:$16 sps:$4 sm:$0xff]  }
  0x99   :  { %1432 = vmatprep.subr.bf16.mxu1 %v5588_v33  ;;  %v5630_v11 = vld [vmem:[#allocation2 + $0x304] ss:$16 sps:$4 sm:$0xff]   ;;  %v5632_v12 = vld [vmem:[#allocation2 + $0x100] ss:$16 sps:$4 sm:$0xff]   ;;  %v5655_v33 = vld [vmem:[#allocation2 + $0x88] ss:$16 sps:$4 sm:$0xff]  }
  0x9a   :  { %v5633_v13 = vld [vmem:[#allocation2 + $0x300] ss:$16 sps:$4 sm:$0xff]   ;;  %v5636_v16 = vld [vmem:[#allocation2 + $0x4e4] ss:$16 sps:$4 sm:$0xff]   ;;  %v5762_v48 = vld [vmem:[#allocation2 + $0x24c] ss:$16 sps:$4 sm:$0xff]  }
  0x9b   :  { %1390 = vmatpush2.bf16.msra.mxu0 %v5590_v34  ;;  %v183_v14 = vld [vmem:[%s7447_s0 + $0x10] sm:$0xff]  ;;  %v189_v15 = vld [vmem:[%s7447_s0 + $0x40] sm:$0xff]  ;;  %v5765_v49 = vld [vmem:[#allocation2 + $0x44c] ss:$16 sps:$4 sm:$0xff]  }
  0x9c   :  { %1433 = vmatpush2.bf16.msra.mxu1 %v5591_v35  ;;  %1391 = vmatprep.subr.bf16.mxu0 %v5592_v36  ;;  %v5634_v19 = vld [vmem:[#allocation2 + $0x4e0] ss:$16 sps:$4 sm:$0xff]   ;;  %v6688_v20 = vpack.c.bf16 %v189_v15, %v183_v14  ;;  %v5642_v22 = vld [vmem:[#allocation2 + $0x4c4] ss:$16 sps:$4 sm:$0xff]   ;;  %v5663_v35 = vld [vmem:[#allocation2 + $0x6c] ss:$16 sps:$4 sm:$0xff]  }
  0x9d   :  { %1434 = vmatprep.subr.bf16.mxu1 %v5594_v37  ;;  %v5640_v24 = vld [vmem:[#allocation2 + $0x4c0] ss:$16 sps:$4 sm:$0xff]   ;;  %v5648_v26 = vld [vmem:[#allocation2 + $0x4a4] ss:$16 sps:$4 sm:$0xff]   ;;  %v5661_v37 = vld [vmem:[#allocation2 + $0x68] ss:$16 sps:$4 sm:$0xff]  }
  0x9e   :  { %v5646_v28 = vld [vmem:[#allocation2 + $0x4a0] ss:$16 sps:$4 sm:$0xff]   ;;  %v5654_v30 = vld [vmem:[#allocation2 + $0x484] ss:$16 sps:$4 sm:$0xff]   ;;  %v5717_v14 = vld [vmem:[#allocation2 + $0x14c] ss:$16 sps:$4 sm:$0xff]  }
  0x9f   :  { %1392 = vmatpush2.bf16.msra.mxu0 %v5596_v38  ;;  %v5652_v32 = vld [vmem:[#allocation2 + $0x480] ss:$16 sps:$4 sm:$0xff]   ;;  %v5660_v34 = vld [vmem:[#allocation2 + $0x464] ss:$16 sps:$4 sm:$0xff]  }
  0xa0   :  { %1435 = vmatpush2.bf16.msra.mxu1 %v5597_v39  ;;  %1393 = vmatprep.subr.bf16.mxu0 %v5598_v40  ;;  %v5658_v36 = vld [vmem:[#allocation2 + $0x460] ss:$16 sps:$4 sm:$0xff]   ;;  %v5666_v38 = vld [vmem:[#allocation2 + $0x444] ss:$16 sps:$4 sm:$0xff]   ;;  %v5669_v39 = vld [vmem:[#allocation2 + $0x4c] ss:$16 sps:$4 sm:$0xff]  }
  0xa1   :  { %1436 = vmatprep.subr.bf16.mxu1 %v5600_v41  ;;  %v5664_v40 = vld [vmem:[#allocation2 + $0x440] ss:$16 sps:$4 sm:$0xff]   ;;  %v5667_v41 = vld [vmem:[#allocation2 + $0x48] ss:$16 sps:$4 sm:$0xff]   ;;  %v5690_v57 = vld [vmem:[#allocation2 + $0x5c4] ss:$16 sps:$4 sm:$0xff]  }
  0xa2   :  { %v5676_v50 = vld [vmem:[#allocation2 + $0x400] ss:$16 sps:$4 sm:$0xff]  }
  0xa3   :  { %1394 = vmatpush2.bf16.msra.mxu0 %v5602_v42  ;;  %v5672_v42 = vld [vmem:[#allocation2 + $0x424] ss:$16 sps:$4 sm:$0xff]   ;;  %v5682_v55 = vld [vmem:[#allocation2 + $0x5e0] ss:$16 sps:$4 sm:$0xff]  }
  0xa4   :  { %1437 = vmatpush2.bf16.msra.mxu1 %v5603_v43  ;;  %1395 = vmatprep.subr.bf16.mxu0 %v5604_v44  ;;  %v5675_v43 = vld [vmem:[#allocation2 + $0x2c] ss:$16 sps:$4 sm:$0xff]   ;;  %v5670_v44 = vld [vmem:[#allocation2 + $0x420] ss:$16 sps:$4 sm:$0xff]  }
  0xa5   :  { %1438 = vmatprep.subr.bf16.mxu1 %v5606_v45  ;;  %v5673_v45 = vld [vmem:[#allocation2 + $0x28] ss:$16 sps:$4 sm:$0xff]   ;;  %v5688_v60 = vld [vmem:[#allocation2 + $0x5c0] ss:$16 sps:$4 sm:$0xff]  }
  0xa6   :  { %v5712_v15 = vld [vmem:[#allocation2 + $0x540] ss:$16 sps:$4 sm:$0xff]  }
  0xa7   :  { %1396 = vmatpush2.bf16.msra.mxu0 %v5608_v46  ;;  %v5678_v46 = vld [vmem:[#allocation2 + $0x404] ss:$16 sps:$4 sm:$0xff]  }
  0xa8   :  { %1439 = vmatpush2.bf16.msra.mxu1 %v5609_v47  ;;  %1397 = vmatprep.subr.bf16.mxu0 %v5610_v58  ;;  %v5681_v47 = vld [vmem:[#allocation2 + $0xc] ss:$16 sps:$4 sm:$0xff]  }
  0xa9   :  { %1440 = vmatprep.subr.bf16.mxu1 %v5612_v59  ;;  %v5693_v58 = vld [vmem:[#allocation2 + $0x1cc] ss:$16 sps:$4 sm:$0xff]   ;;  %v7462_v59 = vmov 0  }
  0xaa   :  { %5537 = vset.pattern.permute.xlu1 %v7462_v59  ;;  %5536 = vset.pattern.permute.xlu0 %v7462_v59 }
  0xab   :  { %1398 = vmatpush2.bf16.msra.mxu0 %v5614_v0  ;;  %v5691_v0 = vld [vmem:[#allocation2 + $0x1c8] ss:$16 sps:$4 sm:$0xff]  }
  0xac   :  { %1441 = vmatpush2.bf16.msra.mxu1 %v5615_v1  ;;  %1399 = vmatprep.subr.bf16.mxu0 %v5616_v2  ;;  %v5696_v1 = vld [vmem:[#allocation2 + $0x5a4] ss:$16 sps:$4 sm:$0xff]   ;;  %v5699_v2 = vld [vmem:[#allocation2 + $0x1ac] ss:$16 sps:$4 sm:$0xff]  }
  0xad   :  { %1442 = vmatprep.subr.bf16.mxu1 %v5618_v3  ;;  %v5694_v3 = vld [vmem:[#allocation2 + $0x5a0] ss:$16 sps:$4 sm:$0xff]  }
  0xaf   :  { %1400 = vmatpush2.bf16.msra.mxu0 %v5620_v4  ;;  %v5697_v4 = vld [vmem:[#allocation2 + $0x1a8] ss:$16 sps:$4 sm:$0xff]  }
  0xb0   :  { %1443 = vmatpush2.bf16.msra.mxu1 %v5621_v5  ;;  %1401 = vmatprep.subr.bf16.mxu0 %v5622_v6  ;;  %v5702_v5 = vld [vmem:[#allocation2 + $0x584] ss:$16 sps:$4 sm:$0xff]   ;;  %v5705_v6 = vld [vmem:[#allocation2 + $0x18c] ss:$16 sps:$4 sm:$0xff]  }
  0xb1   :  { %1444 = vmatprep.subr.bf16.mxu1 %v5624_v7  ;;  %v5700_v7 = vld [vmem:[#allocation2 + $0x580] ss:$16 sps:$4 sm:$0xff]  }
  0xb3   :  { %1402 = vmatpush2.bf16.msra.mxu0 %v5626_v8  ;;  %v5703_v8 = vld [vmem:[#allocation2 + $0x188] ss:$16 sps:$4 sm:$0xff]  }
  0xb4   :  { %1445 = vmatpush2.bf16.msra.mxu1 %v5627_v9  ;;  %1403 = vmatprep.subr.bf16.mxu0 %v5628_v10  ;;  %v5708_v9 = vld [vmem:[#allocation2 + $0x564] ss:$16 sps:$4 sm:$0xff]   ;;  %v5711_v10 = vld [vmem:[#allocation2 + $0x16c] ss:$16 sps:$4 sm:$0xff]  }
  0xb5   :  { %1446 = vmatprep.subr.bf16.mxu1 %v5630_v11  ;;  %v5706_v11 = vld [vmem:[#allocation2 + $0x560] ss:$16 sps:$4 sm:$0xff]  }
  0xb7   :  { %1404 = vmatpush2.bf16.msra.mxu0 %v5632_v12  ;;  %v5709_v12 = vld [vmem:[#allocation2 + $0x168] ss:$16 sps:$4 sm:$0xff]  }
  0xb8   :  { %1447 = vmatpush2.bf16.msra.mxu1 %v5633_v13  ;;  %1459 = vmatprep.subr.bf16.mxu0 %v5636_v16  ;;  %v5714_v13 = vld [vmem:[#allocation2 + $0x544] ss:$16 sps:$4 sm:$0xff]   ;;  %v5715_v16 = vld [vmem:[#allocation2 + $0x148] ss:$16 sps:$4 sm:$0xff]  }
  0xb9   :  { %1502 = vmatprep.subr.bf16.mxu1 %v5639_v17  ;;  %v5720_v17 = vld [vmem:[#allocation2 + $0x524] ss:$16 sps:$4 sm:$0xff]  }
  0xba   :  { %1406 = vmatmul.mubr.bf16.vlgmr.msra.gmra.mxu0 %v6686_v18 }
  0xbb   :  { %1449 = vmatmul.mubr.bf16.vlgmr.msra.gmra.mxu1 %v6688_v20  ;;  %1460 = vmatpush1.bf16.msra.mxu0 %v5634_v19  ;;  %v5723_v19 = vld [vmem:[#allocation2 + $0x12c] ss:$16 sps:$4 sm:$0xff]  }
  0xbc   :  { %1503 = vmatpush1.bf16.msra.mxu1 %v5637_v21  ;;  %1461 = vmatprep.subr.bf16.mxu0 %v5642_v22  ;;  %v5718_v21 = vld [vmem:[#allocation2 + $0x520] ss:$16 sps:$4 sm:$0xff]   ;;  %v5721_v22 = vld [vmem:[#allocation2 + $0x128] ss:$16 sps:$4 sm:$0xff]  }
  0xbd   :  { %1504 = vmatprep.subr.bf16.mxu1 %v5645_v23  ;;  %1534 = vmatprep.mubr.bf16.mxu1 %v6664_v53  ;;  %v5684_v53 = vld [vmem:[#allocation2 + $0x5e4] ss:$16 sps:$4 sm:$0xff]  }
  0xbe   :  { %1491 = vmatprep.mubr.bf16.mxu0 %v6699_v51  ;;  %v5726_v23 = vld [vmem:[#allocation2 + $0x504] ss:$16 sps:$4 sm:$0xff]  }
  0xbf   :  { %1462 = vmatpush1.bf16.msra.mxu0 %v5640_v24  ;;  %v5729_v24 = vld [vmem:[#allocation2 + $0x10c] ss:$16 sps:$4 sm:$0xff]  }
  0xc0   :  { %1505 = vmatpush1.bf16.msra.mxu1 %v5643_v25  ;;  %1463 = vmatprep.subr.bf16.mxu0 %v5648_v26  ;;  %v5724_v25 = vld [vmem:[#allocation2 + $0x500] ss:$16 sps:$4 sm:$0xff]   ;;  %v5727_v26 = vld [vmem:[#allocation2 + $0x108] ss:$16 sps:$4 sm:$0xff]  }
  0xc1   :  { %1506 = vmatprep.subr.bf16.mxu1 %v5651_v27  ;;  %v185_v27 = vld [vmem:[%s7447_s0 + $0x20] sm:$0xff] }
  0xc3   :  { %1464 = vmatpush1.bf16.msra.mxu0 %v5646_v28  ;;  %v191_v28 = vld [vmem:[%s7447_s0 + $0x50] sm:$0xff] }
  0xc4   :  { %1507 = vmatpush1.bf16.msra.mxu1 %v5649_v29  ;;  %1465 = vmatprep.subr.bf16.mxu0 %v5654_v30  ;;  %v5732_v29 = vld [vmem:[#allocation2 + $0x2ec] ss:$16 sps:$4 sm:$0xff]  }
  0xc5   :  { %1508 = vmatprep.subr.bf16.mxu1 %v5657_v31  ;;  %v5735_v30 = vld [vmem:[#allocation2 + $0x4ec] ss:$16 sps:$4 sm:$0xff]   ;;  %v6710_v31 = vpack.c.bf16 %v191_v28, %v185_v27  ;;  %v5814_v28 = vld [vmem:[#allocation2 + $0x328] ss:$16 sps:$4 sm:$0xff]  }
  0xc6   :  { %v5819_v27 = vld [vmem:[#allocation2 + $0x52c] ss:$16 sps:$4 sm:$0xff]  }
  0xc7   :  { %1466 = vmatpush1.bf16.msra.mxu0 %v5652_v32  ;;  %v5730_v32 = vld [vmem:[#allocation2 + $0x2e8] ss:$16 sps:$4 sm:$0xff]  }
  0xc8   :  { %1509 = vmatpush1.bf16.msra.mxu1 %v5655_v33  ;;  %1467 = vmatprep.subr.bf16.mxu0 %v5660_v34  ;;  %v5733_v33 = vld [vmem:[#allocation2 + $0x4e8] ss:$16 sps:$4 sm:$0xff]   ;;  %v5738_v34 = vld [vmem:[#allocation2 + $0x2cc] ss:$16 sps:$4 sm:$0xff]  }
  0xc9   :  { %1510 = vmatprep.subr.bf16.mxu1 %v5663_v35  ;;  %v5741_v35 = vld [vmem:[#allocation2 + $0x4cc] ss:$16 sps:$4 sm:$0xff]  }
  0xcb   :  { %1468 = vmatpush1.bf16.msra.mxu0 %v5658_v36  ;;  %v5736_v36 = vld [vmem:[#allocation2 + $0x2c8] ss:$16 sps:$4 sm:$0xff]  }
  0xcc   :  { %1511 = vmatpush1.bf16.msra.mxu1 %v5661_v37  ;;  %1469 = vmatprep.subr.bf16.mxu0 %v5666_v38  ;;  %v5739_v37 = vld [vmem:[#allocation2 + $0x4c8] ss:$16 sps:$4 sm:$0xff]   ;;  %v5744_v38 = vld [vmem:[#allocation2 + $0x2ac] ss:$16 sps:$4 sm:$0xff]  }
  0xcd   :  { %1512 = vmatprep.subr.bf16.mxu1 %v5669_v39  ;;  %v5747_v39 = vld [vmem:[#allocation2 + $0x4ac] ss:$16 sps:$4 sm:$0xff]  }
  0xcf   :  { %1470 = vmatpush1.bf16.msra.mxu0 %v5664_v40  ;;  %v5742_v40 = vld [vmem:[#allocation2 + $0x2a8] ss:$16 sps:$4 sm:$0xff]  }
  0xd0   :  { %1513 = vmatpush1.bf16.msra.mxu1 %v5667_v41  ;;  %1471 = vmatprep.subr.bf16.mxu0 %v5672_v42  ;;  %v5745_v41 = vld [vmem:[#allocation2 + $0x4a8] ss:$16 sps:$4 sm:$0xff]   ;;  %v5750_v42 = vld [vmem:[#allocation2 + $0x28c] ss:$16 sps:$4 sm:$0xff]  }
  0xd1   :  { %1514 = vmatprep.subr.bf16.mxu1 %v5675_v43  ;;  %v5748_v43 = vld [vmem:[#allocation2 + $0x288] ss:$16 sps:$4 sm:$0xff]  }
  0xd3   :  { %1472 = vmatpush1.bf16.msra.mxu0 %v5670_v44  ;;  %v5751_v44 = vld [vmem:[#allocation2 + $0x488] ss:$16 sps:$4 sm:$0xff]  }
  0xd4   :  { %1515 = vmatpush1.bf16.msra.mxu1 %v5673_v45  ;;  %1473 = vmatprep.subr.bf16.mxu0 %v5678_v46  ;;  %v5756_v45 = vld [vmem:[#allocation2 + $0x26c] ss:$16 sps:$4 sm:$0xff]  }
  0xd5   :  { %1516 = vmatprep.subr.bf16.mxu1 %v5681_v47  ;;  %v5759_v46 = vld [vmem:[#allocation2 + $0x46c] ss:$16 sps:$4 sm:$0xff]   ;;  %v5754_v47 = vld [vmem:[#allocation2 + $0x268] ss:$16 sps:$4 sm:$0xff]  }
  0xd7   :  { %1474 = vmatpush1.bf16.msra.mxu0 %v5676_v50  ;;  %v5760_v50 = vld [vmem:[#allocation2 + $0x248] ss:$16 sps:$4 sm:$0xff]  }
  0xd8   :  { %1517 = vmatpush1.bf16.msra.mxu1 %v5679_v52  ;;  %1475 = vmatprep.subr.bf16.mxu0 %v5684_v53  ;;  %v5768_v52 = vld [vmem:[#allocation2 + $0x22c] ss:$16 sps:$4 sm:$0xff]  }
  0xd9   :  { %1518 = vmatprep.subr.bf16.mxu1 %v5687_v54  ;;  %v5771_v53 = vld [vmem:[#allocation2 + $0x42c] ss:$16 sps:$4 sm:$0xff]   ;;  %v5766_v54 = vld [vmem:[#allocation2 + $0x228] ss:$16 sps:$4 sm:$0xff]  }
  0xdb   :  { %1476 = vmatpush2.bf16.msra.mxu0 %v5682_v55  ;;  %v5769_v55 = vld [vmem:[#allocation2 + $0x428] ss:$16 sps:$4 sm:$0xff]  }
  0xdc   :  { %1519 = vmatpush2.bf16.msra.mxu1 %v5685_v56  ;;  %1477 = vmatprep.subr.bf16.mxu0 %v5690_v57  ;;  %v5774_v56 = vld [vmem:[#allocation2 + $0x20c] ss:$16 sps:$4 sm:$0xff]  }
  0xdd   :  { %1520 = vmatprep.subr.bf16.mxu1 %v5693_v58  ;;  %v5777_v57 = vld [vmem:[#allocation2 + $0x40c] ss:$16 sps:$4 sm:$0xff]   ;;  %v5772_v58 = vld [vmem:[#allocation2 + $0x208] ss:$16 sps:$4 sm:$0xff]  }
  0xdf   :  { %1478 = vmatpush2.bf16.msra.mxu0 %v5688_v60  ;;  %v5775_v60 = vld [vmem:[#allocation2 + $0x408] ss:$16 sps:$4 sm:$0xff]  }
  0xe0   :  { %1521 = vmatpush2.bf16.msra.mxu1 %v5691_v0  ;;  %1479 = vmatprep.subr.bf16.mxu0 %v5696_v1  ;;  %v5780_v0 = vld [vmem:[#allocation2 + $0x3ec] ss:$16 sps:$4 sm:$0xff]  }
  0xe1   :  { %1522 = vmatprep.subr.bf16.mxu1 %v5699_v2  ;;  %v5783_v1 = vld [vmem:[#allocation2 + $0x5ec] ss:$16 sps:$4 sm:$0xff]   ;;  %v5778_v2 = vld [vmem:[#allocation2 + $0x3e8] ss:$16 sps:$4 sm:$0xff]  }
  0xe3   :  { %1480 = vmatpush2.bf16.msra.mxu0 %v5694_v3  ;;  %v5781_v3 = vld [vmem:[#allocation2 + $0x5e8] ss:$16 sps:$4 sm:$0xff]  }
  0xe4   :  { %1523 = vmatpush2.bf16.msra.mxu1 %v5697_v4  ;;  %1481 = vmatprep.subr.bf16.mxu0 %v5702_v5  ;;  %v5786_v4 = vld [vmem:[#allocation2 + $0x3cc] ss:$16 sps:$4 sm:$0xff]  }
  0xe5   :  { %1524 = vmatprep.subr.bf16.mxu1 %v5705_v6  ;;  %v5789_v5 = vld [vmem:[#allocation2 + $0x5cc] ss:$16 sps:$4 sm:$0xff]   ;;  %v5784_v6 = vld [vmem:[#allocation2 + $0x3c8] ss:$16 sps:$4 sm:$0xff]  }
  0xe7   :  { %1482 = vmatpush2.bf16.msra.mxu0 %v5700_v7  ;;  %v5787_v7 = vld [vmem:[#allocation2 + $0x5c8] ss:$16 sps:$4 sm:$0xff]  }
  0xe8   :  { %1525 = vmatpush2.bf16.msra.mxu1 %v5703_v8  ;;  %1483 = vmatprep.subr.bf16.mxu0 %v5708_v9  ;;  %v5792_v8 = vld [vmem:[#allocation2 + $0x3ac] ss:$16 sps:$4 sm:$0xff]  }
  0xe9   :  { %1526 = vmatprep.subr.bf16.mxu1 %v5711_v10  ;;  %v5795_v9 = vld [vmem:[#allocation2 + $0x5ac] ss:$16 sps:$4 sm:$0xff]   ;;  %v5790_v10 = vld [vmem:[#allocation2 + $0x3a8] ss:$16 sps:$4 sm:$0xff]  }
  0xeb   :  { %1484 = vmatpush2.bf16.msra.mxu0 %v5706_v11  ;;  %v5793_v11 = vld [vmem:[#allocation2 + $0x5a8] ss:$16 sps:$4 sm:$0xff]  }
  0xec   :  { %1527 = vmatpush2.bf16.msra.mxu1 %v5709_v12  ;;  %1485 = vmatprep.subr.bf16.mxu0 %v5714_v13  ;;  %v5798_v12 = vld [vmem:[#allocation2 + $0x38c] ss:$16 sps:$4 sm:$0xff]  }
  0xed   :  { %1528 = vmatprep.subr.bf16.mxu1 %v5717_v14  ;;  %v5801_v13 = vld [vmem:[#allocation2 + $0x58c] ss:$16 sps:$4 sm:$0xff]   ;;  %v5796_v14 = vld [vmem:[#allocation2 + $0x388] ss:$16 sps:$4 sm:$0xff]  }
  0xef   :  { %1486 = vmatpush2.bf16.msra.mxu0 %v5712_v15  ;;  %v5799_v15 = vld [vmem:[#allocation2 + $0x588] ss:$16 sps:$4 sm:$0xff]  }
  0xf0   :  { %1529 = vmatpush2.bf16.msra.mxu1 %v5715_v16  ;;  %1487 = vmatprep.subr.bf16.mxu0 %v5720_v17  ;;  %v5804_v16 = vld [vmem:[#allocation2 + $0x36c] ss:$16 sps:$4 sm:$0xff]  }
  0xf1   :  { %1530 = vmatprep.subr.bf16.mxu1 %v5723_v19  ;;  %v5807_v17 = vld [vmem:[#allocation2 + $0x56c] ss:$16 sps:$4 sm:$0xff]   ;;  %v5802_v19 = vld [vmem:[#allocation2 + $0x368] ss:$16 sps:$4 sm:$0xff]  }
  0xf3   :  { %1488 = vmatpush2.bf16.msra.mxu0 %v5718_v21  ;;  %v5805_v21 = vld [vmem:[#allocation2 + $0x568] ss:$16 sps:$4 sm:$0xff]  }
  0xf4   :  { %1531 = vmatpush2.bf16.msra.mxu1 %v5721_v22  ;;  %1489 = vmatprep.subr.bf16.mxu0 %v5726_v23  ;;  %v5810_v22 = vld [vmem:[#allocation2 + $0x34c] ss:$16 sps:$4 sm:$0xff]  }
  0xf5   :  { %1532 = vmatprep.subr.bf16.mxu1 %v5729_v24  ;;  %v5813_v23 = vld [vmem:[#allocation2 + $0x54c] ss:$16 sps:$4 sm:$0xff]   ;;  %v5808_v24 = vld [vmem:[#allocation2 + $0x348] ss:$16 sps:$4 sm:$0xff]  }
  0xf7   :  { %1490 = vmatpush2.bf16.msra.mxu0 %v5724_v25  ;;  %v5811_v25 = vld [vmem:[#allocation2 + $0x548] ss:$16 sps:$4 sm:$0xff]  }
  0xf8   :  { %1533 = vmatpush2.bf16.msra.mxu1 %v5727_v26  ;;  %1545 = vmatprep.subr.bf16.mxu0 %v5732_v29  ;;  %v5816_v26 = vld [vmem:[#allocation2 + $0x32c] ss:$16 sps:$4 sm:$0xff]   ;;  %v5817_v29 = vld [vmem:[#allocation2 + $0x528] ss:$16 sps:$4 sm:$0xff]  }
  0xf9   :  { %1588 = vmatprep.subr.bf16.mxu1 %v5735_v30  ;;  %v5822_v30 = vld [vmem:[#allocation2 + $0x30c] ss:$16 sps:$4 sm:$0xff]  }
  0xfa   :  { %1492 = vmatmul.mubr.bf16.vlgmr.msra.gmra.mxu0 %v6710_v31 }
  0xfb   :  { %1535 = vmatmul.mubr.bf16.vlgmr.msra.gmra.mxu1 %v6686_v18  ;;  %1546 = vmatpush1.bf16.msra.mxu0 %v5730_v32  ;;  %v5753_v18 = vld [vmem:[#allocation2 + $0x48c] ss:$16 sps:$4 sm:$0xff]  }
  0xfc   :  { %1589 = vmatpush1.bf16.msra.mxu1 %v5733_v33  ;;  %1547 = vmatprep.subr.bf16.mxu0 %v5738_v34  ;;  %v5825_v32 = vld [vmem:[#allocation2 + $0x50c] ss:$16 sps:$4 sm:$0xff]   ;;  %v5820_v33 = vld [vmem:[#allocation2 + $0x308] ss:$16 sps:$4 sm:$0xff]  }
  0xfd   :  { %1590 = vmatprep.subr.bf16.mxu1 %v5741_v35  ;;  %1577 = vmatprep.mubr.bf16.mxu0 %v6672_v61  ;;  %v5757_v61 = vld [vmem:[#allocation2 + $0x468] ss:$16 sps:$4 sm:$0xff]   ;;  %v6716_v35 = vld [vmem:[#allocation5 + $0xe4] ss:$16 sps:$4 sm:$0xff]  }
  0xfe   :  { %1620 = vmatprep.mubr.bf16.mxu1 %v6699_v51  ;;  %v5763_v51 = vld [vmem:[#allocation2 + $0x448] ss:$16 sps:$4 sm:$0xff]   ;;  %7484 = vst [vmem:[#allocation32_spill] sm:$0xff] %v6716_v35 }
  0xff   :  { %1548 = vmatpush1.bf16.msra.mxu0 %v5736_v36  ;;  %v5823_v34 = vld [vmem:[#allocation2 + $0x508] ss:$16 sps:$4 sm:$0xff]   ;;  %v6718_v36 = vld [vmem:[#allocation5 + $0xec] ss:$16 sps:$4 sm:$0xff]  }
 0x100   :  { %1591 = vmatpush1.bf16.msra.mxu1 %v5739_v37  ;;  %1549 = vmatprep.subr.bf16.mxu0 %v5744_v38  ;;  %7485 = vst [vmem:[#allocation33_spill] sm:$0xff] %v6718_v36  ;;  %v6720_v37 = vld [vmem:[#allocation5 + $0xe0] ss:$16 sps:$4 sm:$0xff]   ;;  %v6722_v38 = vld [vmem:[#allocation5 + $0xe8] ss:$16 sps:$4 sm:$0xff]  }
 0x101   :  { %1592 = vmatprep.subr.bf16.mxu1 %v5747_v39  ;;  %v6724_v39 = vld [vmem:[#allocation5 + $0xc4] ss:$16 sps:$4 sm:$0xff]  }
 0x103   :  { %1550 = vmatpush1.bf16.msra.mxu0 %v5742_v40  ;;  %v6726_v40 = vld [vmem:[#allocation5 + $0xcc] ss:$16 sps:$4 sm:$0xff]  }
 0x104   :  { %1593 = vmatpush1.bf16.msra.mxu1 %v5745_v41  ;;  %1551 = vmatprep.subr.bf16.mxu0 %v5750_v42  ;;  %v6730_v41 = vld [vmem:[#allocation5 + $0xc0] ss:$16 sps:$4 sm:$0xff]   ;;  %v6732_v42 = vld [vmem:[#allocation5 + $0xc8] ss:$16 sps:$4 sm:$0xff]  }
 0x105   :  { %1594 = vmatprep.subr.bf16.mxu1 %v5753_v18  ;;  %v6736_v18 = vld [vmem:[#allocation5 + $0xa4] ss:$16 sps:$4 sm:$0xff]  }
 0x107   :  { %1552 = vmatpush1.bf16.msra.mxu0 %v5748_v43  ;;  %v6738_v43 = vld [vmem:[#allocation5 + $0xac] ss:$16 sps:$4 sm:$0xff]  }
 0x108   :  { %1595 = vmatpush1.bf16.msra.mxu1 %v5751_v44  ;;  %1553 = vmatprep.subr.bf16.mxu0 %v5756_v45  ;;  %v6744_v44 = vld [vmem:[#allocation5 + $0xa0] ss:$16 sps:$4 sm:$0xff]   ;;  %v6746_v45 = vld [vmem:[#allocation5 + $0xa8] ss:$16 sps:$4 sm:$0xff]  }
 0x109   :  { %1596 = vmatprep.subr.bf16.mxu1 %v5759_v46  ;;  %v6758_v46 = vld [vmem:[#allocation5 + $0x80] ss:$16 sps:$4 sm:$0xff]  }
 0x10b   :  { %1554 = vmatpush1.bf16.msra.mxu0 %v5754_v47  ;;  %v6760_v47 = vld [vmem:[#allocation5 + $0x88] ss:$16 sps:$4 sm:$0xff]  }
 0x10c   :  { %1597 = vmatpush1.bf16.msra.mxu1 %v5757_v61  ;;  %1555 = vmatprep.subr.bf16.mxu0 %v5762_v48  ;;  %v6762_v61 = vld [vmem:[#allocation5 + $0x64] ss:$16 sps:$4 sm:$0xff]   ;;  %v6764_v48 = vld [vmem:[#allocation5 + $0x6c] ss:$16 sps:$4 sm:$0xff]  }
 0x10d   :  { %1598 = vmatprep.subr.bf16.mxu1 %v5765_v49  ;;  %v6770_v49 = vld [vmem:[#allocation5 + $0x60] ss:$16 sps:$4 sm:$0xff]  }
 0x10f   :  { %1556 = vmatpush1.bf16.msra.mxu0 %v5760_v50  ;;  %v6772_v50 = vld [vmem:[#allocation5 + $0x68] ss:$16 sps:$4 sm:$0xff]  }
 0x110   :  { %1599 = vmatpush1.bf16.msra.mxu1 %v5763_v51  ;;  %1557 = vmatprep.subr.bf16.mxu0 %v5768_v52  ;;  %v6774_v51 = vld [vmem:[#allocation5 + $0x44] ss:$16 sps:$4 sm:$0xff]   ;;  %v6776_v52 = vld [vmem:[#allocation5 + $0x4c] ss:$16 sps:$4 sm:$0xff]  }
 0x111   :  { %1600 = vmatprep.subr.bf16.mxu1 %v5771_v53  ;;  %v6782_v53 = vld [vmem:[#allocation5 + $0x40] ss:$16 sps:$4 sm:$0xff]  }
 0x113   :  { %1558 = vmatpush1.bf16.msra.mxu0 %v5766_v54  ;;  %v6784_v54 = vld [vmem:[#allocation5 + $0x48] ss:$16 sps:$4 sm:$0xff]  }
 0x114   :  { %1601 = vmatpush1.bf16.msra.mxu1 %v5769_v55  ;;  %1559 = vmatprep.subr.bf16.mxu0 %v5774_v56  ;;  %v6786_v55 = vld [vmem:[#allocation5 + $0x24] ss:$16 sps:$4 sm:$0xff]   ;;  %v6788_v56 = vld [vmem:[#allocation5 + $0x2c] ss:$16 sps:$4 sm:$0xff]  }
 0x115   :  { %1602 = vmatprep.subr.bf16.mxu1 %v5777_v57  ;;  %v6794_v57 = vld [vmem:[#allocation5 + $0x20] ss:$16 sps:$4 sm:$0xff]  }
 0x117   :  { %1560 = vmatpush1.bf16.msra.mxu0 %v5772_v58  ;;  %v6796_v58 = vld [vmem:[#allocation5 + $0x28] ss:$16 sps:$4 sm:$0xff]  }
 0x118   :  { %1603 = vmatpush1.bf16.msra.mxu1 %v5775_v60  ;;  %1561 = vmatprep.subr.bf16.mxu0 %v5780_v0  ;;  %v6798_v60 = vld [vmem:[#allocation5 + $0x4] ss:$16 sps:$4 sm:$0xff]   ;;  %v6800_v0 = vld [vmem:[#allocation5 + $0xc] ss:$16 sps:$4 sm:$0xff]  }
 0x119   :  { %1604 = vmatprep.subr.bf16.mxu1 %v5783_v1  ;;  %v6806_v1 = vld [vmem:[#allocation5] ss:$16 sps:$4 sm:$0xff]  }
 0x11a   :  { %7486 = vst [vmem:[#allocation34_spill] sm:$0xff] %v6806_v1 }
 0x11b   :  { %1562 = vmatpush2.bf16.msra.mxu0 %v5778_v2  ;;  %v6808_v2 = vld [vmem:[#allocation5 + $0x8] ss:$16 sps:$4 sm:$0xff]  }
 0x11c   :  { %1605 = vmatpush2.bf16.msra.mxu1 %v5781_v3  ;;  %1563 = vmatprep.subr.bf16.mxu0 %v5786_v4  ;;  %7487 = vst [vmem:[#allocation35_spill] sm:$0xff] %v6808_v2  ;;  %v393_v3 = vlaneseq }
 0x11d   :  { %1606 = vmatprep.subr.bf16.mxu1 %v5789_v5 }
 0x11e   :  { %v6850_v4 = vshrl.u32 %v393_v3, 7 }
 0x11f   :  { %1564 = vmatpush2.bf16.msra.mxu0 %v5784_v6  ;;  %v391_v6 = vld [vmem:[#allocation17] sm:$0xf] }
 0x120   :  { %1607 = vmatpush2.bf16.msra.mxu1 %v5787_v7  ;;  %1565 = vmatprep.subr.bf16.mxu0 %v5792_v8  ;;  %7488 = vst [vmem:[#allocation36_spill] sm:$0xff] %v6850_v4  ;;  %v6857_v5 = vsub.s32 0, %v6850_v4 }
 0x121   :  { %1608 = vmatprep.subr.bf16.mxu1 %v5795_v9  ;;  %v6860_v9 = vsub.s32 1, %v6850_v4 }
 0x122   :  { %7489 = vst [vmem:[#allocation37_spill] sm:$0xff] %v6857_v5 }
 0x123   :  { %1566 = vmatpush2.bf16.msra.mxu0 %v5790_v10  ;;  %7490 = vst [vmem:[#allocation38_spill] sm:$0xff] %v6860_v9 }
 0x124   :  { %1609 = vmatpush2.bf16.msra.mxu1 %v5793_v11  ;;  %1567 = vmatprep.subr.bf16.mxu0 %v5798_v12  ;;  %v396_v12 = vrot.slane %v391_v6, %v6857_v5 }
 0x125   :  { %1610 = vmatprep.subr.bf16.mxu1 %v5801_v13 }
 0x127   :  { %1568 = vmatpush2.bf16.msra.mxu0 %v5796_v14 }
 0x128   :  { %1611 = vmatpush2.bf16.msra.mxu1 %v5799_v15  ;;  %1569 = vmatprep.subr.bf16.mxu0 %v5804_v16  ;;  %v400_v15 = vrot.slane %v391_v6, %v6860_v9 }
 0x129   :  { %1612 = vmatprep.subr.bf16.mxu1 %v5807_v17 }
 0x12b   :  { %1570 = vmatpush2.bf16.msra.mxu0 %v5802_v19 }
 0x12c   :  { %1613 = vmatpush2.bf16.msra.mxu1 %v5805_v21  ;;  %1571 = vmatprep.subr.bf16.mxu0 %v5810_v22 }
 0x12d   :  { %1614 = vmatprep.subr.bf16.mxu1 %v5813_v23 }
 0x12f   :  { %1572 = vmatpush2.bf16.msra.mxu0 %v5808_v24  ;;  %v7464_v24 = vsub.s32 2, %v6850_v4 }
 0x130   :  { %1615 = vmatpush2.bf16.msra.mxu1 %v5811_v25  ;;  %1573 = vmatprep.subr.bf16.mxu0 %v5816_v26  ;;  %v7473_v25 = vsub.s32 3, %v6850_v4 }
 0x131   :  { %1616 = vmatprep.subr.bf16.mxu1 %v5819_v27 }
 0x133   :  { %1574 = vmatpush2.bf16.msra.mxu0 %v5814_v28  ;;  %v404_v28 = vrot.slane %v391_v6, %v7464_v24 }
 0x134   :  { %1617 = vmatpush2.bf16.msra.mxu1 %v5817_v29  ;;  %1575 = vmatprep.subr.bf16.mxu0 %v5822_v30 }
 0x135   :  { %1618 = vmatprep.subr.bf16.mxu1 %v5825_v32  ;;  %v408_v32 = vrot.slane %v391_v6, %v7473_v25 }
 0x137   :  { %1576 = vmatpush2.bf16.msra.mxu0 %v5820_v33 }
 0x138   :  { %1619 = vmatpush2.bf16.msra.mxu1 %v5823_v34  ;;  %1823 = vmatprep.subr.bf16.mxu0 %v6716_v35 }
 0x139   :  { %1864 = vmatprep.subr.bf16.mxu1 %v6718_v36 }
 0x13a   :  { %1578 = vmatmul.mubr.bf16.vlgmr.msra.gmra.mxu0 %v6688_v20  ;;  %v6750_v20 = vld [vmem:[#allocation5 + $0x84] ss:$16 sps:$4 sm:$0xff]  }
 0x13b   :  { %1621 = vmatmul.mubr.bf16.vlgmr.msra.gmra.mxu1 %v6710_v31  ;;  %1824 = vmatpush1.bf16.msra.mxu0 %v6720_v37  ;;  %v6752_v31 = vld [vmem:[#allocation5 + $0x8c] ss:$16 sps:$4 sm:$0xff]  }
 0x13c   :  { %1865 = vmatpush1.bf16.msra.mxu1 %v6722_v38  ;;  %1825 = vmatprep.subr.bf16.mxu0 %v6724_v39 }
 0x13d   :  { %1866 = vmatprep.subr.bf16.mxu1 %v6726_v40  ;;  %1855 = vmatprep.mubr.bf16.mxu0 %v7462_v59 }
 0x13e   :  { %1896 = vmatprep.mubr.bf16.mxu1 %v7462_v59 }
 0x13f   :  { %1826 = vmatpush1.bf16.msra.mxu0 %v6730_v41 }
 0x140   :  { %1867 = vmatpush1.bf16.msra.mxu1 %v6732_v42  ;;  %1827 = vmatprep.subr.bf16.mxu0 %v6736_v18 }
 0x141   :  { %1868 = vmatprep.subr.bf16.mxu1 %v6738_v43 }
 0x143   :  { %1828 = vmatpush1.bf16.msra.mxu0 %v6744_v44 }
 0x144   :  { %1869 = vmatpush1.bf16.msra.mxu1 %v6746_v45  ;;  %1829 = vmatprep.subr.bf16.mxu0 %v6750_v20 }
 0x145   :  { %1870 = vmatprep.subr.bf16.mxu1 %v6752_v31 }
 0x147   :  { %1830 = vmatpush1.bf16.msra.mxu0 %v6758_v46 }
 0x148   :  { %1871 = vmatpush1.bf16.msra.mxu1 %v6760_v47  ;;  %1831 = vmatprep.subr.bf16.mxu0 %v6762_v61 }
 0x149   :  { %1872 = vmatprep.subr.bf16.mxu1 %v6764_v48 }
 0x14b   :  { %1832 = vmatpush1.bf16.msra.mxu0 %v6770_v49 }
 0x14c   :  { %1873 = vmatpush1.bf16.msra.mxu1 %v6772_v50  ;;  %1833 = vmatprep.subr.bf16.mxu0 %v6774_v51 }
 0x14d   :  { %1874 = vmatprep.subr.bf16.mxu1 %v6776_v52 }
 0x14f   :  { %1834 = vmatpush1.bf16.msra.mxu0 %v6782_v53 }
 0x150   :  { %1875 = vmatpush1.bf16.msra.mxu1 %v6784_v54  ;;  %1835 = vmatprep.subr.bf16.mxu0 %v6786_v55 }
 0x151   :  { %1876 = vmatprep.subr.bf16.mxu1 %v6788_v56 }
 0x153   :  { %1836 = vmatpush1.bf16.msra.mxu0 %v6794_v57 }
 0x154   :  { %1877 = vmatpush1.bf16.msra.mxu1 %v6796_v58  ;;  %1837 = vmatprep.subr.bf16.mxu0 %v6798_v60 }
 0x155   :  { %1878 = vmatprep.subr.bf16.mxu1 %v6800_v0 }
 0x157   :  { %1838 = vmatpush1.bf16.msra.mxu0 %v6806_v1 }
 0x158   :  { %1879 = vmatpush1.bf16.msra.mxu1 %v6808_v2  ;;  %1934 = vmatprep.subr.bf16.mxu0 %v6716_v35 }
 0x159   :  { %1975 = vmatprep.subr.bf16.mxu1 %v6718_v36 }
 0x15a   :  { %1856 = vmatmul.mubr.bf16.vlgmr.msra.gmra.mxu0 %v7462_v59 }
 0x15b   :  { %1897 = vmatmul.mubr.bf16.vlgmr.msra.gmra.mxu1 %v7462_v59  ;;  %1935 = vmatpush1.bf16.msra.mxu0 %v6720_v37 }
 0x15c   :  { %1976 = vmatpush1.bf16.msra.mxu1 %v6722_v38  ;;  %1936 = vmatprep.subr.bf16.mxu0 %v6724_v39 }
 0x15d   :  { %1977 = vmatprep.subr.bf16.mxu1 %v6726_v40  ;;  %1966 = vmatprep.mubr.bf16.mxu0 %v7462_v59 }
 0x15e   :  { %2007 = vmatprep.mubr.bf16.mxu1 %v7462_v59 }
 0x15f   :  { %1937 = vmatpush1.bf16.msra.mxu0 %v6730_v41 }
 0x160   :  { %1978 = vmatpush1.bf16.msra.mxu1 %v6732_v42  ;;  %1938 = vmatprep.subr.bf16.mxu0 %v6736_v18 }
 0x161   :  { %1979 = vmatprep.subr.bf16.mxu1 %v6738_v43 }
 0x163   :  { %1939 = vmatpush1.bf16.msra.mxu0 %v6744_v44 }
 0x164   :  { %1980 = vmatpush1.bf16.msra.mxu1 %v6746_v45  ;;  %1940 = vmatprep.subr.bf16.mxu0 %v6750_v20 }
 0x165   :  { %1981 = vmatprep.subr.bf16.mxu1 %v6752_v31 }
 0x167   :  { %1941 = vmatpush1.bf16.msra.mxu0 %v6758_v46 }
 0x168   :  { %1982 = vmatpush1.bf16.msra.mxu1 %v6760_v47  ;;  %1942 = vmatprep.subr.bf16.mxu0 %v6762_v61 }
 0x169   :  { %1983 = vmatprep.subr.bf16.mxu1 %v6764_v48 }
 0x16b   :  { %1943 = vmatpush1.bf16.msra.mxu0 %v6770_v49 }
 0x16c   :  { %1984 = vmatpush1.bf16.msra.mxu1 %v6772_v50  ;;  %1944 = vmatprep.subr.bf16.mxu0 %v6774_v51 }
 0x16d   :  { %1985 = vmatprep.subr.bf16.mxu1 %v6776_v52 }
 0x16f   :  { %1945 = vmatpush1.bf16.msra.mxu0 %v6782_v53 }
 0x170   :  { %1986 = vmatpush1.bf16.msra.mxu1 %v6784_v54  ;;  %1946 = vmatprep.subr.bf16.mxu0 %v6786_v55 }
 0x171   :  { %1987 = vmatprep.subr.bf16.mxu1 %v6788_v56 }
 0x173   :  { %1947 = vmatpush1.bf16.msra.mxu0 %v6794_v57 }
 0x174   :  { %1988 = vmatpush1.bf16.msra.mxu1 %v6796_v58  ;;  %1948 = vmatprep.subr.bf16.mxu0 %v6798_v60 }
 0x175   :  { %1989 = vmatprep.subr.bf16.mxu1 %v6800_v0 }
 0x177   :  { %1949 = vmatpush1.bf16.msra.mxu0 %v6806_v1 }
 0x178   :  { %1990 = vmatpush1.bf16.msra.mxu1 %v6808_v2  ;;  %2063 = vmatprep.subr.bf16.mxu0 %v6716_v35 }
 0x179   :  { %2104 = vmatprep.subr.bf16.mxu1 %v6718_v36 }
 0x17a   :  { %v1407_v7 = vpop.f32.mrf.mxu0 }
 0x17b   :  { %v1450_v8 = vpop.f32.mrf.mxu1 }
 0x17c   :  { %v1409_v10 = vpop.f32.mrf.mxu0 }
 0x17d   :  { %v1452_v11 = vpop.f32.mrf.mxu1 }
 0x17e   :  { %v1411_v13 = vpop.f32.mrf.mxu0 }
 0x17f   :  { %v1454_v14 = vpop.f32.mrf.mxu1  ;;  %v1412_v16 = vadd.f32 %v1411_v13, %v396_v12 }
 0x180   :  { %v1413_v17 = vpop.f32.mrf.mxu0 }
 0x181   :  { %v1456_v19 = vpop.f32.mrf.mxu1  ;;  %v1414_v21 = vadd.f32 %v1413_v17, %v400_v15  ;;  %v1455_v22 = vadd.f32 %v1454_v14, %v1412_v16 }
 0x183   :  { %v1457_v23 = vadd.f32 %v1456_v19, %v1414_v21 }
 0x1ba   :  { %v1493_v26 = vpop.f32.mrf.mxu0 }
 0x1bb   :  { %v1536_v27 = vpop.f32.mrf.mxu1 }
 0x1bc   :  { %v1495_v29 = vpop.f32.mrf.mxu0 }
 0x1bd   :  { %v1538_v30 = vpop.f32.mrf.mxu1 }
 0x1be   :  { %v1497_v33 = vpop.f32.mrf.mxu0 }
 0x1bf   :  { %v1540_v34 = vpop.f32.mrf.mxu1  ;;  %v6870_v3 = vadd.f32 %v1497_v33, %v1455_v22  ;;  %v1408_v33 = vadd.f32 %v1407_v7, %v396_v12  ;;  %v1537_v12 = vadd.f32 %v1536_v27, %v404_v28 }
 0x1c0   :  { %v1541_v13 = vadd.f32 %v1540_v34, %v404_v28  ;;  %v1499_v14 = vpop.f32.mrf.mxu0  ;;  %v1410_v34 = vadd.f32 %v1409_v10, %v400_v15 }
 0x1c1   :  { %7491 = vst [vmem:[#allocation39_spill] sm:$0xff] %v6870_v3  ;;  %v1542_v16 = vpop.f32.mrf.mxu1  ;;  %v6872_v17 = vadd.f32 %v1499_v14, %v1457_v23  ;;  %v1451_v3 = vadd.f32 %v1450_v8, %v1408_v33 }
 0x1c2   :  { %v1543_v19 = vadd.f32 %v1542_v16, %v408_v32  ;;  %v1453_v23 = vadd.f32 %v1452_v11, %v1410_v34 }
 0x1c3   :  { %7492 = vst [vmem:[#allocation40_spill] sm:$0xff] %v6872_v17  ;;  %v6878_v14 = vadd.f32 %v1493_v26, %v1451_v3 }
 0x1c4   :  { %v6880_v35 = vadd.f32 %v1495_v29, %v1453_v23 }
 0x1fa   :  { %v1579_v21 = vpop.f32.mrf.mxu0 }
 0x1fb   :  { %v1622_v59 = vpop.f32.mrf.mxu1  ;;  %v1580_v26 = vadd.f32 %v1579_v21, %v1537_v12 }
 0x1fc   :  { %v1581_v63 = vpop.f32.mrf.mxu0 }
 0x1fd   :  { %v1624_v62 = vpop.f32.mrf.mxu1  ;;  %v6887_v3 = vadd.f32 %v1622_v59, %v1580_v26 }
 0x1fe   :  { %v1583_v24 = vpop.f32.mrf.mxu0 }
 0x1ff   :  { %v1626_v9 = vpop.f32.mrf.mxu1  ;;  %v1584_v5 = vadd.f32 %v1583_v24, %v1541_v13 }
 0x200   :  { %v1585_v36 = vpop.f32.mrf.mxu0 }
 0x201   :  { %v1628_v4 = vpop.f32.mrf.mxu1  ;;  %v1586_v6 = vadd.f32 %v1585_v36, %v1543_v19  ;;  %v6874_v25 = vadd.f32 %v1626_v9, %v1584_v5  ;;  %v1539_v5 = vadd.f32 %v1538_v30, %v408_v32 }
 0x203   :  { %v6876_v22 = vadd.f32 %v1628_v4, %v1586_v6  ;;  %v1582_v8 = vadd.f32 %v1581_v63, %v1539_v5  ;;  %v7495_v5 = vld [vmem:[#allocation35_spill] sm:$0xff] }
 0x205   :  { %v6884_v15 = vadd.f32 %v1624_v62, %v1582_v8 }
 0x21a   :  { %v1857_v16 = vpop.f32.mrf.mxu0 }
 0x21b   :  { %v1898_v17 = vpop.f32.mrf.mxu1  ;;  %v1905_v2 = vadd.f32 %v1857_v16, %v6878_v14 }
 0x21c   :  { %v1859_v24 = vpop.f32.mrf.mxu0  ;;  %v1907_v30 = vadd.f32 %v1898_v17, %v6887_v3 }
 0x21d   :  { %v1900_v13 = vpop.f32.mrf.mxu1  ;;  %v5143_v1 = vmul.f32 -1.442695, %v1905_v2  ;;  %v1906_v36 = vadd.f32 %v1859_v24, %v6880_v35 }
 0x21e   :  { %v1861_v4 = vpop.f32.mrf.mxu0  ;;  %v1908_v29 = vadd.f32 %v1900_v13, %v6884_v15  ;;  %v7493_v13 = vmov 0  }
 0x21f   :  { %v1902_v9 = vpop.f32.mrf.mxu1  ;;  %6018 = vpow2.f32 %v5143_v1  ;;  %v5144_v7 = vmul.f32 -1.442695, %v1906_v36  ;;  %v7494_v36 = vld [vmem:[#allocation34_spill] sm:$0xff]  ;;  %v7496_v4 = vld [vmem:[#allocation32_spill] sm:$0xff] }
 0x220   :  { %v1862_v10 = vpop.f32.mrf.mxu0  ;;  %v5145_v2 = vmul.f32 -1.442695, %v1908_v29  ;;  %v7497_v9 = vld [vmem:[#allocation33_spill] sm:$0xff] }
 0x221   :  { %v1903_v11 = vpop.f32.mrf.mxu1  ;;  %6020 = vpow2.f32 %v5144_v7 }
 0x222   :  { %6022 = vpow2.f32 %v5145_v2 }
 0x22c   :  { %v6019_v19 = vpop.eup %6018 }
 0x22d   :  { %v1912_v32 = vadd.f32 1.0, %v6019_v19 }
 0x22e   :  { %v6021_v6 = vpop.eup %6020 }
 0x22f   :  { %6024 = vrcp.f32 %v1912_v32  ;;  %v1918_v63 = vadd.f32 1.0, %v6021_v6  ;;  %v6023_v1 = vpop.eup %6022 }
 0x230   :  { %6026 = vtanh.f32 %v1907_v30  ;;  %v1925_v21 = vadd.f32 1.0, %v6023_v1 }
 0x231   :  { %6028 = vrcp.f32 %v1918_v63 }
 0x232   :  { %6030 = vrcp.f32 %v1925_v21 }
 0x23c   :  { %v6025_v27 = vpop.eup %6024 }
 0x23d   :  { %v6027_v62 = vpop.eup %6026 }
 0x23e   :  { %v6029_v28 = vpop.eup %6028  ;;  %v1929_v34 = vmul.f32 %v6027_v62, %v6025_v27 }
 0x23f   :  { %v1928_v33 = vmul.f32 0.0, %v6029_v28  ;;  %v6031_v17 = vpop.eup %6030 }
 0x241   :  { %v6890_v59 = vadd.f32 %v1929_v34, %v1928_v33 }
 0x243   :  { %6032 = vtanh.f32 %v6890_v59 }
 0x250   :  { %v6033_v23 = vpop.eup %6032 }
 0x251   :  { %v6893_v16 = vmul.f32 %v6033_v23, %v6031_v17 }
 0x253   :  { %v1933_v24 = vpack.c.bf16 %v6893_v16, %v6893_v16 }
 0x255   :  { %1967 = vmatmul.mubr.bf16.vlgmr.msra.gmra.mxu0 %v1933_v24  ;;  %2008 = vmatmul.mubr.bf16.vlgmr.msra.gmra.mxu1 %v1933_v24 }
 0x256   :  { %2064 = vmatpush1.bf16.msra.mxu0 %v6720_v37  ;;  %2105 = vmatpush1.bf16.msra.mxu1 %v6722_v38 }
 0x257   :  { %2065 = vmatprep.subr.bf16.mxu0 %v6724_v39  ;;  %2106 = vmatprep.subr.bf16.mxu1 %v6726_v40 }
 0x258   :  { %2095 = vmatprep.mubr.bf16.mxu0 %v7493_v13  ;;  %2136 = vmatprep.mubr.bf16.mxu1 %v7493_v13 }
 0x25a   :  { %2066 = vmatpush1.bf16.msra.mxu0 %v6730_v41  ;;  %2107 = vmatpush1.bf16.msra.mxu1 %v6732_v42 }
 0x25b   :  { %2067 = vmatprep.subr.bf16.mxu0 %v6736_v18  ;;  %2108 = vmatprep.subr.bf16.mxu1 %v6738_v43 }
 0x25e   :  { %2068 = vmatpush1.bf16.msra.mxu0 %v6744_v44  ;;  %2109 = vmatpush1.bf16.msra.mxu1 %v6746_v45 }
 0x25f   :  { %2069 = vmatprep.subr.bf16.mxu0 %v6750_v20  ;;  %2110 = vmatprep.subr.bf16.mxu1 %v6752_v31 }
 0x262   :  { %2070 = vmatpush1.bf16.msra.mxu0 %v6758_v46  ;;  %2111 = vmatpush1.bf16.msra.mxu1 %v6760_v47 }
 0x263   :  { %2071 = vmatprep.subr.bf16.mxu0 %v6762_v61  ;;  %2112 = vmatprep.subr.bf16.mxu1 %v6764_v48 }
 0x266   :  { %2072 = vmatpush1.bf16.msra.mxu0 %v6770_v49  ;;  %2113 = vmatpush1.bf16.msra.mxu1 %v6772_v50 }
 0x267   :  { %2073 = vmatprep.subr.bf16.mxu0 %v6774_v51  ;;  %2114 = vmatprep.subr.bf16.mxu1 %v6776_v52 }
 0x26a   :  { %2074 = vmatpush1.bf16.msra.mxu0 %v6782_v53  ;;  %2115 = vmatpush1.bf16.msra.mxu1 %v6784_v54 }
 0x26b   :  { %2075 = vmatprep.subr.bf16.mxu0 %v6786_v55  ;;  %2116 = vmatprep.subr.bf16.mxu1 %v6788_v56 }
 0x26e   :  { %2076 = vmatpush1.bf16.msra.mxu0 %v6794_v57  ;;  %2117 = vmatpush1.bf16.msra.mxu1 %v6796_v58 }
 0x26f   :  { %2077 = vmatprep.subr.bf16.mxu0 %v6798_v60  ;;  %2118 = vmatprep.subr.bf16.mxu1 %v6800_v0 }
 0x272   :  { %2078 = vmatpush1.bf16.msra.mxu0 %v7494_v36  ;;  %2119 = vmatpush1.bf16.msra.mxu1 %v7495_v5 }
 0x273   :  { %2192 = vmatprep.subr.bf16.mxu0 %v7496_v4  ;;  %2233 = vmatprep.subr.bf16.mxu1 %v7497_v9 }
 0x315   :  { %v1968_v7 = vpop.f32.mrf.mxu0  ;;  %v2009_v8 = vpop.f32.mrf.mxu1 }
 0x316   :  { %v2020_v10 = vrot.slane %v1968_v7, 6  ;;  %v2022_v28 = vrot.slane %v2009_v8, 6 }
 0x317   :  { %v1970_v11 = vpop.f32.mrf.mxu0  ;;  %v2011_v12 = vpop.f32.mrf.mxu1 }
 0x318   :  { %v2028_v26 = vadd.f32 %v2020_v10, %v6878_v14  ;;  %v2021_v29 = vrot.slane %v1970_v11, 6  ;;  %v2023_v27 = vrot.slane %v2011_v12, 6  ;;  %v2030_v34 = vadd.f32 %v2022_v28, %v6887_v3 }
 0x319   :  { %v1972_v2 = vpop.f32.mrf.mxu0  ;;  %v2013_v19 = vpop.f32.mrf.mxu1 }
 0x31a   :  { %v5146_v30 = vmul.f32 -1.442695, %v2028_v26  ;;  %v2029_v32 = vadd.f32 %v2021_v29, %v6880_v35  ;;  %v2031_v62 = vadd.f32 %v2023_v27, %v6884_v15  ;;  %v2052_v26 = vrot.slane %v6890_v59, 6 }
 0x31b   :  { %v1973_v6 = vpop.f32.mrf.mxu0  ;;  %v2014_v63 = vpop.f32.mrf.mxu1 }
 0x31c   :  { %6034 = vpow2.f32 %v5146_v30  ;;  %v5147_v1 = vmul.f32 -1.442695, %v2029_v32  ;;  %v5148_v21 = vmul.f32 -1.442695, %v2031_v62 }
 0x31e   :  { %6036 = vpow2.f32 %v5147_v1 }
 0x31f   :  { %6038 = vpow2.f32 %v5148_v21 }
 0x329   :  { %v6035_v33 = vpop.eup %6034 }
 0x32a   :  { %v2035_v17 = vadd.f32 1.0, %v6035_v33 }
 0x32b   :  { %v6037_v23 = vpop.eup %6036 }
 0x32c   :  { %6040 = vrcp.f32 %v2035_v17  ;;  %v2041_v24 = vadd.f32 1.0, %v6037_v23  ;;  %v6039_v7 = vpop.eup %6038 }
 0x32d   :  { %6042 = vtanh.f32 %v2030_v34  ;;  %v2048_v29 = vadd.f32 1.0, %v6039_v7 }
 0x32e   :  { %6044 = vrcp.f32 %v2041_v24 }
 0x32f   :  { %6046 = vrcp.f32 %v2048_v29 }
 0x339   :  { %v6041_v10 = vpop.eup %6040 }
 0x33a   :  { %v6043_v11 = vpop.eup %6042 }
 0x33b   :  { %v6045_v12 = vpop.eup %6044  ;;  %v2055_v2 = vmul.f32 %v6043_v11, %v6041_v10 }
 0x33c   :  { %v2054_v8 = vmul.f32 %v6045_v12, %v2052_v26  ;;  %v6047_v30 = vpop.eup %6046 }
 0x33e   :  { %v6936_v19 = vadd.f32 %v2055_v2, %v2054_v8 }
 0x340   :  { %6048 = vtanh.f32 %v6936_v19 }
 0x34d   :  { %v6049_v32 = vpop.eup %6048 }
 0x34e   :  { %v6939_v6 = vmul.f32 %v6049_v32, %v6047_v30 }
 0x350   :  { %v2059_v63 = vpack.c.bf16 %v6939_v6, %v6939_v6 }
 0x352   :  { %v2061_v1 = vrot.slane %v2059_v63, 1 }
 0x354   :  { %2096 = vmatmul.mubr.bf16.vlgmr.msra.gmra.mxu0 %v2061_v1  ;;  %2137 = vmatmul.mubr.bf16.vlgmr.msra.gmra.mxu1 %v2061_v1 }
 0x355   :  { %2193 = vmatpush1.bf16.msra.mxu0 %v6720_v37  ;;  %2234 = vmatpush1.bf16.msra.mxu1 %v6722_v38 }
 0x356   :  { %2194 = vmatprep.subr.bf16.mxu0 %v6724_v39  ;;  %2235 = vmatprep.subr.bf16.mxu1 %v6726_v40 }
 0x357   :  { %2224 = vmatprep.mubr.bf16.mxu0 %v7493_v13  ;;  %2265 = vmatprep.mubr.bf16.mxu1 %v7493_v13 }
 0x359   :  { %2195 = vmatpush1.bf16.msra.mxu0 %v6730_v41  ;;  %2236 = vmatpush1.bf16.msra.mxu1 %v6732_v42 }
 0x35a   :  { %2196 = vmatprep.subr.bf16.mxu0 %v6736_v18  ;;  %2237 = vmatprep.subr.bf16.mxu1 %v6738_v43 }
 0x35d   :  { %2197 = vmatpush1.bf16.msra.mxu0 %v6744_v44  ;;  %2238 = vmatpush1.bf16.msra.mxu1 %v6746_v45 }
 0x35e   :  { %2198 = vmatprep.subr.bf16.mxu0 %v6750_v20  ;;  %2239 = vmatprep.subr.bf16.mxu1 %v6752_v31 }
 0x361   :  { %2199 = vmatpush1.bf16.msra.mxu0 %v6758_v46  ;;  %2240 = vmatpush1.bf16.msra.mxu1 %v6760_v47 }
 0x362   :  { %2200 = vmatprep.subr.bf16.mxu0 %v6762_v61  ;;  %2241 = vmatprep.subr.bf16.mxu1 %v6764_v48 }
 0x365   :  { %2201 = vmatpush1.bf16.msra.mxu0 %v6770_v49  ;;  %2242 = vmatpush1.bf16.msra.mxu1 %v6772_v50 }
 0x366   :  { %2202 = vmatprep.subr.bf16.mxu0 %v6774_v51  ;;  %2243 = vmatprep.subr.bf16.mxu1 %v6776_v52 }
 0x369   :  { %2203 = vmatpush1.bf16.msra.mxu0 %v6782_v53  ;;  %2244 = vmatpush1.bf16.msra.mxu1 %v6784_v54 }
 0x36a   :  { %2204 = vmatprep.subr.bf16.mxu0 %v6786_v55  ;;  %2245 = vmatprep.subr.bf16.mxu1 %v6788_v56 }
 0x36d   :  { %2205 = vmatpush1.bf16.msra.mxu0 %v6794_v57  ;;  %2246 = vmatpush1.bf16.msra.mxu1 %v6796_v58 }
 0x36e   :  { %2206 = vmatprep.subr.bf16.mxu0 %v6798_v60  ;;  %2247 = vmatprep.subr.bf16.mxu1 %v6800_v0 }
 0x371   :  { %2207 = vmatpush1.bf16.msra.mxu0 %v7494_v36  ;;  %2248 = vmatpush1.bf16.msra.mxu1 %v7495_v5 }
 0x372   :  { %2321 = vmatprep.subr.bf16.mxu0 %v7496_v4  ;;  %2362 = vmatprep.subr.bf16.mxu1 %v7497_v9 }
 0x414   :  { %v2097_v59 = vpop.f32.mrf.mxu0  ;;  %v2138_v27 = vpop.f32.mrf.mxu1 }
 0x415   :  { %v2149_v62 = vrot.slane %v2097_v59, 4  ;;  %v2151_v12 = vrot.slane %v2138_v27, 4 }
 0x416   :  { %v2099_v28 = vpop.f32.mrf.mxu0  ;;  %v2140_v21 = vpop.f32.mrf.mxu1 }
 0x417   :  { %v2157_v33 = vadd.f32 %v2149_v62, %v6878_v14  ;;  %v2150_v34 = vrot.slane %v2099_v28, 4  ;;  %v2152_v4 = vrot.slane %v2140_v21, 4  ;;  %v2159_v8 = vadd.f32 %v2151_v12, %v6887_v3 }
 0x418   :  { %v2101_v17 = vpop.f32.mrf.mxu0  ;;  %v2142_v23 = vpop.f32.mrf.mxu1  ;;  %v2181_v28 = vrot.slane %v6936_v19, 6 }
 0x419   :  { %v5149_v24 = vmul.f32 -1.442695, %v2157_v33  ;;  %v2158_v7 = vadd.f32 %v2150_v34, %v6880_v35  ;;  %v2160_v9 = vadd.f32 %v2152_v4, %v6884_v15 }
 0x41a   :  { %v2102_v10 = vpop.f32.mrf.mxu0  ;;  %v2143_v11 = vpop.f32.mrf.mxu1 }
 0x41b   :  { %6050 = vpow2.f32 %v5149_v24  ;;  %v5150_v26 = vmul.f32 -1.442695, %v2158_v7  ;;  %v5151_v29 = vmul.f32 -1.442695, %v2160_v9 }
 0x41d   :  { %6052 = vpow2.f32 %v5150_v26 }
 0x41e   :  { %6054 = vpow2.f32 %v5151_v29 }
 0x428   :  { %v6051_v2 = vpop.eup %6050 }
 0x429   :  { %v2164_v30 = vadd.f32 1.0, %v6051_v2 }
 0x42a   :  { %v6053_v32 = vpop.eup %6052 }
 0x42b   :  { %6056 = vrcp.f32 %v2164_v30  ;;  %v2170_v63 = vadd.f32 1.0, %v6053_v32  ;;  %v6055_v1 = vpop.eup %6054 }
 0x42c   :  { %6058 = vtanh.f32 %v2159_v8  ;;  %v2177_v33 = vadd.f32 1.0, %v6055_v1 }
 0x42d   :  { %6060 = vrcp.f32 %v2170_v63 }
 0x42e   :  { %6062 = vrcp.f32 %v2177_v33 }
 0x438   :  { %v6057_v59 = vpop.eup %6056 }
 0x439   :  { %v6059_v62 = vpop.eup %6058 }
 0x43a   :  { %v6061_v21 = vpop.eup %6060  ;;  %v2184_v34 = vmul.f32 %v6059_v62, %v6057_v59 }
 0x43b   :  { %v2183_v27 = vmul.f32 %v6061_v21, %v2181_v28  ;;  %v6063_v23 = vpop.eup %6062 }
 0x43d   :  { %v6982_v17 = vadd.f32 %v2184_v34, %v2183_v27 }
 0x43f   :  { %6064 = vtanh.f32 %v6982_v17  ;;  %v2310_v63 = vrot.slane %v6982_v17, 6  ;;  %v7039_v17 = vld [vmem:[#allocation5 + $0xe0] ss:$16 sps:$4 sm:$0xff]  }
 0x44c   :  { %v6065_v24 = vpop.eup %6064 }
 0x44d   :  { %v6985_v7 = vmul.f32 %v6065_v24, %v6063_v23  ;;  %v7042_v23 = vld [vmem:[#allocation5 + $0xe8] ss:$16 sps:$4 sm:$0xff]   ;;  %v7045_v24 = vld [vmem:[#allocation5 + $0xc4] ss:$16 sps:$4 sm:$0xff]  }
 0x44f   :  { %v2188_v10 = vpack.c.bf16 %v6985_v7, %v6985_v7 }
 0x451   :  { %v2190_v11 = vrot.slane %v2188_v10, 2  ;;  %v7048_v10 = vld [vmem:[#allocation5 + $0xcc] ss:$16 sps:$4 sm:$0xff]  }
 0x453   :  { %2225 = vmatmul.mubr.bf16.vlgmr.msra.gmra.mxu0 %v2190_v11  ;;  %2266 = vmatmul.mubr.bf16.vlgmr.msra.gmra.mxu1 %v2190_v11  ;;  %v7053_v11 = vld [vmem:[#allocation5 + $0xc0] ss:$16 sps:$4 sm:$0xff]  }
 0x454   :  { %2322 = vmatpush1.bf16.msra.mxu0 %v6720_v37  ;;  %2363 = vmatpush1.bf16.msra.mxu1 %v6722_v38  ;;  %v7021_v37 = vld [vmem:[#allocation5 + $0xe4] ss:$16 sps:$4 sm:$0xff]   ;;  %v7024_v38 = vld [vmem:[#allocation5 + $0xec] ss:$16 sps:$4 sm:$0xff]  }
 0x455   :  { %2323 = vmatprep.subr.bf16.mxu0 %v6724_v39  ;;  %2364 = vmatprep.subr.bf16.mxu1 %v6726_v40 }
 0x456   :  { %2353 = vmatprep.mubr.bf16.mxu0 %v7493_v13  ;;  %2394 = vmatprep.mubr.bf16.mxu1 %v7493_v13 }
 0x458   :  { %2324 = vmatpush1.bf16.msra.mxu0 %v6730_v41  ;;  %2365 = vmatpush1.bf16.msra.mxu1 %v6732_v42 }
 0x459   :  { %2325 = vmatprep.subr.bf16.mxu0 %v6736_v18  ;;  %2366 = vmatprep.subr.bf16.mxu1 %v6738_v43 }
 0x45c   :  { %2326 = vmatpush1.bf16.msra.mxu0 %v6744_v44  ;;  %2367 = vmatpush1.bf16.msra.mxu1 %v6746_v45 }
 0x45d   :  { %2327 = vmatprep.subr.bf16.mxu0 %v6750_v20  ;;  %2368 = vmatprep.subr.bf16.mxu1 %v6752_v31 }
 0x460   :  { %2328 = vmatpush1.bf16.msra.mxu0 %v6758_v46  ;;  %2369 = vmatpush1.bf16.msra.mxu1 %v6760_v47 }
 0x461   :  { %2329 = vmatprep.subr.bf16.mxu0 %v6762_v61  ;;  %2370 = vmatprep.subr.bf16.mxu1 %v6764_v48 }
 0x464   :  { %2330 = vmatpush1.bf16.msra.mxu0 %v6770_v49  ;;  %2371 = vmatpush1.bf16.msra.mxu1 %v6772_v50 }
 0x465   :  { %2331 = vmatprep.subr.bf16.mxu0 %v6774_v51  ;;  %2372 = vmatprep.subr.bf16.mxu1 %v6776_v52 }
 0x468   :  { %2332 = vmatpush1.bf16.msra.mxu0 %v6782_v53  ;;  %2373 = vmatpush1.bf16.msra.mxu1 %v6784_v54 }
 0x469   :  { %2333 = vmatprep.subr.bf16.mxu0 %v6786_v55  ;;  %2374 = vmatprep.subr.bf16.mxu1 %v6788_v56 }
 0x46c   :  { %2334 = vmatpush1.bf16.msra.mxu0 %v6794_v57  ;;  %2375 = vmatpush1.bf16.msra.mxu1 %v6796_v58 }
 0x46d   :  { %2335 = vmatprep.subr.bf16.mxu0 %v6798_v60  ;;  %2376 = vmatprep.subr.bf16.mxu1 %v6800_v0 }
 0x470   :  { %2336 = vmatpush1.bf16.msra.mxu0 %v7494_v36  ;;  %2377 = vmatpush1.bf16.msra.mxu1 %v7495_v5 }
 0x471   :  { %2435 = vmatprep.subr.bf16.mxu0 %v7021_v37  ;;  %2476 = vmatprep.subr.bf16.mxu1 %v7024_v38 }
 0x513   :  { %v2226_v39 = vpop.f32.mrf.mxu0  ;;  %v2267_v40 = vpop.f32.mrf.mxu1 }
 0x514   :  { %v2278_v41 = vrot.slane %v2226_v39, 2  ;;  %v2280_v4 = vrot.slane %v2267_v40, 2  ;;  %v7056_v39 = vld [vmem:[#allocation5 + $0xc8] ss:$16 sps:$4 sm:$0xff]   ;;  %v7059_v40 = vld [vmem:[#allocation5 + $0xa4] ss:$16 sps:$4 sm:$0xff]  }
 0x515   :  { %v2228_v42 = vpop.f32.mrf.mxu0  ;;  %v2269_v18 = vpop.f32.mrf.mxu1 }
 0x516   :  { %v2286_v43 = vadd.f32 %v2278_v41, %v6878_v14  ;;  %v2279_v44 = vrot.slane %v2228_v42, 2  ;;  %v2281_v19 = vrot.slane %v2269_v18, 2  ;;  %v2288_v29 = vadd.f32 %v2280_v4, %v6887_v3  ;;  %v7062_v41 = vld [vmem:[#allocation5 + $0xac] ss:$16 sps:$4 sm:$0xff]   ;;  %v7065_v42 = vld [vmem:[#allocation5 + $0xa0] ss:$16 sps:$4 sm:$0xff]  }
 0x517   :  { %v2230_v45 = vpop.f32.mrf.mxu0  ;;  %v2271_v20 = vpop.f32.mrf.mxu1  ;;  %v7068_v18 = vld [vmem:[#allocation5 + $0xa8] ss:$16 sps:$4 sm:$0xff]  }
 0x518   :  { %v5152_v31 = vmul.f32 -1.442695, %v2286_v43  ;;  %v2287_v46 = vadd.f32 %v2279_v44, %v6880_v35  ;;  %v2289_v26 = vadd.f32 %v2281_v19, %v6884_v15  ;;  %v7071_v43 = vld [vmem:[#allocation5 + $0x84] ss:$16 sps:$4 sm:$0xff]   ;;  %v7074_v44 = vld [vmem:[#allocation5 + $0x8c] ss:$16 sps:$4 sm:$0xff]  }
 0x519   :  { %v2231_v47 = vpop.f32.mrf.mxu0  ;;  %v2272_v61 = vpop.f32.mrf.mxu1  ;;  %v7077_v45 = vld [vmem:[#allocation5 + $0x80] ss:$16 sps:$4 sm:$0xff]   ;;  %v7080_v20 = vld [vmem:[#allocation5 + $0x88] ss:$16 sps:$4 sm:$0xff]  }
 0x51a   :  { %6066 = vpow2.f32 %v5152_v31  ;;  %v5153_v48 = vmul.f32 -1.442695, %v2287_v46  ;;  %v5154_v9 = vmul.f32 -1.442695, %v2289_v26  ;;  %v7083_v31 = vld [vmem:[#allocation5 + $0x64] ss:$16 sps:$4 sm:$0xff]  }
 0x51b   :  { %v7086_v46 = vld [vmem:[#allocation5 + $0x6c] ss:$16 sps:$4 sm:$0xff]  }
 0x51c   :  { %6068 = vpow2.f32 %v5153_v48 }
 0x51d   :  { %6070 = vpow2.f32 %v5154_v9 }
 0x527   :  { %v6067_v12 = vpop.eup %6066 }
 0x528   :  { %v2293_v14 = vadd.f32 1.0, %v6067_v12 }
 0x529   :  { %v6069_v2 = vpop.eup %6068 }
 0x52a   :  { %6072 = vrcp.f32 %v2293_v14  ;;  %v2299_v8 = vadd.f32 1.0, %v6069_v2  ;;  %v6071_v35 = vpop.eup %6070 }
 0x52b   :  { %6074 = vtanh.f32 %v2288_v29  ;;  %v2306_v59 = vadd.f32 1.0, %v6071_v35 }
 0x52c   :  { %6076 = vrcp.f32 %v2299_v8 }
 0x52d   :  { %6078 = vrcp.f32 %v2306_v59 }
 0x537   :  { %v6073_v30 = vpop.eup %6072 }
 0x538   :  { %v6075_v32 = vpop.eup %6074 }
 0x539   :  { %v6077_v1 = vpop.eup %6076  ;;  %v2313_v15 = vmul.f32 %v6075_v32, %v6073_v30 }
 0x53a   :  { %v2312_v62 = vmul.f32 %v6077_v1, %v2310_v63  ;;  %v6079_v3 = vpop.eup %6078 }
 0x53c   :  { %v7032_v28 = vadd.f32 %v2313_v15, %v2312_v62 }
 0x53e   :  { %6080 = vtanh.f32 %v7032_v28  ;;  %v2427_v2 = vrot.slane %v7032_v28, 6  ;;  %v7135_v28 = vld [vmem:[#allocation5 + $0x60] ss:$16 sps:$4 sm:$0xff]  }
 0x54b   :  { %v6081_v21 = vpop.eup %6080 }
 0x54c   :  { %v7035_v33 = vmul.f32 %v6081_v21, %v6079_v3  ;;  %v7138_v3 = vld [vmem:[#allocation5 + $0x68] ss:$16 sps:$4 sm:$0xff]   ;;  %v7141_v21 = vld [vmem:[#allocation5 + $0x44] ss:$16 sps:$4 sm:$0xff]  }
 0x54e   :  { %v2317_v34 = vpack.c.bf16 %v7035_v33, %v7035_v33 }
 0x550   :  { %v2319_v27 = vrot.slane %v2317_v34, 3  ;;  %v7144_v34 = vld [vmem:[#allocation5 + $0x4c] ss:$16 sps:$4 sm:$0xff]  }
 0x552   :  { %2354 = vmatmul.mubr.bf16.vlgmr.msra.gmra.mxu0 %v2319_v27  ;;  %2395 = vmatmul.mubr.bf16.vlgmr.msra.gmra.mxu1 %v2319_v27  ;;  %v7147_v27 = vld [vmem:[#allocation5 + $0x40] ss:$16 sps:$4 sm:$0xff]  }
 0x553   :  { %2436 = vmatpush1.bf16.msra.mxu0 %v7039_v17  ;;  %2477 = vmatpush1.bf16.msra.mxu1 %v7042_v23 }
 0x554   :  { %2437 = vmatprep.subr.bf16.mxu0 %v7045_v24  ;;  %2478 = vmatprep.subr.bf16.mxu1 %v7048_v10 }
 0x555   :  { %2467 = vmatprep.mubr.bf16.mxu0 %v7493_v13  ;;  %2508 = vmatprep.mubr.bf16.mxu1 %v7493_v13 }
 0x557   :  { %2438 = vmatpush1.bf16.msra.mxu0 %v7053_v11  ;;  %2479 = vmatpush1.bf16.msra.mxu1 %v7056_v39 }
 0x558   :  { %2439 = vmatprep.subr.bf16.mxu0 %v7059_v40  ;;  %2480 = vmatprep.subr.bf16.mxu1 %v7062_v41 }
 0x55b   :  { %2440 = vmatpush1.bf16.msra.mxu0 %v7065_v42  ;;  %2481 = vmatpush1.bf16.msra.mxu1 %v7068_v18 }
 0x55c   :  { %2441 = vmatprep.subr.bf16.mxu0 %v7071_v43  ;;  %2482 = vmatprep.subr.bf16.mxu1 %v7074_v44 }
 0x55f   :  { %2442 = vmatpush1.bf16.msra.mxu0 %v7077_v45  ;;  %2483 = vmatpush1.bf16.msra.mxu1 %v7080_v20 }
 0x560   :  { %2443 = vmatprep.subr.bf16.mxu0 %v7083_v31  ;;  %2484 = vmatprep.subr.bf16.mxu1 %v7086_v46 }
 0x563   :  { %2444 = vmatpush1.bf16.msra.mxu0 %v6770_v49  ;;  %2485 = vmatpush1.bf16.msra.mxu1 %v6772_v50 }
 0x564   :  { %2445 = vmatprep.subr.bf16.mxu0 %v6774_v51  ;;  %2486 = vmatprep.subr.bf16.mxu1 %v6776_v52  ;;  %v7498_v51 = vld [vmem:[#allocation39_spill] sm:$0xff] }
 0x567   :  { %2446 = vmatpush1.bf16.msra.mxu0 %v6782_v53  ;;  %2487 = vmatpush1.bf16.msra.mxu1 %v6784_v54 }
 0x568   :  { %2447 = vmatprep.subr.bf16.mxu0 %v6786_v55  ;;  %2488 = vmatprep.subr.bf16.mxu1 %v6788_v56  ;;  %v7499_v56 = vld [vmem:[#allocation40_spill] sm:$0xff] }
 0x56b   :  { %2448 = vmatpush1.bf16.msra.mxu0 %v6794_v57  ;;  %2489 = vmatpush1.bf16.msra.mxu1 %v6796_v58 }
 0x56c   :  { %2449 = vmatprep.subr.bf16.mxu0 %v6798_v60  ;;  %2490 = vmatprep.subr.bf16.mxu1 %v6800_v0 }
 0x56f   :  { %2450 = vmatpush1.bf16.msra.mxu0 %v7494_v36  ;;  %2491 = vmatpush1.bf16.msra.mxu1 %v7495_v5 }
 0x570   :  { %2564 = vmatprep.subr.bf16.mxu0 %v7021_v37  ;;  %2605 = vmatprep.subr.bf16.mxu1 %v7024_v38 }
 0x612   :  { %v2355_v49 = vpop.f32.mrf.mxu0  ;;  %v2396_v50 = vpop.f32.mrf.mxu1 }
 0x613   :  { %v2403_v52 = vadd.f32 %v2355_v49, %v7498_v51  ;;  %v2405_v19 = vadd.f32 %v2396_v50, %v6874_v25  ;;  %v7150_v49 = vld [vmem:[#allocation5 + $0x48] ss:$16 sps:$4 sm:$0xff]   ;;  %v7153_v50 = vld [vmem:[#allocation5 + $0x24] ss:$16 sps:$4 sm:$0xff]  }
 0x614   :  { %v2357_v53 = vpop.f32.mrf.mxu0  ;;  %v2398_v54 = vpop.f32.mrf.mxu1 }
 0x615   :  { %v5155_v55 = vmul.f32 -1.442695, %v2403_v52  ;;  %v2404_v57 = vadd.f32 %v2357_v53, %v7499_v56  ;;  %v2406_v5 = vadd.f32 %v2398_v54, %v6876_v22  ;;  %v7156_v52 = vld [vmem:[#allocation5 + $0x2c] ss:$16 sps:$4 sm:$0xff]   ;;  %v7159_v53 = vld [vmem:[#allocation5 + $0x20] ss:$16 sps:$4 sm:$0xff]  }
 0x616   :  { %v2359_v58 = vpop.f32.mrf.mxu0  ;;  %v2400_v60 = vpop.f32.mrf.mxu1  ;;  %v7162_v54 = vld [vmem:[#allocation5 + $0x28] ss:$16 sps:$4 sm:$0xff]  }
 0x617   :  { %6082 = vpow2.f32 %v5155_v55  ;;  %v5156_v0 = vmul.f32 -1.442695, %v2404_v57  ;;  %v5157_v61 = vmul.f32 -1.442695, %v2406_v5  ;;  %v7165_v55 = vld [vmem:[#allocation5 + $0x4] ss:$16 sps:$4 sm:$0xff]  }
 0x618   :  { %v2360_v36 = vpop.f32.mrf.mxu0  ;;  %v2401_v47 = vpop.f32.mrf.mxu1  ;;  %v7168_v57 = vld [vmem:[#allocation5 + $0xc] ss:$16 sps:$4 sm:$0xff]   ;;  %v7171_v58 = vld [vmem:[#allocation5] ss:$16 sps:$4 sm:$0xff]   ;;  %v7174_v60 = vld [vmem:[#allocation5 + $0x8] ss:$16 sps:$4 sm:$0xff]  }
 0x619   :  { %6084 = vpow2.f32 %v5156_v0 }
 0x61a   :  { %6086 = vpow2.f32 %v5157_v61 }
 0x624   :  { %v6083_v48 = vpop.eup %6082 }
 0x625   :  { %v2410_v26 = vadd.f32 1.0, %v6083_v48 }
 0x626   :  { %v6085_v4 = vpop.eup %6084 }
 0x627   :  { %6088 = vrcp.f32 %v2410_v26  ;;  %v2416_v9 = vadd.f32 1.0, %v6085_v4  ;;  %v6087_v12 = vpop.eup %6086 }
 0x628   :  { %6090 = vtanh.f32 %v2405_v19  ;;  %v2423_v35 = vadd.f32 1.0, %v6087_v12 }
 0x629   :  { %6092 = vrcp.f32 %v2416_v9 }
 0x62a   :  { %6094 = vrcp.f32 %v2423_v35 }
 0x634   :  { %v6089_v29 = vpop.eup %6088 }
 0x635   :  { %v6091_v14 = vpop.eup %6090 }
 0x636   :  { %v6093_v8 = vpop.eup %6092  ;;  %v2430_v30 = vmul.f32 %v6091_v14, %v6089_v29 }
 0x637   :  { %v2429_v32 = vmul.f32 %v6093_v8, %v2427_v2  ;;  %v6095_v1 = vpop.eup %6094 }
 0x639   :  { %v7110_v63 = vadd.f32 %v2430_v30, %v2429_v32 }
 0x63b   :  { %6096 = vtanh.f32 %v7110_v63 }
 0x648   :  { %v6097_v59 = vpop.eup %6096 }
 0x649   :  { %v7113_v15 = vmul.f32 %v6097_v59, %v6095_v1 }
 0x64b   :  { %v2434_v62 = vpack.c.bf16 %v7113_v15, %v7113_v15 }
 0x64d   :  { %2468 = vmatmul.mubr.bf16.vlgmr.msra.gmra.mxu0 %v2434_v62  ;;  %2509 = vmatmul.mubr.bf16.vlgmr.msra.gmra.mxu1 %v2434_v62 }
 0x64e   :  { %2565 = vmatpush1.bf16.msra.mxu0 %v7039_v17  ;;  %2606 = vmatpush1.bf16.msra.mxu1 %v7042_v23 }
 0x64f   :  { %2566 = vmatprep.subr.bf16.mxu0 %v7045_v24  ;;  %2607 = vmatprep.subr.bf16.mxu1 %v7048_v10 }
 0x650   :  { %2596 = vmatprep.mubr.bf16.mxu0 %v7493_v13  ;;  %2637 = vmatprep.mubr.bf16.mxu1 %v7493_v13 }
 0x652   :  { %2567 = vmatpush1.bf16.msra.mxu0 %v7053_v11  ;;  %2608 = vmatpush1.bf16.msra.mxu1 %v7056_v39 }
 0x653   :  { %2568 = vmatprep.subr.bf16.mxu0 %v7059_v40  ;;  %2609 = vmatprep.subr.bf16.mxu1 %v7062_v41 }
 0x656   :  { %2569 = vmatpush1.bf16.msra.mxu0 %v7065_v42  ;;  %2610 = vmatpush1.bf16.msra.mxu1 %v7068_v18 }
 0x657   :  { %2570 = vmatprep.subr.bf16.mxu0 %v7071_v43  ;;  %2611 = vmatprep.subr.bf16.mxu1 %v7074_v44 }
 0x65a   :  { %2571 = vmatpush1.bf16.msra.mxu0 %v7077_v45  ;;  %2612 = vmatpush1.bf16.msra.mxu1 %v7080_v20 }
 0x65b   :  { %2572 = vmatprep.subr.bf16.mxu0 %v7083_v31  ;;  %2613 = vmatprep.subr.bf16.mxu1 %v7086_v46 }
 0x65e   :  { %2573 = vmatpush1.bf16.msra.mxu0 %v7135_v28  ;;  %2614 = vmatpush1.bf16.msra.mxu1 %v7138_v3 }
 0x65f   :  { %2574 = vmatprep.subr.bf16.mxu0 %v7141_v21  ;;  %2615 = vmatprep.subr.bf16.mxu1 %v7144_v34 }
 0x662   :  { %2575 = vmatpush1.bf16.msra.mxu0 %v7147_v27  ;;  %2616 = vmatpush1.bf16.msra.mxu1 %v7150_v49 }
 0x663   :  { %2576 = vmatprep.subr.bf16.mxu0 %v7153_v50  ;;  %2617 = vmatprep.subr.bf16.mxu1 %v7156_v52 }
 0x666   :  { %2577 = vmatpush1.bf16.msra.mxu0 %v7159_v53  ;;  %2618 = vmatpush1.bf16.msra.mxu1 %v7162_v54 }
 0x667   :  { %2578 = vmatprep.subr.bf16.mxu0 %v7165_v55  ;;  %2619 = vmatprep.subr.bf16.mxu1 %v7168_v57 }
 0x66a   :  { %2579 = vmatpush1.bf16.msra.mxu0 %v7171_v58  ;;  %2620 = vmatpush1.bf16.msra.mxu1 %v7174_v60 }
 0x66b   :  { %2693 = vmatprep.subr.bf16.mxu0 %v7021_v37  ;;  %2734 = vmatprep.subr.bf16.mxu1 %v7024_v38 }
 0x70d   :  { %v2469_v0 = vpop.f32.mrf.mxu0  ;;  %v2510_v36 = vpop.f32.mrf.mxu1 }
 0x70e   :  { %v2521_v47 = vrot.slane %v2469_v0, 6  ;;  %v2523_v8 = vrot.slane %v2510_v36, 6 }
 0x70f   :  { %v2471_v5 = vpop.f32.mrf.mxu0  ;;  %v2512_v61 = vpop.f32.mrf.mxu1 }
 0x710   :  { %v2529_v48 = vadd.f32 %v2521_v47, %v7498_v51  ;;  %v2522_v19 = vrot.slane %v2471_v5, 6  ;;  %v2524_v37 = vrot.slane %v2512_v61, 6  ;;  %v2531_v32 = vadd.f32 %v2523_v8, %v6874_v25 }
 0x711   :  { %v2473_v26 = vpop.f32.mrf.mxu0  ;;  %v2514_v4 = vpop.f32.mrf.mxu1 }
 0x712   :  { %v5158_v9 = vmul.f32 -1.442695, %v2529_v48  ;;  %v2530_v12 = vadd.f32 %v2522_v19, %v7499_v56  ;;  %v2532_v38 = vadd.f32 %v2524_v37, %v6876_v22  ;;  %v2553_v48 = vrot.slane %v7110_v63, 6 }
 0x713   :  { %v2474_v29 = vpop.f32.mrf.mxu0  ;;  %v2515_v14 = vpop.f32.mrf.mxu1 }
 0x714   :  { %6098 = vpow2.f32 %v5158_v9  ;;  %v5159_v2 = vmul.f32 -1.442695, %v2530_v12  ;;  %v5160_v35 = vmul.f32 -1.442695, %v2532_v38 }
 0x716   :  { %6100 = vpow2.f32 %v5159_v2 }
 0x717   :  { %6102 = vpow2.f32 %v5160_v35 }
 0x721   :  { %v6099_v30 = vpop.eup %6098 }
 0x722   :  { %v2536_v1 = vadd.f32 1.0, %v6099_v30 }
 0x723   :  { %v6101_v59 = vpop.eup %6100 }
 0x724   :  { %6104 = vrcp.f32 %v2536_v1  ;;  %v2542_v62 = vadd.f32 1.0, %v6101_v59  ;;  %v6103_v0 = vpop.eup %6102 }
 0x725   :  { %6106 = vtanh.f32 %v2531_v32  ;;  %v2549_v19 = vadd.f32 1.0, %v6103_v0 }
 0x726   :  { %6108 = vrcp.f32 %v2542_v62 }
 0x727   :  { %6110 = vrcp.f32 %v2549_v19  ;;  %v5877_v19 = vld [vmem:[#allocation8 + $0x30] sm:$0xff]  }
 0x731   :  { %v6105_v47 = vpop.eup %6104 }
 0x732   :  { %v6107_v5 = vpop.eup %6106 }
 0x733   :  { %v6109_v61 = vpop.eup %6108  ;;  %v2556_v26 = vmul.f32 %v6107_v5, %v6105_v47  ;;  %v5875_v47 = vld [vmem:[#allocation8 + $0x38] sm:$0xff]   ;;  %v5876_v5 = vld [vmem:[#allocation8 + $0x70] sm:$0xff]  }
 0x734   :  { %v2555_v36 = vmul.f32 %v6109_v61, %v2553_v48  ;;  %v6111_v9 = vpop.eup %6110  ;;  %v2853_v48 = vld [vmem:[%s7449_s2] sm:$0xff]  ;;  %v2854_v61 = vld [vmem:[%s7449_s2 + $0x8] sm:$0xff] }
 0x736   :  { %v7184_v4 = vadd.f32 %v2556_v26, %v2555_v36  ;;  %v5878_v26 = vld [vmem:[#allocation8 + $0x68] sm:$0xff]   ;;  %v2855_v36 = vpack.c.bf16 %v2854_v61, %v2853_v48 }
 0x738   :  { %6112 = vtanh.f32 %v7184_v4 }
 0x745   :  { %v6113_v12 = vpop.eup %6112 }
 0x746   :  { %v7187_v29 = vmul.f32 %v6113_v12, %v6111_v9  ;;  %v5880_v9 = vld [vmem:[#allocation8 + $0x60] sm:$0xff]  }
 0x747   :  { %v5881_v12 = vld [vmem:[#allocation8 + $0x20] sm:$0xff]  }
 0x748   :  { %v2560_v14 = vpack.c.bf16 %v7187_v29, %v7187_v29 }
 0x74a   :  { %v2562_v2 = vrot.slane %v2560_v14, 1  ;;  %v5882_v14 = vld [vmem:[#allocation8 + $0x58] sm:$0xff]  }
 0x74c   :  { %2597 = vmatmul.mubr.bf16.vlgmr.msra.gmra.mxu0 %v2562_v2  ;;  %2638 = vmatmul.mubr.bf16.vlgmr.msra.gmra.mxu1 %v2562_v2  ;;  %v5883_v2 = vld [vmem:[#allocation8 + $0x18] sm:$0xff]  }
 0x74d   :  { %2694 = vmatpush1.bf16.msra.mxu0 %v7039_v17  ;;  %2735 = vmatpush1.bf16.msra.mxu1 %v7042_v23  ;;  %v5167_v17 = vld.sshfl [vmem:[#allocation7] sm:$0x33 pattern:$0x76325410] }
 0x74e   :  { %2695 = vmatprep.subr.bf16.mxu0 %v7045_v24  ;;  %2736 = vmatprep.subr.bf16.mxu1 %v7048_v10  ;;  %v2877_v23 = vcombine.high %v5167_v17, %v5167_v17  ;;  %v5874_v24 = vld [vmem:[#allocation8 + $0x78] sm:$0xff]   ;;  %v2883_v0 = vsel %vm2818_vm0, %v5167_v17, 0  ;;  %v5884_v17 = vld [vmem:[#allocation8 + $0x50] sm:$0xff]  }
 0x74f   :  { %2725 = vmatprep.mubr.bf16.mxu0 %v7493_v13  ;;  %2766 = vmatprep.mubr.bf16.mxu1 %v7493_v13 }
 0x751   :  { %2696 = vmatpush1.bf16.msra.mxu0 %v7053_v11  ;;  %2737 = vmatpush1.bf16.msra.mxu1 %v7056_v39 }
 0x752   :  { %2697 = vmatprep.subr.bf16.mxu0 %v7059_v40  ;;  %2738 = vmatprep.subr.bf16.mxu1 %v7062_v41 }
 0x755   :  { %2698 = vmatpush1.bf16.msra.mxu0 %v7065_v42  ;;  %2739 = vmatpush1.bf16.msra.mxu1 %v7068_v18 }
 0x756   :  { %2699 = vmatprep.subr.bf16.mxu0 %v7071_v43  ;;  %2740 = vmatprep.subr.bf16.mxu1 %v7074_v44 }
 0x759   :  { %2700 = vmatpush1.bf16.msra.mxu0 %v7077_v45  ;;  %2741 = vmatpush1.bf16.msra.mxu1 %v7080_v20 }
 0x75a   :  { %2701 = vmatprep.subr.bf16.mxu0 %v7083_v31  ;;  %2742 = vmatprep.subr.bf16.mxu1 %v7086_v46 }
 0x75d   :  { %2702 = vmatpush1.bf16.msra.mxu0 %v7135_v28  ;;  %2743 = vmatpush1.bf16.msra.mxu1 %v7138_v3 }
 0x75e   :  { %2703 = vmatprep.subr.bf16.mxu0 %v7141_v21  ;;  %2744 = vmatprep.subr.bf16.mxu1 %v7144_v34 }
 0x761   :  { %2704 = vmatpush1.bf16.msra.mxu0 %v7147_v27  ;;  %2745 = vmatpush1.bf16.msra.mxu1 %v7150_v49 }
 0x762   :  { %2705 = vmatprep.subr.bf16.mxu0 %v7153_v50  ;;  %2746 = vmatprep.subr.bf16.mxu1 %v7156_v52 }
 0x765   :  { %2706 = vmatpush1.bf16.msra.mxu0 %v7159_v53  ;;  %2747 = vmatpush1.bf16.msra.mxu1 %v7162_v54 }
 0x766   :  { %2707 = vmatprep.subr.bf16.mxu0 %v7165_v55  ;;  %2748 = vmatprep.subr.bf16.mxu1 %v7168_v57 }
 0x769   :  { %2708 = vmatpush1.bf16.msra.mxu0 %v7171_v58  ;;  %2749 = vmatpush1.bf16.msra.mxu1 %v7174_v60  ;;  %v2682_v58 = vrot.slane %v7184_v4, 6  ;;  %v5879_v4 = vld [vmem:[#allocation8 + $0x28] sm:$0xff]  }
 0x76a   :  { %5168 = vmatprep.subr.msk.bf16.mxu0 %vm2818_vm0, %v2877_v23  ;;  %5310 = vmatprep.subr.bf16.mxu1 %v5874_v24  ;;  %v5885_v23 = vld [vmem:[#allocation8 + $0x10] sm:$0xff]   ;;  %v5886_v24 = vld [vmem:[#allocation8 + $0x48] sm:$0xff]  }
 0x80c   :  { %v2598_v10 = vpop.f32.mrf.mxu0  ;;  %v2639_v11 = vpop.f32.mrf.mxu1 }
 0x80d   :  { %v2650_v39 = vrot.slane %v2598_v10, 4  ;;  %v2652_v21 = vrot.slane %v2639_v11, 4  ;;  %v5887_v10 = vld [vmem:[#allocation8 + $0x8] sm:$0xff]   ;;  %v5888_v11 = vld [vmem:[#allocation8 + $0x40] sm:$0xff]  }
 0x80e   :  { %v2600_v40 = vpop.f32.mrf.mxu0  ;;  %v2641_v41 = vpop.f32.mrf.mxu1 }
 0x80f   :  { %v2658_v42 = vadd.f32 %v2650_v39, %v7498_v51  ;;  %v2651_v18 = vrot.slane %v2600_v40, 4  ;;  %v2653_v28 = vrot.slane %v2641_v41, 4  ;;  %v2660_v49 = vadd.f32 %v2652_v21, %v6874_v25  ;;  %v5889_v39 = vld [vmem:[#allocation8] sm:$0xff]   ;;  %v5890_v40 = vld [vmem:[#allocation10 + $0x38] sm:$0xff]  }
 0x810   :  { %v2602_v43 = vpop.f32.mrf.mxu0  ;;  %v2643_v44 = vpop.f32.mrf.mxu1  ;;  %v6518_v41 = vmov 0.0  }
 0x811   :  { %v5161_v45 = vmul.f32 -1.442695, %v2658_v42  ;;  %v2659_v20 = vadd.f32 %v2651_v18, %v7499_v56  ;;  %v2661_v3 = vadd.f32 %v2653_v28, %v6876_v22  ;;  %v5891_v42 = vld [vmem:[#allocation10 + $0x30] sm:$0xff]   ;;  %v5892_v18 = vld [vmem:[#allocation10 + $0x28] sm:$0xff]   ;;  %v5893_v43 = vld [vmem:[#allocation10 + $0x20] sm:$0xff]  }
 0x812   :  { %v2603_v31 = vpop.f32.mrf.mxu0  ;;  %v2644_v46 = vpop.f32.mrf.mxu1  ;;  %v5894_v44 = vld [vmem:[#allocation10 + $0x18] sm:$0xff]  }
 0x813   :  { %6114 = vpow2.f32 %v5161_v45  ;;  %v5162_v63 = vmul.f32 -1.442695, %v2659_v20  ;;  %v5163_v34 = vmul.f32 -1.442695, %v2661_v3  ;;  %v5895_v45 = vld [vmem:[#allocation10 + $0x10] sm:$0xff]   ;;  %v5896_v20 = vld [vmem:[#allocation10 + $0x8] sm:$0xff]  }
 0x814   :  { %v5897_v31 = vld [vmem:[#allocation10] sm:$0xff]  }
 0x815   :  { %6116 = vpow2.f32 %v5162_v63 }
 0x816   :  { %6118 = vpow2.f32 %v5163_v34  ;;  %v2857_v34 = vld [vmem:[#allocation17 + $0x4] sm:$0x3] }
 0x820   :  { %v6115_v27 = vpop.eup %6114 }
 0x821   :  { %v2665_v50 = vadd.f32 1.0, %v6115_v27 }
 0x822   :  { %v6117_v52 = vpop.eup %6116 }
 0x823   :  { %6120 = vrcp.f32 %v2665_v50  ;;  %v2671_v53 = vadd.f32 1.0, %v6117_v52  ;;  %v6119_v54 = vpop.eup %6118 }
 0x824   :  { %6122 = vtanh.f32 %v2660_v49  ;;  %v2678_v37 = vadd.f32 1.0, %v6119_v54 }
 0x825   :  { %6124 = vrcp.f32 %v2671_v53 }
 0x826   :  { %6126 = vrcp.f32 %v2678_v37 }
 0x830   :  { %v6121_v55 = vpop.eup %6120 }
 0x831   :  { %v6123_v57 = vpop.eup %6122 }
 0x832   :  { %v6125_v60 = vpop.eup %6124  ;;  %v2685_v38 = vmul.f32 %v6123_v57, %v6121_v55  ;;  %v7500_v55 = vld [vmem:[#allocation37_spill] sm:$0xff] }
 0x833   :  { %v2684_v8 = vmul.f32 %v6125_v60, %v2682_v58  ;;  %v6127_v30 = vpop.eup %6126  ;;  %v2862_v57 = vrot.slane %v2857_v34, %v7500_v55 }
 0x835   :  { %v7229_v35 = vadd.f32 %v2685_v38, %v2684_v8  ;;  %v7501_v38 = vld [vmem:[#allocation38_spill] sm:$0xff] }
 0x836   :  { %v2866_v8 = vrot.slane %v2857_v34, %v7501_v38 }
 0x837   :  { %6128 = vtanh.f32 %v7229_v35 }
 0x844   :  { %v6129_v32 = vpop.eup %6128 }
 0x845   :  { %v7232_v1 = vmul.f32 %v6129_v32, %v6127_v30 }
 0x847   :  { %v2689_v59 = vpack.c.bf16 %v7232_v1, %v7232_v1 }
 0x849   :  { %v2691_v62 = vrot.slane %v2689_v59, 2 }
 0x84b   :  { %2726 = vmatmul.mubr.bf16.vlgmr.msra.gmra.mxu0 %v2691_v62  ;;  %2767 = vmatmul.mubr.bf16.vlgmr.msra.gmra.mxu1 %v2691_v62 }
 0x84c   :  { %2903 = vmatpush1.bf16.msra.mxu0 %v2883_v0  ;;  %2920 = vmatprep.mubr.bf16.mxu0 %v7493_v13 }
 0x84d   :  { %5311 = vmatpush3.bf16.msra.mxu1 %v5875_v47  ;;  %5434 = vmatprep.subr.bf16.mxu0 %v6518_v41 }
 0x84e   :  { %5312 = vmatprep.subr.bf16.mxu1 %v5876_v5 }
 0x851   :  { %5313 = vmatpush3.bf16.msra.mxu1 %v5877_v19 }
 0x852   :  { %5314 = vmatprep.subr.bf16.mxu1 %v5878_v26 }
 0x853   :  { %5169 = vmatmul.mubr.msk.bf16.vlgmr.msra.gmra.mxu0 %vm2878_vm1, %v2855_v36 }
 0x854   :  { %5435 = vmatpush3.bf16.msra.mxu0 %v5890_v40  ;;  %5450 = vmatprep.mubr.msk.bf16.mxu0 %vm6519_vm2, %v6518_v41 }
 0x855   :  { %5315 = vmatpush3.bf16.msra.mxu1 %v5879_v4  ;;  %5436 = vmatprep.subr.bf16.mxu0 %v6518_v41 }
 0x856   :  { %5316 = vmatprep.subr.bf16.mxu1 %v5880_v9 }
 0x858   :  { %5437 = vmatpush3.bf16.msra.mxu0 %v5891_v42 }
 0x859   :  { %5317 = vmatpush3.bf16.msra.mxu1 %v5881_v12  ;;  %5438 = vmatprep.subr.bf16.mxu0 %v6518_v41 }
 0x85a   :  { %5318 = vmatprep.subr.bf16.mxu1 %v5882_v14 }
 0x85c   :  { %5439 = vmatpush3.bf16.msra.mxu0 %v5892_v18  ;;  %v2811_v18 = vrot.slane %v7229_v35, 6  ;;  %v2824_v35 = vsel %vm2818_vm0, %v7113_v15, %v7187_v29 }
 0x85d   :  { %5319 = vmatpush3.bf16.msra.mxu1 %v5883_v2  ;;  %5440 = vmatprep.subr.bf16.mxu0 %v6518_v41 }
 0x85e   :  { %5320 = vmatprep.subr.bf16.mxu1 %v5884_v17 }
 0x860   :  { %5441 = vmatpush3.bf16.msra.mxu0 %v5893_v43 }
 0x861   :  { %5321 = vmatpush3.bf16.msra.mxu1 %v5885_v23  ;;  %5442 = vmatprep.subr.bf16.mxu0 %v6518_v41 }
 0x862   :  { %5322 = vmatprep.subr.bf16.mxu1 %v5886_v24 }
 0x864   :  { %5443 = vmatpush3.bf16.msra.mxu0 %v5894_v44 }
 0x865   :  { %5323 = vmatpush3.bf16.msra.mxu1 %v5887_v10  ;;  %5444 = vmatprep.subr.bf16.mxu0 %v6518_v41 }
 0x866   :  { %5324 = vmatprep.subr.bf16.mxu1 %v5888_v11 }
 0x868   :  { %5445 = vmatpush3.bf16.msra.mxu0 %v5895_v45 }
 0x869   :  { %5325 = vmatpush3.bf16.msra.mxu1 %v5889_v39  ;;  %5446 = vmatprep.subr.bf16.mxu0 %v6518_v41 }
 0x86a   :  { %5454 = vmatprep.subr.bf16.mxu1 %v6518_v41 }
 0x86c   :  { %5447 = vmatpush3.bf16.msra.mxu0 %v5896_v20 }
 0x86d   :  { %5448 = vmatprep.subr.bf16.mxu0 %v6518_v41 }
 0x870   :  { %5449 = vmatpush3.bf16.msra.mxu0 %v5897_v31 }
 0x871   :  { %5474 = vmatprep.subr.bf16.mxu0 %v6518_v41 }
 0x90b   :  { %v2727_v46 = vpop.f32.mrf.mxu0  ;;  %v2768_v63 = vpop.f32.mrf.mxu1 }
 0x90c   :  { %v2779_v28 = vrot.slane %v2727_v46, 2  ;;  %v2781_v36 = vrot.slane %v2768_v63, 2 }
 0x90d   :  { %v2729_v3 = vpop.f32.mrf.mxu0  ;;  %v2770_v21 = vpop.f32.mrf.mxu1 }
 0x90e   :  { %v2787_v27 = vadd.f32 %v2779_v28, %v7498_v51  ;;  %v2780_v49 = vrot.slane %v2729_v3, 2  ;;  %v2782_v59 = vrot.slane %v2770_v21, 2  ;;  %v2789_v24 = vadd.f32 %v2781_v36, %v6874_v25 }
 0x90f   :  { %v2731_v50 = vpop.f32.mrf.mxu0  ;;  %v2772_v52 = vpop.f32.mrf.mxu1  ;;  %v2819_v28 = vsel %vm2818_vm0, %v6893_v16, %v6939_v6  ;;  %v2825_v21 = vsel %vm2820_vm3, %v2824_v35, %v7232_v1 }
 0x910   :  { %v5164_v53 = vmul.f32 -1.442695, %v2787_v27  ;;  %v2788_v54 = vadd.f32 %v2780_v49, %v7499_v56  ;;  %v2790_v56 = vadd.f32 %v2782_v59, %v6876_v22  ;;  %v2821_v3 = vsel %vm2820_vm3, %v2819_v28, %v6985_v7  ;;  %v5898_v49 = vld [vmem:[#allocation10 + $0x78] sm:$0xff]   ;;  %v5899_v52 = vld [vmem:[#allocation10 + $0x70] sm:$0xff]  }
 0x911   :  { %v2732_v58 = vpop.f32.mrf.mxu0  ;;  %v2773_v60 = vpop.f32.mrf.mxu1  ;;  %v2823_v34 = vsel %vm2822_vm4, %v2821_v3, %v7035_v33  ;;  %v6244_v28 = vld [vmem:[%s7447_s0 + $0x50] sm:$0xff] }
 0x912   :  { %6130 = vpow2.f32 %v5164_v53  ;;  %v5165_v37 = vmul.f32 -1.442695, %v2788_v54  ;;  %v5166_v14 = vmul.f32 -1.442695, %v2790_v56  ;;  %v5900_v53 = vld [vmem:[#allocation10 + $0x68] sm:$0xff]   ;;  %v5901_v54 = vld [vmem:[#allocation10 + $0x60] sm:$0xff]  }
 0x913   :  { %v2922_v30 = vpop.f32.mrf.mxu0  ;;  %v5903_v58 = vld [vmem:[#allocation10 + $0x50] sm:$0xff]   ;;  %v5904_v60 = vld [vmem:[#allocation10 + $0x48] sm:$0xff]   ;;  %v2837_v35 = vand.u32 2147483647, %v6244_v28 }
 0x914   :  { %6132 = vpow2.f32 %v5165_v37  ;;  %v2923_v32 = vadd.f32 %v2922_v30, %v2862_v57  ;;  %v5905_v37 = vld [vmem:[#allocation10 + $0x40] sm:$0xff]  }
 0x915   :  { %v2924_v62 = vpop.f32.mrf.mxu0  ;;  %6134 = vpow2.f32 %v5166_v14 }
 0x916   :  { %v2925_v51 = vadd.f32 %v2924_v62, %v2866_v8  ;;  %v3109_v47 = vand.u32 2147483647, %v2923_v32  ;;  %v6240_v62 = vld [vmem:[%s7447_s0 + $0x40] sm:$0xff] }
 0x917   :  { %v2926_v0 = vpop.f32.mrf.mxu0 }
 0x918   :  { %v3110_v5 = vand.u32 2147483647, %v2925_v51  ;;  %v2927_v48 = vadd.f32 %v2926_v0, %v2862_v57  ;;  %v5902_v57 = vld [vmem:[#allocation10 + $0x58] sm:$0xff]  }
 0x919   :  { %v2928_v61 = vpop.f32.mrf.mxu0  ;;  %v7502_v0 = vld [vmem:[#allocation30_spill] sm:$0xff] }
 0x91a   :  { %v2929_v19 = vadd.f32 %v2928_v61, %v2866_v8  ;;  %v7261_v26 = vadd.f32 %v3110_v5, %v3109_v47  ;;  %v3111_v4 = vand.u32 2147483647, %v2927_v48  ;;  %v2931_v2 = vpack.c.bf16 %v2927_v48, %v2923_v32  ;;  %v6238_v8 = vld [vmem:[%s7447_s0 + $0x10] sm:$0xff]  ;;  %v6239_v32 = vld [vmem:[%s7447_s0 + $0x18] sm:$0xff]  ;;  %v6241_v5 = vld [vmem:[%s7447_s0 + $0x48] sm:$0xff] }
 0x91b   :  { %v2829_v30 = vand.u32 2147483647, %v6238_v8  ;;  %v2830_v59 = vand.u32 2147483647, %v6239_v32  ;;  %v2836_v48 = vand.u32 2147483647, %v6241_v5 }
 0x91c   :  { %v2932_v9 = vpack.c.bf16 %v2929_v19, %v2925_v51  ;;  %v3112_v12 = vand.u32 2147483647, %v2929_v19  ;;  %v2835_v51 = vand.u32 2147483647, %v6240_v62  ;;  %v7503_v61 = vld [vmem:[#allocation31_spill] sm:$0xff] }
 0x91d   :  { %v2840_v47 = vadd.f32 %v7502_v0, %v2829_v30 }
 0x91e   :  { %3100 = vmatprep.mubr.bf16.mxu1 %v2932_v9  ;;  %v7263_v17 = vadd.f32 %v3112_v12, %v3111_v4  ;;  %v2847_v19 = vadd.f32 %v7503_v61, %v2835_v51 }
 0x91f   :  { %v6131_v23 = vpop.eup %6130  ;;  %3101 = vmatmul.mubr.bf16.vlgmr.msra.gmra.mxu1 %v2931_v2  ;;  %v2841_v56 = vadd.f32 %v2840_v47, %v2830_v59  ;;  %v5170_v2 = vld [vmem:[#allocation17 + $0x6] ss:$0 sm:$0xff] }
 0x920   :  { %v2794_v10 = vadd.f32 1.0, %v6131_v23  ;;  %5470 = vmatprep.mubr.msk.bf16.mxu1 %vm6519_vm2, %v6518_v41  ;;  %v2848_v36 = vadd.f32 %v2847_v19, %v2836_v48 }
 0x921   :  { %v6133_v22 = vpop.eup %6132 }
 0x922   :  { %6136 = vrcp.f32 %v2794_v10  ;;  %v2800_v11 = vadd.f32 1.0, %v6133_v22  ;;  %v6135_v39 = vpop.eup %6134 }
 0x923   :  { %6138 = vtanh.f32 %v2789_v24  ;;  %v2807_v44 = vadd.f32 1.0, %v6135_v39  ;;  %v5187_v39 = vld [vmem:[#allocation17 + $0x7] ss:$0 sm:$0xff] }
 0x924   :  { %6140 = vrcp.f32 %v2800_v11 }
 0x925   :  { %6142 = vrcp.f32 %v2807_v44 }
 0x92f   :  { %v6137_v40 = vpop.eup %6136 }
 0x930   :  { %v6139_v42 = vpop.eup %6138 }
 0x931   :  { %v6141_v43 = vpop.eup %6140  ;;  %v2814_v45 = vmul.f32 %v6139_v42, %v6137_v40  ;;  %v6242_v40 = vld [vmem:[%s7447_s0 + $0x20] sm:$0xff] }
 0x932   :  { %v2813_v25 = vmul.f32 %v6141_v43, %v2811_v18  ;;  %v6143_v31 = vpop.eup %6142  ;;  %v2831_v42 = vand.u32 2147483647, %v6242_v40 }
 0x934   :  { %v2815_v20 = vadd.f32 %v2814_v45, %v2813_v25  ;;  %v5196_v45 = vld [vmem:[#allocation11] ss:$0 sm:$0xff] }
 0x936   :  { %6144 = vtanh.f32 %v2815_v20  ;;  %v6243_v20 = vld [vmem:[%s7447_s0 + $0x28] sm:$0xff] }
 0x943   :  { %v6145_v46 = vpop.eup %6144 }
 0x944   :  { %v7269_v63 = vmul.f32 %v6145_v46, %v6143_v31  ;;  %v2832_v31 = vand.u32 2147483647, %v6243_v20  ;;  %v2842_v46 = vadd.f32 %v2841_v56, %v2831_v42  ;;  %v5216_v42 = vld [vmem:[#allocation11 + $0x1] ss:$0 sm:$0xff] }
 0x946   :  { %v2826_v27 = vsel %vm2822_vm4, %v2825_v21, %v7269_v63 }
 0x947   :  { %v3138_v50 = vpack.c.bf16 %v2826_v27, %v2823_v34 }
 0x949   :  { %5451 = vmatmul.mubr.bf16.vlgmr.msra.gmra.mxu0 %v3138_v50  ;;  %v2843_v50 = vadd.f32 %v2842_v46, %v2832_v31 }
 0x94a   :  { %5475 = vmatpush3.bf16.msra.mxu0 %v5898_v49  ;;  %5490 = vmatprep.mubr.msk.bf16.mxu0 %vm6519_vm2, %v6518_v41 }
 0x94b   :  { %5476 = vmatprep.subr.bf16.mxu0 %v6518_v41 }
 0x94e   :  { %5477 = vmatpush3.bf16.msra.mxu0 %v5899_v52  ;;  %v6245_v52 = vld [vmem:[%s7447_s0 + $0x58] sm:$0xff] }
 0x94f   :  { %5478 = vmatprep.subr.bf16.mxu0 %v6518_v41 }
 0x952   :  { %5479 = vmatpush3.bf16.msra.mxu0 %v5900_v53  ;;  %v2838_v53 = vand.u32 2147483647, %v6245_v52 }
 0x953   :  { %5480 = vmatprep.subr.bf16.mxu0 %v6518_v41 }
 0x956   :  { %5481 = vmatpush3.bf16.msra.mxu0 %v5901_v54  ;;  %v2849_v54 = vadd.f32 %v2848_v36, %v2837_v35 }
 0x957   :  { %5482 = vmatprep.subr.bf16.mxu0 %v6518_v41 }
 0x95a   :  { %5483 = vmatpush3.bf16.msra.mxu0 %v5902_v57 }
 0x95b   :  { %5484 = vmatprep.subr.bf16.mxu0 %v6518_v41 }
 0x95e   :  { %5485 = vmatpush3.bf16.msra.mxu0 %v5903_v58  ;;  %v2850_v58 = vadd.f32 %v2849_v54, %v2838_v53 }
 0x95f   :  { %5486 = vmatprep.subr.bf16.mxu0 %v6518_v41 }
 0x962   :  { %5487 = vmatpush3.bf16.msra.mxu0 %v5904_v60 }
 0x963   :  { %5488 = vmatprep.subr.bf16.mxu0 %v6518_v41 }
 0x966   :  { %5489 = vmatpush3.bf16.msra.mxu0 %v5905_v37  ;;  %v5197_v37 = vld [vmem:[#allocation17 + $0x8] ss:$0 sm:$0xff] }
 0x9df   :  { %v5326_v4 = vpop.f32.mrf.mxu1 }
 0x9e1   :  { %v5327_v9 = vpop.f32.mrf.mxu1 }
 0x9e2   :  { %v5328_v14 = vadd.f32 %v5327_v9, %v5326_v4 }
 0x9e3   :  { %v5329_v12 = vpop.f32.mrf.mxu1 }
 0x9e4   :  { %v7304_v10 = vadd.f32 %v5328_v14, %v5170_v2  ;;  %v5207_v14 = vld [vmem:[#allocation17 + $0xa] ss:$0 sm:$0xff] }
 0x9e5   :  { %v5330_v23 = vpop.f32.mrf.mxu1 }
 0x9e6   :  { %v5331_v24 = vadd.f32 %v5330_v23, %v5329_v12 }
 0x9e8   :  { %v7306_v22 = vadd.f32 %v5331_v24, %v5170_v2 }
 0x9ea   :  { %v3559_v11 = vpack.c.bf16 %v7306_v22, %v7304_v10 }
 0x9ec   :  { %5491 = vmatmul.mubr.bf16.vlgmr.msra.gmra.mxu0 %v3559_v11 }
 0xa09   :  { %v3227_v18 = vpop.f32.mrf.mxu0 }
 0xa0a   :  { %v3228_v43 = vadd.f32 %v5187_v39, %v3227_v18 }
 0xa0b   :  { %v5452_v44 = vpop.f32.mrf.mxu0 }
 0xa0c   :  { %v3234_v25 = vmax.f32 %v3228_v43, 0.0 }
 0xa0d   :  { %v3230_v3 = vpop.f32.mrf.mxu0 }
 0xa0e   :  { %v3231_v21 = vadd.f32 %v5187_v39, %v3230_v3  ;;  %v3242_v34 = vmul.f32 %v5196_v45, %v3234_v25 }
 0xa0f   :  { %v5453_v27 = vpop.f32.mrf.mxu0 }
 0xa10   :  { %v3235_v49 = vmax.f32 %v3231_v21, 0.0  ;;  %3244 = vadd.xlane.f32.xlu0 %v3242_v34 }
 0xa12   :  { %v3243_v57 = vmul.f32 %v5196_v45, %v3235_v49 }
 0xa14   :  { %2844 = vadd.xlane.f32.xlu0 %v2843_v50  ;;  %3246 = vadd.xlane.f32.xlu1 %v3243_v57 }
 0xa18   :  { %2851 = vadd.xlane.f32.xlu1 %v2850_v58 }
 0xa99   :  { %v3245_v60 = vpop.xlane.xlu0 %3244 }
 0xa9a   :  { %v3254_v8 = vadd.f32 %v5197_v37, %v3245_v60 }
 0xa9d   :  { %v2845_v30 = vpop.xlane.xlu0 %2844  ;;  %v3247_v32 = vpop.xlane.xlu1 %3246 }
 0xa9e   :  { %vm3256_vm5 = vcmp.eq.f32.partialorder %v2845_v30, 0.0  ;;  %v3255_v5 = vadd.f32 %v5197_v37, %v3247_v32 }
 0xa9f   :  { %v3258_v59 = vsel %vm3256_vm5, -1e+09, %v3254_v8 }
 0xaa0   :  { %v3261_v62 = vrot.slane %v3258_v59, 2  ;;  %v3264_v47 = vrot.slane %v3258_v59, 4  ;;  %v3267_v56 = vrot.slane %v3258_v59, 6 }
 0xaa1   :  { %v2852_v51 = vpop.xlane.xlu1 %2851 }
 0xaa2   :  { %v3263_v0 = vmax.f32 %v3258_v59, %v3261_v62  ;;  %vm3257_vm6 = vcmp.eq.f32.partialorder %v2852_v51, 0.0 }
 0xaa3   :  { %v3259_v61 = vsel %vm3257_vm6, -1e+09, %v3255_v5 }
 0xaa4   :  { %v3266_v48 = vmax.f32 %v3263_v0, %v3264_v47  ;;  %v3272_v4 = vrot.slane %v3259_v61, 2  ;;  %v3275_v12 = vrot.slane %v3259_v61, 4  ;;  %v3278_v23 = vrot.slane %v3259_v61, 6 }
 0xaa6   :  { %v3269_v19 = vmax.f32 %v3266_v48, %v3267_v56 }
 0xaa8   :  { %v3270_v36 = vmax.f32 %v3269_v19, %v3259_v61 }
 0xaaa   :  { %v3274_v9 = vmax.f32 %v3270_v36, %v3272_v4 }
 0xaac   :  { %v3277_v2 = vmax.f32 %v3274_v9, %v3275_v12  ;;  %v3648_v24 = vpop.f32.mrf.mxu0 }
 0xaad   :  { %v3649_v11 = vadd.f32 %v5207_v14, %v3648_v24 }
 0xaae   :  { %v3280_v39 = vmax.f32 %v3277_v2, %v3278_v23  ;;  %v5492_v40 = vpop.f32.mrf.mxu0 }
 0xaaf   :  { %v3655_v18 = vmax.f32 %v3649_v11, 0.0 }
 0xab0   :  { %v3285_v43 = vrot.slane %v3280_v39, 6  ;;  %v3290_v44 = vrot.slane %v3280_v39, 4  ;;  %v3295_v45 = vrot.slane %v3280_v39, 2  ;;  %v3651_v25 = vpop.f32.mrf.mxu0  ;;  %v3281_v27 = vsub.f32 %v3258_v59, %v3280_v39 }
 0xab1   :  { %v3652_v20 = vadd.f32 %v5207_v14, %v3651_v25  ;;  %v3663_v31 = vmul.f32 %v5216_v42, %v3655_v18  ;;  %v3300_v57 = vsub.f32 %v3259_v61, %v3280_v39  ;;  %v5906_v18 = vld [vmem:[#allocation13 + $0x38] sm:$0xff]   ;;  %v5907_v25 = vld [vmem:[#allocation13 + $0x30] sm:$0xff]  }
 0xab2   :  { %v3287_v46 = vsub.f32 %v3258_v59, %v3285_v43  ;;  %v3292_v28 = vsub.f32 %v3258_v59, %v3290_v44  ;;  %v5493_v35 = vpop.f32.mrf.mxu0  ;;  %v3297_v3 = vsub.f32 %v3258_v59, %v3295_v45  ;;  %v3303_v53 = vsub.f32 %v3259_v61, %v3285_v43  ;;  %5455 = vmatpush3.bf16.msra.mxu1 %v5906_v18 }
 0xab3   :  { %v3656_v21 = vmax.f32 %v3652_v20, 0.0  ;;  %3665 = vadd.xlane.f32.xlu0 %v3663_v31  ;;  %v3282_v54 = vmul.f32 1.442695, %v3281_v27  ;;  %v3306_v58 = vsub.f32 %v3259_v61, %v3290_v44  ;;  %v3309_v37 = vsub.f32 %v3259_v61, %v3295_v45  ;;  %5456 = vmatprep.subr.bf16.mxu1 %v6518_v41  ;;  %v5909_v35 = vld [vmem:[#allocation13 + $0x20] sm:$0xff]   ;;  %v5911_v27 = vld [vmem:[#allocation13 + $0x10] sm:$0xff]  }
 0xab4   :  { %v3288_v34 = vmul.f32 1.442695, %v3287_v46  ;;  %v3293_v50 = vmul.f32 1.442695, %v3292_v28  ;;  %v3298_v52 = vmul.f32 1.442695, %v3297_v3 }
 0xab5   :  { %v3664_v49 = vmul.f32 %v5216_v42, %v3656_v21  ;;  %v3304_v60 = vmul.f32 1.442695, %v3303_v53  ;;  %v3301_v8 = vmul.f32 1.442695, %v3300_v57  ;;  %v3307_v30 = vmul.f32 1.442695, %v3306_v58 }
 0xab6   :  { %6146 = vpow2.f32 %v3288_v34  ;;  %v3310_v32 = vmul.f32 1.442695, %v3309_v37  ;;  %5457 = vmatpush3.bf16.msra.mxu1 %v5907_v25  ;;  %v5908_v46 = vld [vmem:[#allocation13 + $0x28] sm:$0xff]   ;;  %v5910_v21 = vld [vmem:[#allocation13 + $0x18] sm:$0xff]   ;;  %v5918_v57 = vld [vmem:[#allocation14 + $0x70] sm:$0xff]  }
 0xab7   :  { %3114 = vadd.xlane.f32.xlu0 %v7261_v26  ;;  %3667 = vadd.xlane.f32.xlu1 %v3664_v49  ;;  %6148 = vpow2.f32 %v3293_v50  ;;  %v5912_v50 = vld [vmem:[#allocation13 + $0x8] sm:$0xff]   ;;  %v5915_v53 = vld [vmem:[#allocation14 + $0x78] sm:$0xff]   ;;  %v5919_v58 = vld [vmem:[#allocation14 + $0x30] sm:$0xff]  }
 0xab8   :  { %6150 = vpow2.f32 %v3298_v52  ;;  %5458 = vmatprep.subr.bf16.mxu1 %v6518_v41  ;;  %v5913_v52 = vld [vmem:[#allocation13] sm:$0xff]   ;;  %5368 = vmatprep.subr.bf16.mxu0 %v5915_v53  ;;  %v5217_v37 = vld [vmem:[#allocation17 + $0xb] ss:$0 sm:$0xff] }
 0xab9   :  { %6152 = vpow2.f32 %v3282_v54  ;;  %v5916_v54 = vld [vmem:[#allocation14 + $0x38] sm:$0xff]  }
 0xaba   :  { %6154 = vpow2.f32 %v3304_v60  ;;  %5459 = vmatpush3.bf16.msra.mxu1 %v5908_v46  ;;  %5369 = vmatpush3.bf16.msra.mxu0 %v5916_v54 }
 0xabb   :  { %3117 = vadd.xlane.f32.xlu1 %v7263_v17  ;;  %6156 = vpow2.f32 %v3301_v8  ;;  %5460 = vmatprep.subr.bf16.mxu1 %v6518_v41 }
 0xabc   :  { %6158 = vpow2.f32 %v3307_v30  ;;  %5370 = vmatprep.subr.bf16.mxu0 %v5918_v57 }
 0xabd   :  { %6160 = vpow2.f32 %v3310_v32 }
 0xabe   :  { %5461 = vmatpush3.bf16.msra.mxu1 %v5909_v35  ;;  %5371 = vmatpush3.bf16.msra.mxu0 %v5919_v58 }
 0xabf   :  { %5462 = vmatprep.subr.bf16.mxu1 %v6518_v41 }
 0xac2   :  { %5463 = vmatpush3.bf16.msra.mxu1 %v5910_v21 }
 0xac3   :  { %v6147_v59 = vpop.eup %6146  ;;  %5464 = vmatprep.subr.bf16.mxu1 %v6518_v41 }
 0xac4   :  { %v3313_v26 = vrot.slane %v6147_v59, 2  ;;  %v6149_v62 = vpop.eup %6148 }
 0xac5   :  { %v6151_v51 = vpop.eup %6150  ;;  %v3317_v5 = vrot.slane %v6149_v62, 4 }
 0xac6   :  { %v6153_v0 = vpop.eup %6152  ;;  %v3321_v48 = vrot.slane %v6151_v51, 6  ;;  %5465 = vmatpush3.bf16.msra.mxu1 %v5911_v27 }
 0xac7   :  { %v3315_v47 = vadd.f32 %v6153_v0, %v3313_v26  ;;  %v6155_v17 = vpop.eup %6154  ;;  %5466 = vmatprep.subr.bf16.mxu1 %v6518_v41 }
 0xac8   :  { %v6157_v19 = vpop.eup %6156  ;;  %v3326_v4 = vrot.slane %v6155_v17, 2 }
 0xac9   :  { %v3319_v56 = vadd.f32 %v3317_v5, %v3315_v47  ;;  %v6159_v36 = vpop.eup %6158 }
 0xaca   :  { %v6161_v12 = vpop.eup %6160  ;;  %v3330_v14 = vrot.slane %v6159_v36, 4  ;;  %5467 = vmatpush3.bf16.msra.mxu1 %v5912_v50 }
 0xacb   :  { %v3323_v61 = vadd.f32 %v3321_v48, %v3319_v56  ;;  %v3334_v23 = vrot.slane %v6161_v12, 6  ;;  %5468 = vmatprep.subr.bf16.mxu1 %v6518_v41 }
 0xacd   :  { %v3324_v9 = vadd.f32 %v6157_v19, %v3323_v61 }
 0xace   :  { %5469 = vmatpush3.bf16.msra.mxu1 %v5913_v52 }
 0xacf   :  { %v3328_v2 = vadd.f32 %v3326_v4, %v3324_v9  ;;  %5494 = vmatprep.subr.bf16.mxu1 %v6518_v41 }
 0xad1   :  { %v3332_v24 = vadd.f32 %v3330_v14, %v3328_v2 }
 0xad3   :  { %v3336_v11 = vadd.f32 %v3334_v23, %v3332_v24 }
 0xad5   :  { %6162 = vrcp.f32 %v3336_v11 }
 0xae2   :  { %v6163_v39 = vpop.eup %6162 }
 0xae3   :  { %v3338_v40 = vmul.f32 %v6163_v39, %v6153_v0  ;;  %v3346_v42 = vrot.slane %v6163_v39, 6  ;;  %v3385_v44 = vmul.f32 %v6163_v39, %v6157_v19  ;;  %v3359_v45 = vrot.slane %v6163_v39, 4 }
 0xae4   :  { %v3372_v31 = vrot.slane %v6163_v39, 2 }
 0xae5   :  { %3341 = vperm.xlu1 %5537, %v3338_v40   ;;  %v3348_v43 = vmul.f32 %v6147_v59, %v3346_v42  ;;  %v3361_v20 = vmul.f32 %v6149_v62, %v3359_v45  ;;  %v3393_v3 = vmul.f32 %v6155_v17, %v3346_v42  ;;  %v3404_v34 = vmul.f32 %v6159_v36, %v3359_v45 }
 0xae6   :  { %v3374_v28 = vmul.f32 %v6151_v51, %v3372_v31  ;;  %v3415_v49 = vmul.f32 %v6161_v12, %v3372_v31 }
 0xae7   :  { %3351 = vperm.xlu0 %5536, %v3348_v43  }
 0xae9   :  { %3388 = vperm.xlu1 %5537, %v3385_v44  }
 0xaed   :  { %3364 = vperm.xlu1 %5537, %v3361_v20  }
 0xaf1   :  { %3377 = vperm.xlu1 %5537, %v3374_v28  }
 0xaf5   :  { %3396 = vperm.xlu1 %5537, %v3393_v3  }
 0xaf9   :  { %3407 = vperm.xlu1 %5537, %v3404_v34  }
 0xafd   :  { %3418 = vperm.xlu1 %5537, %v3415_v49  }
 0xb3c   :  { %v3666_v60 = vpop.xlane.xlu0 %3665 }
 0xb3d   :  { %v3675_v8 = vadd.f32 %v5217_v37, %v3666_v60 }
 0xb40   :  { %v3115_v30 = vpop.xlane.xlu0 %3114  ;;  %v3668_v32 = vpop.xlane.xlu1 %3667 }
 0xb41   :  { %vm3677_vm8 = vcmp.eq.f32.partialorder %v3115_v30, 0.0  ;;  %v3676_v51 = vadd.f32 %v5217_v37, %v3668_v32 }
 0xb42   :  { %v3679_v59 = vsel %vm3677_vm8, -1e+09, %v3675_v8 }
 0xb43   :  { %v3682_v26 = vsel %vm3681_vm7, %v3679_v59, -inf }
 0xb44   :  { %v3683_v62 = vrot.slane %v3682_v26, 4  ;;  %v3118_v0 = vpop.xlane.xlu1 %3117 }
 0xb45   :  { %vm3678_vm9 = vcmp.eq.f32.partialorder %v3118_v0, 0.0 }
 0xb46   :  { %v3684_v47 = vmax.f32 %v3682_v26, %v3683_v62  ;;  %v3680_v5 = vsel %vm3678_vm9, -1e+09, %v3676_v51 }
 0xb47   :  { %v3689_v48 = vsel %vm3681_vm7, %v3680_v5, -inf }
 0xb48   :  { %v3685_v56 = vrot.slane %v3684_v47, 2  ;;  %v3690_v17 = vrot.slane %v3689_v48, 4 }
 0xb4a   :  { %v3686_v19 = vmax.f32 %v3684_v47, %v3685_v56  ;;  %v3691_v61 = vmax.f32 %v3689_v48, %v3690_v17 }
 0xb4c   :  { %v3687_v36 = vrot.slane %v3686_v19, 1  ;;  %v3692_v4 = vrot.slane %v3691_v61, 2 }
 0xb4e   :  { %v3688_v9 = vmax.f32 %v3686_v19, %v3687_v36  ;;  %v3693_v12 = vmax.f32 %v3691_v61, %v3692_v4 }
 0xb50   :  { %v3696_v14 = vsub.f32 %v3679_v59, %v3688_v9  ;;  %v3694_v2 = vrot.slane %v3693_v12, 1 }
 0xb52   :  { %v3698_v23 = vmul.f32 1.442695, %v3696_v14  ;;  %v3695_v24 = vmax.f32 %v3693_v12, %v3694_v2  ;;  %v5914_v14 = vld [vmem:[#allocation13 + $0x78] sm:$0xff]   ;;  %v5921_v2 = vld [vmem:[#allocation14 + $0x68] sm:$0xff]  }
 0xb53   :  { %5372 = vmatprep.subr.bf16.mxu0 %v5921_v2 }
 0xb54   :  { %6164 = vpow2.f32 %v3698_v23  ;;  %v3697_v11 = vsub.f32 %v3680_v5, %v3695_v24  ;;  %v5922_v23 = vld [vmem:[#allocation14 + $0x28] sm:$0xff]   ;;  %v5925_v24 = vld [vmem:[#allocation14 + $0x20] sm:$0xff]  }
 0xb55   :  { %5373 = vmatpush3.bf16.msra.mxu0 %v5922_v23 }
 0xb56   :  { %v3700_v39 = vmul.f32 1.442695, %v3697_v11  ;;  %v5920_v11 = vld [vmem:[#allocation13 + $0x68] sm:$0xff]  }
 0xb58   :  { %6166 = vpow2.f32 %v3700_v39  ;;  %v5927_v39 = vld [vmem:[#allocation14 + $0x58] sm:$0xff]  }
 0xb60   :  { %v3342_v43 = vpop.permute.xlu1 %3341 }
 0xb61   :  { %v6165_v40 = vpop.eup %6164  ;;  %v3344_v57 = vmul.f32 %v3342_v43, %v6893_v16  ;;  %v5931_v43 = vld [vmem:[#allocation14 + $0x10] sm:$0xff]  }
 0xb62   :  { %v3702_v42 = vsel %vm3681_vm7, %v6165_v40, 0.0  ;;  %v3352_v25 = vpop.permute.xlu0 %3351 }
 0xb63   :  { %v3703_v18 = vrot.slane %v3702_v42, 4  ;;  %v3354_v35 = vmul.f32 %v3352_v25, %v6939_v6  ;;  %v5934_v25 = vld [vmem:[#allocation14 + $0x8] sm:$0xff]  }
 0xb64   :  { %v3389_v28 = vpop.permute.xlu1 %3388 }
 0xb65   :  { %v6167_v44 = vpop.eup %6166  ;;  %v3704_v45 = vadd.f32 %v3703_v18, %v3702_v42  ;;  %v3356_v50 = vrot.slane %v3354_v35, 2  ;;  %v5923_v42 = vld [vmem:[#allocation13 + $0x60] sm:$0xff]   ;;  %v5930_v18 = vld [vmem:[#allocation14 + $0x50] sm:$0xff]  }
 0xb66   :  { %v3709_v20 = vsel %vm3681_vm7, %v6167_v44, 0.0  ;;  %v5937_v35 = vld [vmem:[#allocation14] sm:$0xff]  }
 0xb67   :  { %v3705_v31 = vrot.slane %v3704_v45, 2  ;;  %v3710_v46 = vrot.slane %v3709_v20, 4  ;;  %v3358_v8 = vadd.f32 %v3356_v50, %v3344_v57  ;;  %v5938_v57 = vld [vmem:[#allocation14 + $0xf8] sm:$0xff]  }
 0xb68   :  { %v3365_v49 = vpop.permute.xlu1 %3364 }
 0xb69   :  { %v3706_v3 = vadd.f32 %v3705_v31, %v3704_v45  ;;  %v3711_v21 = vadd.f32 %v3710_v46, %v3709_v20  ;;  %v3367_v52 = vmul.f32 %v3365_v49, %v6985_v7  ;;  %v3391_v7 = vmul.f32 %v3389_v28, %v7113_v15  ;;  %v5926_v45 = vld [vmem:[#allocation13 + $0x58] sm:$0xff]   ;;  %v5936_v20 = vld [vmem:[#allocation14 + $0x40] sm:$0xff]   ;;  %v5929_v31 = vld [vmem:[#allocation13 + $0x50] sm:$0xff]  }
 0xb6a   :  { %v3899_v46 = vld [vmem:[%s7448_s1 + $0x8] sm:$0xff]  ;;  %v3905_v28 = vld [vmem:[%s7448_s1 + $0x38] sm:$0xff] }
 0xb6b   :  { %v3707_v34 = vrot.slane %v3706_v3, 1  ;;  %v3712_v27 = vrot.slane %v3711_v21, 2  ;;  %v3369_v58 = vrot.slane %v3367_v52, 4  ;;  %v5932_v49 = vld [vmem:[#allocation13 + $0x48] sm:$0xff]   ;;  %v5941_v52 = vld [vmem:[#allocation14 + $0x138] sm:$0xff]  }
 0xb6c   :  { %v3378_v60 = vpop.permute.xlu1 %3377 }
 0xb6d   :  { %v3708_v53 = vadd.f32 %v3707_v34, %v3706_v3  ;;  %v3713_v54 = vadd.f32 %v3712_v27, %v3711_v21  ;;  %v3380_v30 = vmul.f32 %v3378_v60, %v7035_v33  ;;  %v3371_v32 = vadd.f32 %v3369_v58, %v3358_v8  ;;  %v3898_v21 = vld [vmem:[%s7448_s1] sm:$0xff]  ;;  %v3904_v34 = vld [vmem:[%s7448_s1 + $0x30] sm:$0xff] }
 0xb6e   :  { %v3911_v3 = vpack.c.bf16 %v3905_v28, %v3899_v46  ;;  %v5940_v27 = vld [vmem:[#allocation14 + $0x178] sm:$0xff]   ;;  %v3910_v50 = vpack.c.bf16 %v3904_v34, %v3898_v21  ;;  %v5945_v58 = vld [vmem:[#allocation14 + $0x130] sm:$0xff]   ;;  %v5948_v60 = vld [vmem:[#allocation14 + $0x168] sm:$0xff]  }
 0xb6f   :  { %6168 = vrcp.f32 %v3708_v53  ;;  %v3714_v37 = vrot.slane %v3713_v54, 1  ;;  %v3382_v59 = vrot.slane %v3380_v30, 6  ;;  %v5944_v53 = vld [vmem:[#allocation14 + $0x170] sm:$0xff]   ;;  %v5952_v8 = vld [vmem:[#allocation14 + $0x160] sm:$0xff]   ;;  %v5947_v46 = vld [vmem:[#allocation14 + $0xa8] sm:$0xff]  }
 0xb70   :  { %v3397_v26 = vpop.permute.xlu1 %3396  ;;  %4339 = vmatprep.mubr.bf16.mxu0 %v3911_v3  ;;  %v5953_v30 = vld [vmem:[#allocation14 + $0x120] sm:$0xff]   ;;  %v5954_v3 = vld [vmem:[#allocation14 + $0xd8] sm:$0xff]   ;;  %v5958_v34 = vld [vmem:[#allocation14 + $0xd0] sm:$0xff]  }
 0xb71   :  { %v3715_v6 = vadd.f32 %v3714_v37, %v3713_v54  ;;  %v3384_v62 = vadd.f32 %v3382_v59, %v3371_v32  ;;  %v3399_v51 = vmul.f32 %v3397_v26, %v7187_v29  ;;  %v5935_v54 = vld [vmem:[#allocation13 + $0x40] sm:$0xff]   ;;  %v5949_v37 = vld [vmem:[#allocation14 + $0x128] sm:$0xff]   ;;  %v5957_v32 = vld [vmem:[#allocation14 + $0x118] sm:$0xff]  }
 0xb72   :  { %v5960_v59 = vld [vmem:[#allocation14 + $0x150] sm:$0xff]   ;;  %v5964_v26 = vld [vmem:[#allocation14 + $0x148] sm:$0xff]   ;;  %v5950_v28 = vld [vmem:[#allocation14 + $0xe0] sm:$0xff]  }
 0xb73   :  { %6170 = vrcp.f32 %v3715_v6  ;;  %v3392_v47 = vadd.f32 %v3391_v7, %v3384_v62  ;;  %v3401_v16 = vrot.slane %v3399_v51, 2  ;;  %v5956_v6 = vld [vmem:[#allocation14 + $0x158] sm:$0xff]   ;;  %v5965_v62 = vld [vmem:[#allocation14 + $0x108] sm:$0xff]   ;;  %v5968_v51 = vld [vmem:[#allocation14 + $0x140] sm:$0xff]  }
 0xb74   :  { %v3408_v0 = vpop.permute.xlu1 %3407  ;;  %v3903_v7 = vld [vmem:[%s7448_s1 + $0x28] sm:$0xff]  ;;  %v5955_v21 = vld [vmem:[#allocation14 + $0x98] sm:$0xff]  }
 0xb75   :  { %v3410_v5 = vmul.f32 %v3408_v0, %v7232_v1  ;;  %v3403_v19 = vadd.f32 %v3401_v16, %v3392_v47  ;;  %v5917_v1 = vld [vmem:[#allocation13 + $0x70] sm:$0xff]   ;;  %v5969_v16 = vld [vmem:[#allocation14 + $0x100] sm:$0xff]  }
 0xb76   :  { %v3909_v0 = vld [vmem:[%s7448_s1 + $0x58] sm:$0xff] }
 0xb77   :  { %v3412_v48 = vrot.slane %v3410_v5, 4  ;;  %v3915_v47 = vpack.c.bf16 %v3909_v0, %v3903_v7  ;;  %v3902_v5 = vld [vmem:[%s7448_s1 + $0x20] sm:$0xff]  ;;  %v5984_v0 = vld [vmem:[#allocation16 + $0xa4] ss:$16 sps:$4 sm:$0xff]  }
 0xb78   :  { %v3419_v56 = vpop.permute.xlu1 %3418  ;;  %v5979_v7 = vld [vmem:[#allocation16 + $0xc8] ss:$16 sps:$4 sm:$0xff]  }
 0xb79   :  { %v3421_v33 = vmul.f32 %v3419_v56, %v7269_v63  ;;  %v3414_v36 = vadd.f32 %v3412_v48, %v3403_v19  ;;  %v5924_v63 = vld [vmem:[#allocation14 + $0x60] sm:$0xff]   ;;  %v3908_v48 = vld [vmem:[%s7448_s1 + $0x50] sm:$0xff] }
 0xb7a   :  { %5374 = vmatprep.subr.bf16.mxu0 %v5924_v63  ;;  %v3914_v56 = vpack.c.bf16 %v3908_v48, %v3902_v5  ;;  %v5990_v5 = vld [vmem:[#allocation16 + $0x84] ss:$16 sps:$4 sm:$0xff]   ;;  %v5993_v48 = vld [vmem:[#allocation16 + $0x8c] ss:$16 sps:$4 sm:$0xff]  }
 0xb7b   :  { %v3423_v4 = vrot.slane %v3421_v33, 6  ;;  %5375 = vmatpush3.bf16.msra.mxu0 %v5925_v24 }
 0xb7c   :  { %v6169_v17 = vpop.eup %6168  ;;  %5376 = vmatprep.subr.bf16.mxu0 %v5927_v39 }
 0xb7d   :  { %v3718_v61 = vmul.f32 %v6169_v17, %v6165_v40  ;;  %v3425_v12 = vadd.f32 %v3423_v4, %v3414_v36  ;;  %v5928_v40 = vld [vmem:[#allocation14 + $0x18] sm:$0xff]  }
 0xb7f   :  { %3722 = vperm.xlu1 %5537, %v3718_v61   ;;  %v3426_v15 = vpack.c.bf16 %v3425_v12, %v3425_v12  ;;  %5377 = vmatpush3.bf16.msra.mxu0 %v5928_v40 }
 0xb80   :  { %v6171_v9 = vpop.eup %6170  ;;  %5378 = vmatprep.subr.bf16.mxu0 %v5930_v18 }
 0xb81   :  { %v3719_v29 = vmul.f32 %v6171_v9, %v6167_v44  ;;  %5471 = vmatmul.mubr.bf16.vlgmr.msra.gmra.mxu1 %v3426_v15  ;;  %v5933_v44 = vld [vmem:[#allocation14 + $0x48] sm:$0xff]  }
 0xb82   :  { %5495 = vmatpush3.bf16.msra.mxu1 %v5914_v14  ;;  %5510 = vmatprep.mubr.msk.bf16.mxu1 %vm6519_vm2, %v6518_v41 }
 0xb83   :  { %3727 = vperm.xlu0 %5536, %v3719_v29   ;;  %5496 = vmatprep.subr.bf16.mxu1 %v6518_v41 }
 0xb84   :  { %5379 = vmatpush3.bf16.msra.mxu0 %v5931_v43  ;;  %v5939_v43 = vld [vmem:[#allocation14 + $0xb8] sm:$0xff]  }
 0xb85   :  { %5380 = vmatprep.subr.bf16.mxu0 %v5933_v44 }
 0xb86   :  { %5497 = vmatpush3.bf16.msra.mxu1 %v5917_v1 }
 0xb87   :  { %5498 = vmatprep.subr.bf16.mxu1 %v6518_v41 }
 0xb88   :  { %5381 = vmatpush3.bf16.msra.mxu0 %v5934_v25  ;;  %v5942_v25 = vld [vmem:[#allocation14 + $0xf0] sm:$0xff]  }
 0xb89   :  { %5382 = vmatprep.subr.bf16.mxu0 %v5936_v20  ;;  %v5943_v20 = vld [vmem:[#allocation14 + $0xb0] sm:$0xff]  }
 0xb8a   :  { %5499 = vmatpush3.bf16.msra.mxu1 %v5920_v11 }
 0xb8b   :  { %5500 = vmatprep.subr.bf16.mxu1 %v6518_v41 }
 0xb8c   :  { %5383 = vmatpush3.bf16.msra.mxu0 %v5937_v35  ;;  %v5951_v35 = vld [vmem:[#allocation14 + $0xa0] sm:$0xff]  }
 0xb8d   :  { %5412 = vmatprep.subr.bf16.mxu0 %v5940_v27  ;;  %v5959_v27 = vld [vmem:[#allocation14 + $0x90] sm:$0xff]  }
 0xb8e   :  { %5501 = vmatpush3.bf16.msra.mxu1 %v5923_v42 }
 0xb8f   :  { %5502 = vmatprep.subr.bf16.mxu1 %v6518_v41  ;;  %4340 = vmatmul.mubr.bf16.vlgmr.msra.gmra.mxu0 %v3910_v50  ;;  %v5963_v50 = vld [vmem:[#allocation14 + $0x88] sm:$0xff]  }
 0xb90   :  { %5413 = vmatpush3.bf16.msra.mxu0 %v5941_v52  ;;  %4421 = vmatprep.mubr.bf16.mxu0 %v3915_v47  ;;  %v5966_v52 = vld [vmem:[#allocation14 + $0xc0] sm:$0xff]  }
 0xb91   :  { %5414 = vmatprep.subr.bf16.mxu0 %v5944_v53  ;;  %v5967_v53 = vld [vmem:[#allocation14 + $0x80] sm:$0xff]  }
 0xb92   :  { %5503 = vmatpush3.bf16.msra.mxu1 %v5926_v45  ;;  %v5982_v47 = vld [vmem:[#allocation16 + $0xa0] ss:$16 sps:$4 sm:$0xff]  }
 0xb93   :  { %5504 = vmatprep.subr.bf16.mxu1 %v6518_v41 }
 0xb94   :  { %5415 = vmatpush3.bf16.msra.mxu0 %v5945_v58 }
 0xb95   :  { %5416 = vmatprep.subr.bf16.mxu0 %v5948_v60 }
 0xb96   :  { %5505 = vmatpush3.bf16.msra.mxu1 %v5929_v31  ;;  %v5946_v31 = vld [vmem:[#allocation14 + $0xe8] sm:$0xff]  }
 0xb97   :  { %5506 = vmatprep.subr.bf16.mxu1 %v6518_v41 }
 0xb98   :  { %5417 = vmatpush3.bf16.msra.mxu0 %v5949_v37 }
 0xb99   :  { %5418 = vmatprep.subr.bf16.mxu0 %v5952_v8 }
 0xb9a   :  { %5507 = vmatpush3.bf16.msra.mxu1 %v5932_v49  ;;  %v5962_v49 = vld [vmem:[#allocation14 + $0xc8] sm:$0xff]  }
 0xb9b   :  { %5508 = vmatprep.subr.bf16.mxu1 %v6518_v41  ;;  %v5961_v41 = vld [vmem:[#allocation14 + $0x110] sm:$0xff]  }
 0xb9c   :  { %5419 = vmatpush3.bf16.msra.mxu0 %v5953_v30 }
 0xb9d   :  { %5420 = vmatprep.subr.bf16.mxu0 %v5956_v6  ;;  %v5970_v6 = vld [vmem:[#allocation16 + $0xe0] ss:$16 sps:$4 sm:$0xff]  }
 0xb9e   :  { %5509 = vmatpush3.bf16.msra.mxu1 %v5935_v54  ;;  %v3900_v54 = vld [vmem:[%s7448_s1 + $0x10] sm:$0xff] }
 0xb9f   :  { %5390 = vmatprep.subr.bf16.mxu1 %v5938_v57  ;;  %v3906_v57 = vld [vmem:[%s7448_s1 + $0x40] sm:$0xff] }
 0xba0   :  { %5421 = vmatpush3.bf16.msra.mxu0 %v5957_v32  ;;  %v3912_v58 = vpack.c.bf16 %v3906_v57, %v3900_v54  ;;  %v5972_v32 = vld [vmem:[#allocation16 + $0xe4] ss:$16 sps:$4 sm:$0xff]  }
 0xba1   :  { %5422 = vmatprep.subr.bf16.mxu0 %v5960_v59  ;;  %v5973_v59 = vld [vmem:[#allocation16 + $0xe8] ss:$16 sps:$4 sm:$0xff]  }
 0xba4   :  { %5423 = vmatpush3.bf16.msra.mxu0 %v5961_v41  ;;  %v5975_v41 = vld [vmem:[#allocation16 + $0xec] ss:$16 sps:$4 sm:$0xff]  }
 0xba5   :  { %5424 = vmatprep.subr.bf16.mxu0 %v5964_v26  ;;  %v5978_v26 = vld [vmem:[#allocation16 + $0xc4] ss:$16 sps:$4 sm:$0xff]  }
 0xba8   :  { %5425 = vmatpush3.bf16.msra.mxu0 %v5965_v62  ;;  %v5981_v62 = vld [vmem:[#allocation16 + $0xcc] ss:$16 sps:$4 sm:$0xff]  }
 0xba9   :  { %5426 = vmatprep.subr.bf16.mxu0 %v5968_v51  ;;  %v5976_v51 = vld [vmem:[#allocation16 + $0xc0] ss:$16 sps:$4 sm:$0xff]  }
 0xbac   :  { %5427 = vmatpush3.bf16.msra.mxu0 %v5969_v16  ;;  %v5985_v16 = vld [vmem:[#allocation16 + $0xa8] ss:$16 sps:$4 sm:$0xff]  }
 0xbad   :  { %4688 = vmatprep.subr.bf16.mxu0 %v5975_v41 }
 0xbaf   :  { %4422 = vmatmul.mubr.bf16.vlgmr.msra.gmra.mxu0 %v3914_v56  ;;  %v5988_v56 = vld [vmem:[#allocation16 + $0x80] ss:$16 sps:$4 sm:$0xff]  }
 0xbb0   :  { %4720 = vmatprep.mubr.bf16.mxu0 %v7493_v13  ;;  %4689 = vmatpush1.bf16.msra.mxu0 %v5973_v59 }
 0xbb1   :  { %4690 = vmatprep.subr.bf16.mxu0 %v5981_v62 }
 0xbb4   :  { %4691 = vmatpush1.bf16.msra.mxu0 %v5979_v7 }
 0xbfa   :  { %v3723_v17 = vpop.permute.xlu1 %3722 }
 0xbfb   :  { %v3730_v19 = vmul.f32 %v3723_v17, %v7304_v10  ;;  %v3901_v10 = vld [vmem:[%s7448_s1 + $0x18] sm:$0xff] }
 0xbfc   :  { %v5991_v17 = vld [vmem:[#allocation16 + $0x88] ss:$16 sps:$4 sm:$0xff]  }
 0xbfd   :  { %v3732_v33 = vrot.slane %v3730_v19, 4 }
 0xbfe   :  { %v3728_v61 = vpop.permute.xlu0 %3727 }
 0xbff   :  { %v3733_v36 = vadd.f32 %v3732_v33, %v3730_v19  ;;  %v3731_v4 = vmul.f32 %v3728_v61, %v7306_v22  ;;  %v3907_v22 = vld [vmem:[%s7448_s1 + $0x48] sm:$0xff]  ;;  %v5999_v33 = vld [vmem:[#allocation16 + $0x6c] ss:$16 sps:$4 sm:$0xff]   ;;  %s6520_s1 = smov [#allocation19]  }
 0xc00   :  { %v3913_v44 = vpack.c.bf16 %v3907_v22, %v3901_v10  ;;  %v5996_v19 = vld [vmem:[#allocation16 + $0x64] ss:$16 sps:$4 sm:$0xff]   ;;  %v5994_v61 = vld [vmem:[#allocation16 + $0x60] ss:$16 sps:$4 sm:$0xff]   ;;  %v5218_v10 = vld [vmem:[#allocation17 + $0xc] ss:$0 sm:$0xff] }
 0xc01   :  { %v3734_v9 = vrot.slane %v3733_v36, 2  ;;  %v3738_v12 = vrot.slane %v3731_v4, 4  ;;  %s4888_s5 = sshll.u32 %s6520_s1, 4  ;;  %s4889_s5 = int_to_ptr.vmem [resolvable:$true] %s4888_s5 }
 0xc02   :  { %s6446_s26 = scalar_lea.vmem %s4889_s5, 1024  ;;  %p6451_p9 = scmp.lt.s32.totalorder %s4889_s5, %s4889_s5 }
 0xc03   :  { %v3735_v29 = vadd.f32 %v3734_v9, %v3733_v36  ;;  %v3739_v14 = vadd.f32 %v3738_v12, %v3731_v4  ;;  %v5997_v36 = vld [vmem:[#allocation16 + $0x68] ss:$16 sps:$4 sm:$0xff]   ;;  %v6000_v4 = vld [vmem:[#allocation16 + $0x40] ss:$16 sps:$4 sm:$0xff]   ;;  %v6002_v9 = vld [vmem:[#allocation16 + $0x44] ss:$16 sps:$4 sm:$0xff]   ;;  %p6447_p8 = scmp.ne.s32.totalorder %s4889_s5, %s6446_s26  ;;  %p6452_p10 = scmp.lt.s32.totalorder %s6446_s26, %s6446_s26 }
 0xc04   :  { %v6003_v12 = vld [vmem:[#allocation16 + $0x48] ss:$16 sps:$4 sm:$0xff]  }
 0xc05   :  { %v3736_v15 = vrot.slane %v3735_v29, 1  ;;  %v3740_v2 = vrot.slane %v3739_v14, 2  ;;  %p6453_p11 = por %p6452_p10, %p6451_p9 }
 0xc07   :  { %v3737_v23 = vadd.f32 %v3736_v15, %v3735_v29  ;;  %v3741_v1 = vadd.f32 %v3740_v2, %v3739_v14  ;;  %v6005_v29 = vld [vmem:[#allocation16 + $0x4c] ss:$16 sps:$4 sm:$0xff]   ;;  %v6006_v14 = vld [vmem:[#allocation16 + $0x20] ss:$16 sps:$4 sm:$0xff]   ;;  %v6008_v15 = vld [vmem:[#allocation16 + $0x24] ss:$16 sps:$4 sm:$0xff]   ;;  %p6454_p12 = pnand %p6453_p11, %p6447_p8 }
 0xc08   :  { %v6009_v2 = vld [vmem:[#allocation16 + $0x28] ss:$16 sps:$4 sm:$0xff]  }
 0xc09   :  { %v3742_v63 = vrot.slane %v3741_v1, 1  ;;  %v3744_v24 = vpack.c.bf16 %v3737_v23, %v3737_v23  ;;  %v6011_v23 = vld [vmem:[#allocation16 + $0x2c] ss:$16 sps:$4 sm:$0xff]  }
 0xc0b   :  { %v3743_v11 = vadd.f32 %v3742_v63, %v3741_v1  ;;  %v3772_v40 = vunpack.c.l.b16 %v3744_v24  ;;  %v6012_v1 = vld [vmem:[#allocation16] ss:$16 sps:$4 sm:$0xff]   ;;  %v6014_v63 = vld [vmem:[#allocation16 + $0x4] ss:$16 sps:$4 sm:$0xff]   ;;  %v6015_v24 = vld [vmem:[#allocation16 + $0x8] ss:$16 sps:$4 sm:$0xff]  }
 0xc0d   :  { %v3745_v39 = vpack.c.bf16 %v3743_v11, %v3743_v11  ;;  %v6017_v11 = vld [vmem:[#allocation16 + $0xc] ss:$16 sps:$4 sm:$0xff]  }
 0xc0f   :  { %v3773_v42 = vunpack.c.l.b16 %v3745_v39  ;;  %v5198_v39 = vld [vmem:[#allocation17 + $0x9] ss:$0 sm:$0xff] }
 0xc11   :  { %v3775_v18 = vsel %vm3774_vm10, %v3773_v42, %v3772_v40 }
 0xc12   :  { %v3776_v45 = vpack.c.b16 %v3775_v18, %v3775_v18 }
 0xc14   :  { %5511 = vmatmul.mubr.bf16.vlgmr.msra.gmra.mxu1 %v3776_v45 }
 0xc15   :  { %5391 = vmatpush3.bf16.msra.mxu1 %v5939_v43  ;;  %4380 = vmatprep.mubr.bf16.mxu1 %v3913_v44 }
 0xc16   :  { %5392 = vmatprep.subr.bf16.mxu1 %v5942_v25 }
 0xc19   :  { %5393 = vmatpush3.bf16.msra.mxu1 %v5943_v20 }
 0xc1a   :  { %5394 = vmatprep.subr.bf16.mxu1 %v5946_v31 }
 0xc1d   :  { %5395 = vmatpush3.bf16.msra.mxu1 %v5947_v46 }
 0xc1e   :  { %5396 = vmatprep.subr.bf16.mxu1 %v5950_v28 }
 0xc21   :  { %5397 = vmatpush3.bf16.msra.mxu1 %v5951_v35 }
 0xc22   :  { %5398 = vmatprep.subr.bf16.mxu1 %v5954_v3 }
 0xc25   :  { %5399 = vmatpush3.bf16.msra.mxu1 %v5955_v21 }
 0xc26   :  { %5400 = vmatprep.subr.bf16.mxu1 %v5958_v34 }
 0xc29   :  { %5401 = vmatpush3.bf16.msra.mxu1 %v5959_v27 }
 0xc2a   :  { %5402 = vmatprep.subr.bf16.mxu1 %v5962_v49  ;;  %v5229_v49 = vld [vmem:[#allocation17 + $0xf] ss:$0 sm:$0xff] }
 0xc2d   :  { %5403 = vmatpush3.bf16.msra.mxu1 %v5963_v50 }
 0xc2e   :  { %5404 = vmatprep.subr.bf16.mxu1 %v5966_v52 }
 0xc31   :  { %5405 = vmatpush3.bf16.msra.mxu1 %v5967_v53 }
 0xc32   :  { %4645 = vmatprep.subr.bf16.mxu1 %v5972_v32 }
 0xc34   :  { %4381 = vmatmul.mubr.bf16.vlgmr.msra.gmra.mxu1 %v3912_v58 }
 0xc35   :  { %4677 = vmatprep.mubr.bf16.mxu1 %v7493_v13  ;;  %4646 = vmatpush1.bf16.msra.mxu1 %v5970_v6  ;;  %v5987_v13 = vld [vmem:[#allocation16 + $0xac] ss:$16 sps:$4 sm:$0xff]  }
 0xc36   :  { %4647 = vmatprep.subr.bf16.mxu1 %v5978_v26  ;;  %4692 = vmatprep.subr.bf16.mxu0 %v5987_v13 }
 0xc37   :  { %4693 = vmatpush1.bf16.msra.mxu0 %v5985_v16  ;;  %v4463_v16 = vld [vmem:[#allocation17 + $0x10] sm:$0xf] }
 0xc38   :  { %4694 = vmatprep.subr.bf16.mxu0 %v5993_v48  ;;  %v7504_v48 = vld [vmem:[#allocation36_spill] sm:$0xff] }
 0xc39   :  { %4648 = vmatpush1.bf16.msra.mxu1 %v5976_v51 }
 0xc3a   :  { %4649 = vmatprep.subr.bf16.mxu1 %v5984_v0 }
 0xc3b   :  { %4695 = vmatpush1.bf16.msra.mxu0 %v5991_v17 }
 0xc3c   :  { %4696 = vmatprep.subr.bf16.mxu0 %v5999_v33  ;;  %v7506_v33 = vsub.s32 3, %v7504_v48 }
 0xc3d   :  { %4650 = vmatpush1.bf16.msra.mxu1 %v5982_v47 }
 0xc3e   :  { %4651 = vmatprep.subr.bf16.mxu1 %v5990_v5  ;;  %v4468_v5 = vrot.slane %v4463_v16, %v7500_v55 }
 0xc3f   :  { %4697 = vmatpush1.bf16.msra.mxu0 %v5997_v36 }
 0xc40   :  { %4698 = vmatprep.subr.bf16.mxu0 %v6005_v29 }
 0xc41   :  { %v7393_v60 = vpop.f32.mrf.mxu1  ;;  %4652 = vmatpush1.bf16.msra.mxu1 %v5988_v56  ;;  %v7505_v56 = vsub.s32 2, %v7504_v48 }
 0xc42   :  { %4653 = vmatprep.subr.bf16.mxu1 %v5996_v19  ;;  %v3533_v40 = vadd.f32 %v5198_v39, %v7393_v60  ;;  %v4472_v19 = vrot.slane %v4463_v16, %v7501_v38 }
 0xc43   :  { %v5472_v37 = vpop.f32.mrf.mxu1  ;;  %4699 = vmatpush1.bf16.msra.mxu0 %v6003_v12  ;;  %v4476_v17 = vrot.slane %v4463_v16, %v7505_v56 }
 0xc44   :  { %4700 = vmatprep.subr.bf16.mxu0 %v6011_v23 }
 0xc45   :  { %v3535_v8 = vpop.f32.mrf.mxu1  ;;  %4654 = vmatpush1.bf16.msra.mxu1 %v5994_v61  ;;  %v4480_v61 = vrot.slane %v4463_v16, %v7506_v33 }
 0xc46   :  { %4655 = vmatprep.subr.bf16.mxu1 %v6002_v9 }
 0xc47   :  { %v5473_v30 = vpop.f32.mrf.mxu1  ;;  %4701 = vmatpush1.bf16.msra.mxu0 %v6009_v2 }
 0xc48   :  { %4702 = vmatprep.subr.bf16.mxu0 %v6017_v11 }
 0xc49   :  { %4656 = vmatpush1.bf16.msra.mxu1 %v6000_v4 }
 0xc4a   :  { %4657 = vmatprep.subr.bf16.mxu1 %v6008_v15 }
 0xc4b   :  { %4703 = vmatpush1.bf16.msra.mxu0 %v6015_v24 }
 0xc4d   :  { %4658 = vmatpush1.bf16.msra.mxu1 %v6006_v14 }
 0xc4e   :  { %4659 = vmatprep.subr.bf16.mxu1 %v6014_v63 }
 0xc4f   :  { %v5384_v20 = vpop.f32.mrf.mxu0 }
 0xc51   :  { %4660 = vmatpush1.bf16.msra.mxu1 %v6012_v1  ;;  %v5385_v31 = vpop.f32.mrf.mxu0 }
 0xc52   :  { %v5386_v27 = vadd.f32 %v5385_v31, %v5384_v20 }
 0xc53   :  { %v5387_v46 = vpop.f32.mrf.mxu0 }
 0xc54   :  { %v4342_v58 = vadd.f32 %v5386_v27, %v5229_v49 }
 0xc55   :  { %v5388_v28 = vpop.f32.mrf.mxu0 }
 0xc56   :  { %v5389_v50 = vadd.f32 %v5388_v28, %v5387_v46 }
 0xc58   :  { %v4345_v60 = vadd.f32 %v5389_v50, %v5229_v49 }
 0xc6f   :  { %v5428_v35 = vpop.f32.mrf.mxu0 }
 0xc71   :  { %v5429_v3 = vpop.f32.mrf.mxu0 }
 0xc72   :  { %v5430_v30 = vadd.f32 %v5429_v3, %v5428_v35 }
 0xc73   :  { %v5431_v34 = vpop.f32.mrf.mxu0 }
 0xc75   :  { %v5432_v57 = vpop.f32.mrf.mxu0 }
 0xc76   :  { %v5433_v32 = vadd.f32 %v5432_v57, %v5431_v34 }
 0xcd4   :  { %v3860_v22 = vpop.f32.mrf.mxu1 }
 0xcd5   :  { %v3861_v42 = vadd.f32 %v5218_v10, %v3860_v22 }
 0xcd6   :  { %v5512_v18 = vpop.f32.mrf.mxu1 }
 0xcd7   :  { %v3866_v43 = vadd.f32 %v3861_v42, %v3533_v40 }
 0xcd8   :  { %v3863_v44 = vpop.f32.mrf.mxu1 }
 0xcd9   :  { %v3867_v45 = vsel %vm2818_vm0, %v3866_v43, 0.0 }
 0xcda   :  { %3868 = vadd.xlane.f32.xlu1 %v3867_v45  ;;  %v5513_v25 = vpop.f32.mrf.mxu1 }
 0xcf4   :  { %v5406_v21 = vpop.f32.mrf.mxu1 }
 0xcf6   :  { %v5407_v52 = vpop.f32.mrf.mxu1 }
 0xcf7   :  { %v5408_v53 = vadd.f32 %v5407_v52, %v5406_v21 }
 0xcf8   :  { %v5409_v54 = vpop.f32.mrf.mxu1 }
 0xcf9   :  { %v4383_v8 = vadd.f32 %v5408_v53, %v4342_v58 }
 0xcfa   :  { %v5410_v37 = vpop.f32.mrf.mxu1 }
 0xcfb   :  { %v5411_v6 = vadd.f32 %v5410_v37, %v5409_v54  ;;  %v4424_v41 = vadd.f32 %v5430_v30, %v4383_v8 }
 0xcfd   :  { %v4386_v59 = vadd.f32 %v5411_v6, %v4345_v60 }
 0xcff   :  { %v4427_v26 = vadd.f32 %v5433_v32, %v4386_v59 }
 0xd01   :  { %v4430_v62 = vpack.c.bf16 %v4427_v26, %v4424_v41 }
 0xd03   :  { %4678 = vmatmul.mubr.bf16.vlgmr.msra.gmra.mxu1 %v4430_v62  ;;  %4721 = vmatmul.mubr.bf16.vlgmr.msra.gmra.mxu0 %v4430_v62 }
 0xd63   :  { %v3869_v51 = vpop.xlane.xlu1 %3868 }
 0xd64   :  { %v3871_v7 = vmul.f32 0.0078125, %v3869_v51 }
 0xd66   :  { %v7397_v0 = vsub.f32 %v3866_v43, %v3871_v7 }
 0xd68   :  { %v3873_v13 = vmul.f32 %v7397_v0, %v7397_v0 }
 0xd6a   :  { %v3874_v47 = vsel %vm2818_vm0, %v3873_v13, 0.0 }
 0xd6b   :  { %3875 = vadd.xlane.f32.xlu0 %v3874_v47 }
 0xdc3   :  { %v4679_v36 = vpop.f32.mrf.mxu1  ;;  %v4722_v4 = vpop.f32.mrf.mxu0 }
 0xdc4   :  { %v4680_v9 = vadd.f32 %v4679_v36, %v4468_v5  ;;  %v4723_v12 = vadd.f32 %v4722_v4, %v4476_v17 }
 0xdc5   :  { %v4681_v29 = vpop.f32.mrf.mxu1  ;;  %v4724_v14 = vpop.f32.mrf.mxu0 }
 0xdc6   :  { %v4731_v15 = vrot.slane %v4680_v9, 4  ;;  %v4743_v2 = vrot.slane %v4723_v12, 4  ;;  %v4682_v23 = vadd.f32 %v4681_v29, %v4472_v19  ;;  %v4725_v1 = vadd.f32 %v4724_v14, %v4480_v61 }
 0xdc7   :  { %v4683_v63 = vpop.f32.mrf.mxu1  ;;  %v4726_v55 = vpop.f32.mrf.mxu0 }
 0xdc8   :  { %v4732_v24 = vmax.f32 %v4680_v9, %v4731_v15  ;;  %v4744_v11 = vmax.f32 %v4723_v12, %v4743_v2  ;;  %v4737_v39 = vrot.slane %v4682_v23, 4  ;;  %v4749_v10 = vrot.slane %v4725_v1, 4 }
 0xdc9   :  { %v4684_v38 = vadd.f32 %v4683_v63, %v4468_v5  ;;  %v4727_v22 = vadd.f32 %v4726_v55, %v4476_v17  ;;  %v4685_v40 = vpop.f32.mrf.mxu1  ;;  %v4728_v42 = vpop.f32.mrf.mxu0 }
 0xdca   :  { %v4733_v18 = vrot.slane %v4732_v24, 2  ;;  %v4745_v43 = vrot.slane %v4744_v11, 2  ;;  %v4738_v44 = vmax.f32 %v4682_v23, %v4737_v39  ;;  %v4750_v45 = vmax.f32 %v4725_v1, %v4749_v10 }
 0xdcb   :  { %v4755_v25 = vrot.slane %v4684_v38, 4  ;;  %v4767_v20 = vrot.slane %v4727_v22, 4  ;;  %v4686_v31 = vadd.f32 %v4685_v40, %v4472_v19  ;;  %v4729_v46 = vadd.f32 %v4728_v42, %v4480_v61 }
 0xdcc   :  { %v4734_v28 = vmax.f32 %v4732_v24, %v4733_v18  ;;  %v4746_v35 = vmax.f32 %v4744_v11, %v4745_v43  ;;  %v4739_v3 = vrot.slane %v4738_v44, 2  ;;  %v4751_v21 = vrot.slane %v4750_v45, 2 }
 0xdcd   :  { %v4756_v34 = vmax.f32 %v4684_v38, %v4755_v25  ;;  %v4768_v27 = vmax.f32 %v4727_v22, %v4767_v20  ;;  %v4761_v49 = vrot.slane %v4686_v31, 4  ;;  %v4773_v50 = vrot.slane %v4729_v46, 4 }
 0xdce   :  { %v4735_v52 = vrot.slane %v4734_v28, 1  ;;  %v4747_v53 = vrot.slane %v4746_v35, 1  ;;  %v4740_v54 = vmax.f32 %v4738_v44, %v4739_v3  ;;  %v4752_v57 = vmax.f32 %v4750_v45, %v4751_v21 }
 0xdcf   :  { %v4757_v58 = vrot.slane %v4756_v34, 2  ;;  %v4769_v60 = vrot.slane %v4768_v27, 2  ;;  %v4762_v37 = vmax.f32 %v4686_v31, %v4761_v49  ;;  %v4774_v8 = vmax.f32 %v4729_v46, %v4773_v50 }
 0xdd0   :  { %v4736_v30 = vmax.f32 %v4734_v28, %v4735_v52  ;;  %v4748_v6 = vmax.f32 %v4746_v35, %v4747_v53  ;;  %v4741_v32 = vrot.slane %v4740_v54, 1  ;;  %v4753_v59 = vrot.slane %v4752_v57, 1 }
 0xdd1   :  { %v4758_v41 = vmax.f32 %v4756_v34, %v4757_v58  ;;  %v4770_v26 = vmax.f32 %v4768_v27, %v4769_v60  ;;  %v4763_v62 = vrot.slane %v4762_v37, 2  ;;  %v4775_v51 = vrot.slane %v4774_v8, 2 }
 0xdd2   :  { %v7408_v7 = vsub.f32 %v4680_v9, %v4736_v30  ;;  %v7410_v13 = vsub.f32 %v4723_v12, %v4748_v6  ;;  %v4742_v47 = vmax.f32 %v4740_v54, %v4741_v32  ;;  %v4754_v16 = vmax.f32 %v4752_v57, %v4753_v59 }
 0xdd3   :  { %v4759_v5 = vrot.slane %v4758_v41, 1  ;;  %v4771_v48 = vrot.slane %v4770_v26, 1  ;;  %v4764_v56 = vmax.f32 %v4762_v37, %v4763_v62  ;;  %v4776_v17 = vmax.f32 %v4774_v8, %v4775_v51 }
 0xdd4   :  { %v4787_v19 = vmul.f32 1.442695, %v7408_v7  ;;  %v4791_v33 = vmul.f32 1.442695, %v7410_v13  ;;  %v7414_v61 = vsub.f32 %v4682_v23, %v4742_v47  ;;  %v7416_v36 = vsub.f32 %v4725_v1, %v4754_v16 }
 0xdd5   :  { %v4760_v4 = vmax.f32 %v4758_v41, %v4759_v5  ;;  %v4772_v29 = vmax.f32 %v4770_v26, %v4771_v48  ;;  %v4765_v9 = vrot.slane %v4764_v56, 1  ;;  %v4777_v14 = vrot.slane %v4776_v17, 1 }
 0xdd6   :  { %6172 = vpow2.f32 %v4787_v19  ;;  %v4789_v12 = vmul.f32 1.442695, %v7414_v61  ;;  %v4793_v15 = vmul.f32 1.442695, %v7416_v36 }
 0xdd7   :  { %6174 = vpow2.f32 %v4791_v33  ;;  %v7420_v2 = vsub.f32 %v4684_v38, %v4760_v4  ;;  %v7422_v63 = vsub.f32 %v4727_v22, %v4772_v29  ;;  %v4766_v55 = vmax.f32 %v4764_v56, %v4765_v9 }
 0xdd8   :  { %6176 = vpow2.f32 %v4789_v12  ;;  %v4778_v23 = vmax.f32 %v4776_v17, %v4777_v14 }
 0xdd9   :  { %6178 = vpow2.f32 %v4793_v15  ;;  %v4795_v1 = vmul.f32 1.442695, %v7420_v2  ;;  %v4799_v24 = vmul.f32 1.442695, %v7422_v63  ;;  %v7426_v11 = vsub.f32 %v4686_v31, %v4766_v55 }
 0xdda   :  { %v7428_v39 = vsub.f32 %v4729_v46, %v4778_v23 }
 0xddb   :  { %6180 = vpow2.f32 %v4795_v1  ;;  %v4797_v10 = vmul.f32 1.442695, %v7426_v11 }
 0xddc   :  { %6182 = vpow2.f32 %v4799_v24  ;;  %v4801_v38 = vmul.f32 1.442695, %v7428_v39 }
 0xddd   :  { %6184 = vpow2.f32 %v4797_v10 }
 0xdde   :  { %6186 = vpow2.f32 %v4801_v38 }
 0xde3   :  { %v6173_v22 = vpop.eup %6172 }
 0xde4   :  { %v6175_v40 = vpop.eup %6174  ;;  %v4803_v42 = vrot.slane %v6173_v22, 4 }
 0xde5   :  { %v6177_v18 = vpop.eup %6176  ;;  %v4815_v43 = vrot.slane %v6175_v40, 4 }
 0xde6   :  { %v6179_v44 = vpop.eup %6178  ;;  %v4804_v45 = vadd.f32 %v6173_v22, %v4803_v42  ;;  %v4809_v25 = vrot.slane %v6177_v18, 4 }
 0xde7   :  { %v4816_v20 = vadd.f32 %v6175_v40, %v4815_v43  ;;  %v4821_v31 = vrot.slane %v6179_v44, 4 }
 0xde8   :  { %v6181_v46 = vpop.eup %6180  ;;  %v4805_v28 = vrot.slane %v4804_v45, 2  ;;  %v4810_v35 = vadd.f32 %v6177_v18, %v4809_v25 }
 0xde9   :  { %v6183_v3 = vpop.eup %6182  ;;  %v4817_v21 = vrot.slane %v4816_v20, 2  ;;  %v4822_v34 = vadd.f32 %v6179_v44, %v4821_v31  ;;  %v4827_v27 = vrot.slane %v6181_v46, 4 }
 0xdea   :  { %v6185_v49 = vpop.eup %6184  ;;  %v4806_v50 = vadd.f32 %v4805_v28, %v4804_v45  ;;  %v4811_v52 = vrot.slane %v4810_v35, 2  ;;  %v4839_v53 = vrot.slane %v6183_v3, 4 }
 0xdeb   :  { %v6187_v54 = vpop.eup %6186  ;;  %v4818_v57 = vadd.f32 %v4817_v21, %v4816_v20  ;;  %v4823_v58 = vrot.slane %v4822_v34, 2  ;;  %v4828_v60 = vadd.f32 %v6181_v46, %v4827_v27  ;;  %v4833_v37 = vrot.slane %v6185_v49, 4 }
 0xdec   :  { %v4807_v8 = vrot.slane %v4806_v50, 1  ;;  %v4812_v30 = vadd.f32 %v4811_v52, %v4810_v35  ;;  %v4840_v6 = vadd.f32 %v6183_v3, %v4839_v53  ;;  %v4845_v32 = vrot.slane %v6187_v54, 4 }
 0xded   :  { %v4819_v59 = vrot.slane %v4818_v57, 1  ;;  %v4824_v41 = vadd.f32 %v4823_v58, %v4822_v34  ;;  %v4829_v26 = vrot.slane %v4828_v60, 2  ;;  %v4834_v62 = vadd.f32 %v6185_v49, %v4833_v37 }
 0xdee   :  { %v4808_v51 = vadd.f32 %v4807_v8, %v4806_v50  ;;  %v4813_v47 = vrot.slane %v4812_v30, 1  ;;  %v4841_v16 = vrot.slane %v4840_v6, 2  ;;  %v4846_v5 = vadd.f32 %v6187_v54, %v4845_v32 }
 0xdef   :  { %v4820_v48 = vadd.f32 %v4819_v59, %v4818_v57  ;;  %v4825_v56 = vrot.slane %v4824_v41, 1  ;;  %v4830_v17 = vadd.f32 %v4829_v26, %v4828_v60  ;;  %v4835_v19 = vrot.slane %v4834_v62, 2 }
 0xdf0   :  { %6188 = vlog2.f32 %v4808_v51  ;;  %v4814_v33 = vadd.f32 %v4813_v47, %v4812_v30  ;;  %v4842_v4 = vadd.f32 %v4841_v16, %v4840_v6  ;;  %v4847_v29 = vrot.slane %v4846_v5, 2 }
 0xdf1   :  { %6190 = vlog2.f32 %v4820_v48  ;;  %v4826_v9 = vadd.f32 %v4825_v56, %v4824_v41  ;;  %v4831_v14 = vrot.slane %v4830_v17, 1  ;;  %v4836_v12 = vadd.f32 %v4835_v19, %v4834_v62 }
 0xdf2   :  { %6192 = vlog2.f32 %v4814_v33  ;;  %v4843_v15 = vrot.slane %v4842_v4, 1  ;;  %v4848_v55 = vadd.f32 %v4847_v29, %v4846_v5 }
 0xdf3   :  { %6194 = vlog2.f32 %v4826_v9  ;;  %v4832_v23 = vadd.f32 %v4831_v14, %v4830_v17  ;;  %v4837_v1 = vrot.slane %v4836_v12, 1 }
 0xdf4   :  { %v4844_v24 = vadd.f32 %v4843_v15, %v4842_v4  ;;  %v4849_v10 = vrot.slane %v4848_v55, 1  ;;  %v3876_v38 = vpop.xlane.xlu0 %3875 }
 0xdf5   :  { %6196 = vlog2.f32 %v4832_v23  ;;  %v4838_v22 = vadd.f32 %v4837_v1, %v4836_v12  ;;  %v3877_v40 = vmul.f32 0.0078125, %v3876_v38 }
 0xdf6   :  { %6198 = vlog2.f32 %v4844_v24  ;;  %v4850_v42 = vadd.f32 %v4849_v10, %v4848_v55 }
 0xdf7   :  { %6200 = vlog2.f32 %v4838_v22  ;;  %v3878_v18 = vadd.f32 1e-06, %v3877_v40 }
 0xdf8   :  { %6202 = vlog2.f32 %v4850_v42 }
 0xdf9   :  { %6204 = vrsqrt.f32 %v3878_v18 }
 0xdfd   :  { %v6189_v43 = vpop.eup %6188 }
 0xdfe   :  { %v6191_v44 = vpop.eup %6190  ;;  %v4852_v45 = vmul.f32 0.6931472, %v6189_v43 }
 0xdff   :  { %v6193_v25 = vpop.eup %6192  ;;  %v4856_v20 = vmul.f32 0.6931472, %v6191_v44 }
 0xe00   :  { %v6195_v31 = vpop.eup %6194  ;;  %v4867_v46 = vsub.f32 %v7408_v7, %v4852_v45  ;;  %v4854_v28 = vmul.f32 0.6931472, %v6193_v25 }
 0xe01   :  { %v4869_v35 = vsub.f32 %v7410_v13, %v4856_v20  ;;  %v4858_v3 = vmul.f32 0.6931472, %v6195_v31 }
 0xe02   :  { %v6197_v21 = vpop.eup %6196  ;;  %4875 = vst [vmem:[#allocation19] sm:$0xff] %v4867_v46  ;;  %v4868_v34 = vsub.f32 %v7414_v61, %v4854_v28  ;;  %v5227_v61 = vld [vmem:[#allocation17 + $0xd] ss:$0 sm:$0xff] }
 0xe03   :  { %v6199_v27 = vpop.eup %6198  ;;  %4877 = vst [vmem:[#allocation19 + $0x10] sm:$0xff] %v4869_v35  ;;  %v4870_v49 = vsub.f32 %v7416_v36, %v4858_v3  ;;  %v4860_v50 = vmul.f32 0.6931472, %v6197_v21 }
 0xe04   :  { %v6201_v52 = vpop.eup %6200  ;;  %4876 = vst [vmem:[#allocation19 + $0x8] sm:$0xff] %v4868_v34  ;;  %v4864_v53 = vmul.f32 0.6931472, %v6199_v27 }
 0xe05   :  { %v6203_v54 = vpop.eup %6202  ;;  %4878 = vst [vmem:[#allocation19 + $0x18] sm:$0xff] %v4870_v49  ;;  %v4871_v7 = vsub.f32 %v7420_v2, %v4860_v50  ;;  %v4862_v57 = vmul.f32 0.6931472, %v6201_v52  ;;  %v5228_v2 = vld [vmem:[#allocation17 + $0xe] ss:$0 sm:$0xff] }
 0xe06   :  { %v6205_v13 = vpop.eup %6204  ;;  %v4873_v58 = vsub.f32 %v7422_v63, %v4864_v53  ;;  %v4866_v60 = vmul.f32 0.6931472, %v6203_v54 }
 0xe07   :  { %4879 = vst [vmem:[#allocation19 + $0x20] sm:$0xff] %v4871_v7  ;;  %v4872_v37 = vsub.f32 %v7426_v11, %v4862_v57  ;;  %v3880_v36 = vmul.f32 %v6205_v13, %v7397_v0 }
 0xe08   :  { %4881 = vst [vmem:[#allocation19 + $0x30] sm:$0xff] %v4873_v58  ;;  %v4874_v8 = vsub.f32 %v7428_v39, %v4866_v60 }
 0xe09   :  { %4880 = vst [vmem:[#allocation19 + $0x28] sm:$0xff] %v4872_v37  ;;  %v3888_v30 = vmul.f32 %v5227_v61, %v3880_v36 }
 0xe0a   :  { %4882 = vst [vmem:[#allocation19 + $0x38] sm:$0xff] %v4874_v8 }
 0xe0b   :  { %6457 = shalt.err (!%p6454_p12)
}
 0xe0c   :  { %s6522_s0 = smov 512   ;;  %s6523_s8 = smov 32   ;;  %v3896_v0 = vadd.f32 %v5228_v2, %v3888_v30 }
 0xe0d   :  { %4894 = dma.vmem_to_hbm [thread:$0]  %s4889_s5, 1024, %s7460_s13, [#allocation4], %s6522_s0, %s6522_s0, %s6523_s8  }
 0xe0e   :  { %3897 = vst [vmem:[#allocation20] sm:$0x3] %v3896_v0  ;;  %s6466_s28 = scalar_lea.vmem %s4902_s25, 32  ;;  %p6471_p0 = scmp.lt.s32.totalorder %s4902_s25, %s4902_s25 }
 0xe0f   :  { %p6467_p13 = scmp.ne.s32.totalorder %s4902_s25, %s6466_s28  ;;  %p6472_p1 = scmp.lt.s32.totalorder %s6466_s28, %s6466_s28 }
 0xe11   :  { %p6473_p2 = por %p6472_p1, %p6471_p0 }
 0xe13   :  { %p6474_p3 = pnand %p6473_p2, %p6467_p13 }
 0xe15   :  { %6477 = shalt.err (!%p6474_p3)
}
 0xe16   :  { %4904 = dma.vmem_to_hbm [thread:$0]  %s4902_s25, 32, %s7461_s14, [#allocation21]  }
 0xe17   :  { %6498 = dma.done.wait [#allocation4], 1024  }
 0xe18   :  { %6499 = vsyncadd [#allocation4], 4294966272 }
 0xe19   :  { %6500 = dma.done.wait [#allocation21], 32  }
 0xe1a   :  { %6501 = vsyncadd [#allocation21], 4294967264 }
 0xe1b   :  { %4911 = vsyncpa [#allocation3], 1 }
 0xe1c   :  { %4912 = vsyncpa [#allocation6], 1 }
 0xe1d   :  { %4913 = vsyncpa [#allocation9], 1 }
 0xe1e   :  { %4914 = vsyncpa [#allocation12], 1 }
 0xe1f   :  { %4915 = vsyncpa [#allocation15], 1 }
 0xe20   :  { %4916 = vsyncpa [#allocation18], 1 }
 0xe21   :  { %4917 = vsyncpa [#allocation4], 1 }
 0xe22   :  { %4918 = vsyncpa [#allocation21], 1 }

</bundles_post_ra>
